<compile_context>
chip_gen: v6e
topology: v6e:2x2x1
jax: 0.10.0
libtpu: 0.0.40
codegen_flags: <defaults>
</compile_context>

<pallas_src>
import functools

import jax
import jax.numpy as jnp
from jax.experimental import pallas as pl
from jax.experimental.pallas import tpu as pltpu


# ----------------------------------------------------------------------------
# helpers
# ----------------------------------------------------------------------------
def _round_up(x, m):
    return ((x + m - 1) // m) * m


def _vspec():
    return pl.BlockSpec(memory_space=pltpu.MemorySpace.VMEM)


def _choose_m_tiling(m):
    """Row tiling: always >=2 grid steps (keeps both v7x TensorCores busy),
    tiles up to 1024 rows (~85% of HBM roofline vs ~63% at 256)."""
    if m >= 2048:
        return 1024, _round_up(m, 1024)
    tile_m = max(8, _round_up(m, 16) // 2)
    return tile_m, 2 * tile_m


# ----------------------------------------------------------------------------
# Pallas kernels
# ----------------------------------------------------------------------------
def _conv_kernel(x_ref, w_ref, s_ref, b_ref, f_ref, o_ref):
    # Single-K-tile MXU matmul + folded-BN affine + per-channel ReLU "floor"
    # (floor=0 -> ReLU, floor=-inf -> identity; lets one kernel serve the
    # fused conv1+shortcut matmul whose two halves have different epilogues).
    z = jnp.dot(x_ref[...], w_ref[...], preferred_element_type=jnp.float32)
    z = z * s_ref[...] + b_ref[...]
    o_ref[...] = jnp.maximum(z, f_ref[...]).astype(o_ref.dtype)


def _conv_sc_kernel(x_ref, w_ref, s_ref, b_ref, sc_ref, o_ref):
    # Conv + BN + residual-shortcut add + ReLU, fused epilogue.
    z = jnp.dot(x_ref[...], w_ref[...], preferred_element_type=jnp.float32)
    z = z * s_ref[...] + b_ref[...] + sc_ref[...].astype(jnp.float32)
    o_ref[...] = jnp.maximum(z, 0.0).astype(o_ref.dtype)


def _maxpool_kernel(p00_ref, p01_ref, p10_ref, p11_ref, o_ref, *, ho, wo):
    # 3x3/stride-2 max pool on four parity planes: tap (di,dj) of the window
    # is a contiguous (+0/+1 shifted) slice of plane (di%2, dj%2).
    planes = [
        [p00_ref[0].astype(jnp.float32), p01_ref[0].astype(jnp.float32)],
        [p10_ref[0].astype(jnp.float32), p11_ref[0].astype(jnp.float32)],
    ]
    out = None
    for di in range(3):
        for dj in range(3):
            p = planes[di % 2][dj % 2]
            t = p[di // 2:di // 2 + ho, dj // 2:dj // 2 + wo, :]
            out = t if out is None else jnp.maximum(out, t)
    o_ref[0] = out.astype(o_ref.dtype)


def _gap_fc_kernel(x_ref, w_ref, b_ref, emb_ref, out_ref):
    # Global average pool over the spatial axis + tiny FC matmul, f32 math.
    x = x_ref[...].astype(jnp.float32)          # (N, H*W, Cpad)
    emb = jnp.mean(x, axis=1)
    emb_ref[...] = emb
    out_ref[...] = jnp.dot(emb, w_ref[...],
                           preferred_element_type=jnp.float32) + b_ref[...]


# ----------------------------------------------------------------------------
# Pallas-call wrappers
# ----------------------------------------------------------------------------
def _conv_matmul(cols, w, s, b, f, sc, tile_m):
    """cols:(Mpad,Kpad) bf16, w:(Kpad,CoutP) bf16, s/b/f:(1,CoutP) f32,
       sc:(Mpad,CoutP) bf16 or None -> (Mpad,CoutP) bf16."""
    m_pad, kpad = cols.shape
    coutp = w.shape[1]
    nm = m_pad // tile_m

    x_spec = pl.BlockSpec((tile_m, kpad), lambda i: (i, 0))
    w_spec = pl.BlockSpec((kpad, coutp), lambda i: (0, 0))
    v_spec = pl.BlockSpec((1, coutp), lambda i: (0, 0))
    o_spec = pl.BlockSpec((tile_m, coutp), lambda i: (i, 0))

    flops = 2 * m_pad * kpad * coutp
    bytes_acc = (cols.size + w.size + m_pad * coutp) * 2 + 3 * coutp * 4

    if sc is not None:
        bytes_acc += sc.size * 2
        kern = _conv_sc_kernel
        in_specs = [x_spec, w_spec, v_spec, v_spec, o_spec]
        args = (cols, w, s, b, sc)
    else:
        kern = _conv_kernel
        in_specs = [x_spec, w_spec, v_spec, v_spec, v_spec]
        args = (cols, w, s, b, f)

    return pl.pallas_call(
        kern,
        out_shape=jax.ShapeDtypeStruct((m_pad, coutp), jnp.bfloat16),
        grid_spec=pltpu.PrefetchScalarGridSpec(
            num_scalar_prefetch=0,
            grid=(nm,),
            in_specs=in_specs,
            out_specs=o_spec),
        compiler_params=pltpu.CompilerParams(
            dimension_semantics=("parallel",),
            vmem_limit_bytes=48 * 1024 * 1024),
        cost_estimate=pl.CostEstimate(flops=flops, transcendentals=0,
                                      bytes_accessed=bytes_acc),
    )(*args)


def _im2col(x, cin, stride):
    """3x3, padding=1 patch extraction (XLA glue).  Only the true `cin`
    channels are gathered -> K = 9*cin (padded to a 128-multiple later)."""
    n, h, w, _ = x.shape
    xp = jnp.pad(x[..., :cin], ((0, 0), (1, 1), (1, 1), (0, 0))).astype(jnp.bfloat16)
    ho = (h - 1) // stride + 1
    wo = (w - 1) // stride + 1
    pats = [
        xp[:, di:di + stride * ho:stride, dj:dj + stride * wo:stride, :]
        for di in range(3)
        for dj in range(3)
    ]
    p = jnp.stack(pats, axis=3)                      # (N, Ho, Wo, 9, Cin)
    return p.reshape(n * ho * wo, 9 * cin), (n, ho, wo)


def conv_layer(x, layer, shortcut=None):
    """x: (N,H,W,C>=cin) bf16 -> (N,Ho,Wo,CoutP) bf16.  Optionally fuses a
    residual `shortcut` (same output shape) add + ReLU into the epilogue."""
    cin, stride = layer["cin"], layer["stride"]
    kpad, coutp = layer["w"].shape

    cols, (n, ho, wo) = _im2col(x, cin, stride)      # (M, 9*cin) bf16
    m = n * ho * wo
    tile_m, m_pad = _choose_m_tiling(m)
    cols = jnp.pad(cols, ((0, m_pad - m), (0, kpad - cols.shape[1])))

    sc = None
    if shortcut is not None:
        sc = jnp.pad(shortcut.reshape(m, coutp), ((0, m_pad - m), (0, 0)))

    y = _conv_matmul(cols, layer["w"], layer["s"], layer["b"], layer["f"],
                     sc, tile_m)
    return y[:m].reshape(n, ho, wo, coutp)


def max_pool_3x3_s2(x):
    """MaxPool2d(3, stride=2).  Even/odd parity planes are built once in XLA;
    the kernel only takes contiguous slices, so the input is streamed ~once
    instead of as 9 strided HBM copies."""
    n, h, w, c = x.shape
    ho, wo = (h - 3) // 2 + 1, (w - 3) // 2 + 1
    planes = [x[:, di::2, dj::2, :] for di in range(2) for dj in range(2)]
    in_specs = [pl.BlockSpec((1,) + p.shape[1:], lambda b: (b, 0, 0, 0))
                for p in planes]
    o_spec = pl.BlockSpec((1, ho, wo, c), lambda b: (b, 0, 0, 0))
    return pl.pallas_call(
        functools.partial(_maxpool_kernel, ho=ho, wo=wo),
        out_shape=jax.ShapeDtypeStruct((n, ho, wo, c), x.dtype),
        grid_spec=pltpu.PrefetchScalarGridSpec(
            num_scalar_prefetch=0,
            grid=(n,),
            in_specs=in_specs,
            out_specs=o_spec),
        compiler_params=pltpu.CompilerParams(
            dimension_semantics=("parallel",)),
    )(*planes)


def gap_linear(x, fc_w, fc_b, c3, num_classes):
    """AdaptiveAvgPool2d((1,1)) + Flatten + Linear fused into one kernel."""
    # TODO(synk): add a batch-axis grid/BlockSpec if N*H*W*C outgrows VMEM.
    n, h, w, c = x.shape
    emb, out = pl.pallas_call(
        _gap_fc_kernel,
        out_shape=(jax.ShapeDtypeStruct((n, c), jnp.float32),
                   jax.ShapeDtypeStruct((n, fc_w.shape[1]), jnp.float32)),
        in_specs=[_vspec(), _vspec(), _vspec()],
        out_specs=(_vspec(), _vspec()),
    )(x.reshape(n, h * w, c), fc_w, fc_b)
    return emb[:, :c3], out[:, :num_classes]


# ----------------------------------------------------------------------------
# Parameter preparation (matmul-ready layout, done once outside the kernels)
# ----------------------------------------------------------------------------
def _prep_conv(w, scale, bias, relu, stride):
    """Pack a 3x3 conv + folded per-channel affine into MXU layout:
       weight (Kpad, CoutP) bf16; scale/bias/floor (1, CoutP) f32."""
    cout, cin = w.shape[0], w.shape[1]
    kraw, kpad = 9 * cin, _round_up(9 * cin, 128)
    coutp = _round_up(cout, 128)
    wt = jnp.transpose(w, (2, 3, 1, 0)).reshape(kraw, cout)
    w_mat = jnp.zeros((kpad, coutp), jnp.float32).at[:kraw, :cout].set(wt)
    s = jnp.zeros((1, coutp), jnp.float32).at[0, :cout].set(scale)
    b = jnp.zeros((1, coutp), jnp.float32).at[0, :cout].set(bias)
    f = jnp.zeros((1, coutp), jnp.float32).at[0, :cout].set(
        0.0 if relu else -jnp.inf)
    return {"w": w_mat.astype(jnp.bfloat16), "s": s, "b": b, "f": f,
            "cin": cin, "cout": cout, "stride": stride}


def _concat_convs(a, b_):
    """Fuse two convs sharing the same input into ONE matmul by concatenating
    along the output-channel axis (shared im2col streamed once; N=2*CoutP
    fills the 256-wide MXU on v6e/v7x)."""
    assert a["cin"] == b_["cin"] and a["stride"] == b_["stride"]
    return {"w": jnp.concatenate([a["w"], b_["w"]], axis=1),
            "s": jnp.concatenate([a["s"], b_["s"]], axis=1),
            "b": jnp.concatenate([a["b"], b_["b"]], axis=1),
            "f": jnp.concatenate([a["f"], b_["f"]], axis=1),
            "cin": a["cin"], "cout": a["cout"] + b_["cout"],
            "stride": a["stride"]}


def _block_config(block_channels):
    c0, c1, c2, c3 = block_channels
    cfg = [(c0, c0, 1)] * 3
    cfg += [(c0, c1, 2)] + [(c1, c1, 1)] * 3
    cfg += [(c1, c2, 2)] + [(c2, c2, 1)] * 5
    cfg += [(c2, c3, 2)] + [(c3, c3, 1)] * 2
    return cfg


def init_network(key, in_channel, num_classes, block_channels):
    keys = iter(jax.random.split(key, 256))

    def conv_w(cout, cin):
        std = (2.0 / (9 * cin)) ** 0.5
        return std * jax.random.normal(next(keys), (cout, cin, 3, 3), jnp.float32)

    def bn_fold(c):
        # PyTorch defaults in eval mode: gamma=1, beta=0, mean=0, var=1, eps=1e-5
        scale = jnp.ones((c,), jnp.float32) / jnp.sqrt(1.0 + 1e-5)
        bias = jnp.zeros((c,), jnp.float32)
        return scale, bias

    c0, c3 = block_channels[0], block_channels[-1]
    s, b = bn_fold(c0)
    params = {"stem": _prep_conv(conv_w(c0, in_channel), s, b,
                                 relu=True, stride=1)}

    blocks = []
    for cin, cout, stride in _block_config(block_channels):
        s1, b1 = bn_fold(cout)
        conv1 = _prep_conv(conv_w(cout, cin), s1, b1, relu=True, stride=stride)
        s2, b2 = bn_fold(cout)
        conv2 = _prep_conv(conv_w(cout, cout), s2, b2, relu=True, stride=1)
        blk = {"c2": conv2, "coutp": _round_up(cout, 128)}
        if stride != 1 or cin != cout:
            # projection shortcut: Conv2d(3x3, padding=1, bias=True), no BN/ReLU
            bsc = 0.01 * jax.random.normal(next(keys), (cout,), jnp.float32)
            csc = _prep_conv(conv_w(cout, cin), jnp.ones((cout,), jnp.float32),
                             bsc, relu=False, stride=stride)
            blk["c1sc"] = _concat_convs(conv1, csc)
            blk["c1"] = None
        else:
            blk["c1"] = conv1
            blk["c1sc"] = None
        blocks.append(blk)
    params["blocks"] = blocks

    ncp = _round_up(num_classes, 128)
    c3p = _round_up(c3, 128)
    fw = (1.0 / c3) ** 0.5 * jax.random.normal(
        next(keys), (num_classes, c3), jnp.float32)
    fb = 0.01 * jax.random.normal(next(keys), (num_classes,), jnp.float32)
    params["fc_w"] = jnp.zeros((c3p, ncp), jnp.float32).at[:c3, :num_classes].set(fw.T)
    params["fc_b"] = jnp.zeros((1, ncp), jnp.float32).at[0, :num_classes].set(fb)
    params["c3"] = c3
    params["num_classes"] = num_classes
    return params


# ----------------------------------------------------------------------------
# Forward pass
# ----------------------------------------------------------------------------
def residual_block(x, blk):
    coutp = blk["coutp"]
    if blk["c1sc"] is not None:
        # downsample block: conv1 + 3x3 projection shortcut share one im2col
        # and one matmul; conv2's im2col reads only the first `cout` channels
        # (conv1's half), the second half is the shortcut streamed into the
        # fused add+ReLU epilogue of conv2.
        y_cat = conv_layer(x, blk["c1sc"])          # (N,Ho,Wo, 2*coutp)
        sc = y_cat[..., coutp:]
        y = y_cat
    else:
        y = conv_layer(x, blk["c1"])
        sc = x                                      # identity shortcut
    return conv_layer(y, blk["c2"], shortcut=sc)


def network_forward(params, x_nchw, return_embedding=False):
    # NCHW -> NHWC, bf16 activations (f32 accumulation inside the kernels).
    x = jnp.transpose(x_nchw, (0, 2, 3, 1)).astype(jnp.bfloat16)

    # stem: Conv(bias=False) + BN + ReLU, fused
    x = conv_layer(x, params["stem"])
    # MaxPool2d(3, stride=2), no padding
    x = max_pool_3x3_s2(x)
    for blk in params["blocks"]:
        x = residual_block(x, blk)
    emb, out = gap_linear(x, params["fc_w"], params["fc_b"],
                          params["c3"], params["num_classes"])
    if return_embedding:
        return emb, out
    return out


# ----------------------------------------------------------------------------
if __name__ == "__main__":
    key = jax.random.PRNGKey(0)
    k_x, k_p = jax.random.split(key)

    # Small shapes consistent with the module's interface.
    batch, in_channel, spatial = 2, 4, 16
    num_classes = 10
    block_channels = [8, 16, 32, 64]

    x = jax.random.normal(k_x, (batch, in_channel, spatial, spatial), jnp.float32)
    params = init_network(k_p, in_channel, num_classes, block_channels)

    fwd = jax.jit(functools.partial(network_forward, params))
    out = jax.block_until_ready(fwd(x))

    assert out.shape == (batch, num_classes), out.shape
    assert bool(jnp.all(jnp.isfinite(out)))
    print("KERNEL_OK")
</pallas_src>

<mosaic_0001>
module attributes {stable_mosaic.version = 11 : i64} {
  func.func @_conv_kernel(%arg0: i32, %arg1: memref<256x128xbf16, #tpu.memory_space<vmem>>, %arg2: memref<128x128xbf16, #tpu.memory_space<vmem>>, %arg3: memref<1x128xf32, #tpu.memory_space<vmem>>, %arg4: memref<1x128xf32, #tpu.memory_space<vmem>>, %arg5: memref<1x128xf32, #tpu.memory_space<vmem>>, %arg6: memref<256x128xbf16, #tpu.memory_space<vmem>>) attributes {dimension_semantics = [#tpu.dimension_semantics<parallel>], iteration_bounds = array<i64: 2>, scalar_prefetch = 0 : i64, scratch_operands = 0 : i64, tpu.core_type = #tpu.core_type<tc>, window_params = [{transform_indices = @transform_0, window_bounds = array<i64: 256, 128>}, {pipeline_mode = #tpu.pipeline_mode<synchronous>, transform_indices = @transform_1, window_bounds = array<i64: 128, 128>}, {pipeline_mode = #tpu.pipeline_mode<synchronous>, transform_indices = @transform_2, window_bounds = array<i64: 1, 128>}, {pipeline_mode = #tpu.pipeline_mode<synchronous>, transform_indices = @transform_3, window_bounds = array<i64: 1, 128>}, {pipeline_mode = #tpu.pipeline_mode<synchronous>, transform_indices = @transform_4, window_bounds = array<i64: 1, 128>}, {transform_indices = @transform_5, window_bounds = array<i64: 256, 128>}]} {
    %c0 = arith.constant 0 : index
    %c0_0 = arith.constant 0 : index
    %0 = vector.load %arg1[%c0, %c0_0] : memref<256x128xbf16, #tpu.memory_space<vmem>>, vector<256x128xbf16>
    %c0_1 = arith.constant 0 : index
    %c0_2 = arith.constant 0 : index
    %1 = vector.load %arg2[%c0_1, %c0_2] : memref<128x128xbf16, #tpu.memory_space<vmem>>, vector<128x128xbf16>
    %cst = arith.constant dense<0.000000e+00> : vector<256x128xf32>
    %2 = tpu.matmul %0, %1, %cst {dimension_numbers = #tpu.dot_dimension_numbers<[1], [0], [0], [1], [0, 0, 1, 1], [], []>} : vector<256x128xbf16>, vector<128x128xbf16>, vector<256x128xf32> -> vector<256x128xf32>
    %c0_3 = arith.constant 0 : index
    %c0_4 = arith.constant 0 : index
    %3 = vector.load %arg3[%c0_3, %c0_4] : memref<1x128xf32, #tpu.memory_space<vmem>>, vector<1x128xf32>
    %4 = vector.broadcast %3 : vector<1x128xf32> to vector<256x128xf32>
    %5 = arith.mulf %2, %4 : vector<256x128xf32>
    %c0_5 = arith.constant 0 : index
    %c0_6 = arith.constant 0 : index
    %6 = vector.load %arg4[%c0_5, %c0_6] : memref<1x128xf32, #tpu.memory_space<vmem>>, vector<1x128xf32>
    %7 = vector.broadcast %6 : vector<1x128xf32> to vector<256x128xf32>
    %8 = arith.addf %5, %7 : vector<256x128xf32>
    %c0_7 = arith.constant 0 : index
    %c0_8 = arith.constant 0 : index
    %9 = vector.load %arg5[%c0_7, %c0_8] : memref<1x128xf32, #tpu.memory_space<vmem>>, vector<1x128xf32>
    %10 = vector.broadcast %9 : vector<1x128xf32> to vector<256x128xf32>
    %11 = arith.maximumf %8, %10 : vector<256x128xf32>
    %12 = arith.truncf %11 : vector<256x128xf32> to vector<256x128xbf16>
    %c0_9 = arith.constant 0 : index
    %c0_10 = arith.constant 0 : index
    %13 = vector.load %arg6[%c0_9, %c0_10] : memref<256x128xbf16, #tpu.memory_space<vmem>>, vector<256x128xbf16>
    tpu.vector_store %arg6[%c0_9, %c0_10], %12 {strides = array<i32>} : memref<256x128xbf16, #tpu.memory_space<vmem>>, vector<256x128xbf16>,
    return
  }
  func.func @transform_0(%arg0: i32) -> (i32, i32) {
    %c0_i32 = arith.constant 0 : i32
    %c0_i32_0 = arith.constant 0 : i32
    return %arg0, %c0_i32 : i32, i32
  }
  func.func @transform_1(%arg0: i32) -> (i32, i32) {
    %c0_i32 = arith.constant 0 : i32
    %c0_i32_0 = arith.constant 0 : i32
    %c0_i32_1 = arith.constant 0 : i32
    return %c0_i32, %c0_i32_0 : i32, i32
  }
  func.func @transform_2(%arg0: i32) -> (i32, i32) {
    %c0_i32 = arith.constant 0 : i32
    %c0_i32_0 = arith.constant 0 : i32
    %c0_i32_1 = arith.constant 0 : i32
    return %c0_i32, %c0_i32_0 : i32, i32
  }
  func.func @transform_3(%arg0: i32) -> (i32, i32) {
    %c0_i32 = arith.constant 0 : i32
    %c0_i32_0 = arith.constant 0 : i32
    %c0_i32_1 = arith.constant 0 : i32
    return %c0_i32, %c0_i32_0 : i32, i32
  }
  func.func @transform_4(%arg0: i32) -> (i32, i32) {
    %c0_i32 = arith.constant 0 : i32
    %c0_i32_0 = arith.constant 0 : i32
    %c0_i32_1 = arith.constant 0 : i32
    return %c0_i32, %c0_i32_0 : i32, i32
  }
  func.func @transform_5(%arg0: i32) -> (i32, i32) {
    %c0_i32 = arith.constant 0 : i32
    %c0_i32_0 = arith.constant 0 : i32
    return %arg0, %c0_i32 : i32, i32
  }
}

module attributes {stable_mosaic.version = 11 : i64} {
  func.func @_maxpool_kernel(%arg0: i32, %arg1: memref<1x8x8x128xbf16, #tpu.memory_space<vmem>>, %arg2: memref<1x8x8x128xbf16, #tpu.memory_space<vmem>>, %arg3: memref<1x8x8x128xbf16, #tpu.memory_space<vmem>>, %arg4: memref<1x8x8x128xbf16, #tpu.memory_space<vmem>>, %arg5: memref<1x7x7x128xbf16, #tpu.memory_space<vmem>>) attributes {dimension_semantics = [#tpu.dimension_semantics<parallel>], iteration_bounds = array<i64: 2>, scalar_prefetch = 0 : i64, scratch_operands = 0 : i64, tpu.core_type = #tpu.core_type<tc>, window_params = [{transform_indices = @transform_0, window_bounds = array<i64: 1, 8, 8, 128>}, {transform_indices = @transform_1, window_bounds = array<i64: 1, 8, 8, 128>}, {transform_indices = @transform_2, window_bounds = array<i64: 1, 8, 8, 128>}, {transform_indices = @transform_3, window_bounds = array<i64: 1, 8, 8, 128>}, {transform_indices = @transform_4, window_bounds = array<i64: 1, 7, 7, 128>}]} {
    %c0 = arith.constant 0 : index
    %c0_0 = arith.constant 0 : index
    %c0_1 = arith.constant 0 : index
    %c0_2 = arith.constant 0 : index
    %0 = vector.load %arg1[%c0, %c0_0, %c0_1, %c0_2] : memref<1x8x8x128xbf16, #tpu.memory_space<vmem>>, vector<1x8x8x128xbf16>
    %1 = vector.shape_cast %0 : vector<1x8x8x128xbf16> to vector<8x8x128xbf16>
    %2 = arith.extf %1 : vector<8x8x128xbf16> to vector<8x8x128xf32>
    %c0_3 = arith.constant 0 : index
    %c0_4 = arith.constant 0 : index
    %c0_5 = arith.constant 0 : index
    %c0_6 = arith.constant 0 : index
    %3 = vector.load %arg2[%c0_3, %c0_4, %c0_5, %c0_6] : memref<1x8x8x128xbf16, #tpu.memory_space<vmem>>, vector<1x8x8x128xbf16>
    %4 = vector.shape_cast %3 : vector<1x8x8x128xbf16> to vector<8x8x128xbf16>
    %5 = arith.extf %4 : vector<8x8x128xbf16> to vector<8x8x128xf32>
    %c0_7 = arith.constant 0 : index
    %c0_8 = arith.constant 0 : index
    %c0_9 = arith.constant 0 : index
    %c0_10 = arith.constant 0 : index
    %6 = vector.load %arg3[%c0_7, %c0_8, %c0_9, %c0_10] : memref<1x8x8x128xbf16, #tpu.memory_space<vmem>>, vector<1x8x8x128xbf16>
    %7 = vector.shape_cast %6 : vector<1x8x8x128xbf16> to vector<8x8x128xbf16>
    %8 = arith.extf %7 : vector<8x8x128xbf16> to vector<8x8x128xf32>
    %c0_11 = arith.constant 0 : index
    %c0_12 = arith.constant 0 : index
    %c0_13 = arith.constant 0 : index
    %c0_14 = arith.constant 0 : index
    %9 = vector.load %arg4[%c0_11, %c0_12, %c0_13, %c0_14] : memref<1x8x8x128xbf16, #tpu.memory_space<vmem>>, vector<1x8x8x128xbf16>
    %10 = vector.shape_cast %9 : vector<1x8x8x128xbf16> to vector<8x8x128xbf16>
    %11 = arith.extf %10 : vector<8x8x128xbf16> to vector<8x8x128xf32>
    %12 = vector.extract_strided_slice %2 {offsets = [0, 0, 0], sizes = [7, 7, 128], strides = [1, 1, 1]} : vector<8x8x128xf32> to vector<7x7x128xf32>
    %13 = vector.extract_strided_slice %5 {offsets = [0, 0, 0], sizes = [7, 7, 128], strides = [1, 1, 1]} : vector<8x8x128xf32> to vector<7x7x128xf32>
    %14 = arith.maximumf %12, %13 : vector<7x7x128xf32>
    %15 = vector.extract_strided_slice %2 {offsets = [0, 1, 0], sizes = [7, 7, 128], strides = [1, 1, 1]} : vector<8x8x128xf32> to vector<7x7x128xf32>
    %16 = arith.maximumf %14, %15 : vector<7x7x128xf32>
    %17 = vector.extract_strided_slice %8 {offsets = [0, 0, 0], sizes = [7, 7, 128], strides = [1, 1, 1]} : vector<8x8x128xf32> to vector<7x7x128xf32>
    %18 = arith.maximumf %16, %17 : vector<7x7x128xf32>
    %19 = vector.extract_strided_slice %11 {offsets = [0, 0, 0], sizes = [7, 7, 128], strides = [1, 1, 1]} : vector<8x8x128xf32> to vector<7x7x128xf32>
    %20 = arith.maximumf %18, %19 : vector<7x7x128xf32>
    %21 = vector.extract_strided_slice %8 {offsets = [0, 1, 0], sizes = [7, 7, 128], strides = [1, 1, 1]} : vector<8x8x128xf32> to vector<7x7x128xf32>
    %22 = arith.maximumf %20, %21 : vector<7x7x128xf32>
    %23 = vector.extract_strided_slice %2 {offsets = [1, 0, 0], sizes = [7, 7, 128], strides = [1, 1, 1]} : vector<8x8x128xf32> to vector<7x7x128xf32>
    %24 = arith.maximumf %22, %23 : vector<7x7x128xf32>
    %25 = vector.extract_strided_slice %5 {offsets = [1, 0, 0], sizes = [7, 7, 128], strides = [1, 1, 1]} : vector<8x8x128xf32> to vector<7x7x128xf32>
    %26 = arith.maximumf %24, %25 : vector<7x7x128xf32>
    %27 = vector.extract_strided_slice %2 {offsets = [1, 1, 0], sizes = [7, 7, 128], strides = [1, 1, 1]} : vector<8x8x128xf32> to vector<7x7x128xf32>
    %28 = arith.maximumf %26, %27 : vector<7x7x128xf32>
    %29 = arith.truncf %28 : vector<7x7x128xf32> to vector<7x7x128xbf16>
    %c0_15 = arith.constant 0 : index
    %c0_16 = arith.constant 0 : index
    %c0_17 = arith.constant 0 : index
    %c0_18 = arith.constant 0 : index
    %30 = vector.load %arg5[%c0_15, %c0_16, %c0_17, %c0_18] : memref<1x7x7x128xbf16, #tpu.memory_space<vmem>>, vector<1x7x7x128xbf16>
    %31 = vector.shape_cast %30 : vector<1x7x7x128xbf16> to vector<7x7x128xbf16>
    %32 = vector.shape_cast %29 : vector<7x7x128xbf16> to vector<1x7x7x128xbf16>
    tpu.vector_store %arg5[%c0_15, %c0_16, %c0_17, %c0_18], %32 {strides = array<i32>} : memref<1x7x7x128xbf16, #tpu.memory_space<vmem>>, vector<1x7x7x128xbf16>,
    return
  }
  func.func @transform_0(%arg0: i32) -> (i32, i32, i32, i32) {
    %c0_i32 = arith.constant 0 : i32
    %c0_i32_0 = arith.constant 0 : i32
    %c0_i32_1 = arith.constant 0 : i32
    %c0_i32_2 = arith.constant 0 : i32
    return %arg0, %c0_i32, %c0_i32_0, %c0_i32_1 : i32, i32, i32, i32
  }
  func.func @transform_1(%arg0: i32) -> (i32, i32, i32, i32) {
    %c0_i32 = arith.constant 0 : i32
    %c0_i32_0 = arith.constant 0 : i32
    %c0_i32_1 = arith.constant 0 : i32
    %c0_i32_2 = arith.constant 0 : i32
    return %arg0, %c0_i32, %c0_i32_0, %c0_i32_1 : i32, i32, i32, i32
  }
  func.func @transform_2(%arg0: i32) -> (i32, i32, i32, i32) {
    %c0_i32 = arith.constant 0 : i32
    %c0_i32_0 = arith.constant 0 : i32
    %c0_i32_1 = arith.constant 0 : i32
    %c0_i32_2 = arith.constant 0 : i32
    return %arg0, %c0_i32, %c0_i32_0, %c0_i32_1 : i32, i32, i32, i32
  }
  func.func @transform_3(%arg0: i32) -> (i32, i32, i32, i32) {
    %c0_i32 = arith.constant 0 : i32
    %c0_i32_0 = arith.constant 0 : i32
    %c0_i32_1 = arith.constant 0 : i32
    %c0_i32_2 = arith.constant 0 : i32
    return %arg0, %c0_i32, %c0_i32_0, %c0_i32_1 : i32, i32, i32, i32
  }
  func.func @transform_4(%arg0: i32) -> (i32, i32, i32, i32) {
    %c0_i32 = arith.constant 0 : i32
    %c0_i32_0 = arith.constant 0 : i32
    %c0_i32_1 = arith.constant 0 : i32
    %c0_i32_2 = arith.constant 0 : i32
    return %arg0, %c0_i32, %c0_i32_0, %c0_i32_1 : i32, i32, i32, i32
  }
}

module attributes {stable_mosaic.version = 11 : i64} {
  func.func @_conv_kernel(%arg0: i32, %arg1: memref<56x128xbf16, #tpu.memory_space<vmem>>, %arg2: memref<128x128xbf16, #tpu.memory_space<vmem>>, %arg3: memref<1x128xf32, #tpu.memory_space<vmem>>, %arg4: memref<1x128xf32, #tpu.memory_space<vmem>>, %arg5: memref<1x128xf32, #tpu.memory_space<vmem>>, %arg6: memref<56x128xbf16, #tpu.memory_space<vmem>>) attributes {dimension_semantics = [#tpu.dimension_semantics<parallel>], iteration_bounds = array<i64: 2>, scalar_prefetch = 0 : i64, scratch_operands = 0 : i64, tpu.core_type = #tpu.core_type<tc>, window_params = [{transform_indices = @transform_0, window_bounds = array<i64: 56, 128>}, {pipeline_mode = #tpu.pipeline_mode<synchronous>, transform_indices = @transform_1, window_bounds = array<i64: 128, 128>}, {pipeline_mode = #tpu.pipeline_mode<synchronous>, transform_indices = @transform_2, window_bounds = array<i64: 1, 128>}, {pipeline_mode = #tpu.pipeline_mode<synchronous>, transform_indices = @transform_3, window_bounds = array<i64: 1, 128>}, {pipeline_mode = #tpu.pipeline_mode<synchronous>, transform_indices = @transform_4, window_bounds = array<i64: 1, 128>}, {transform_indices = @transform_5, window_bounds = array<i64: 56, 128>}]} {
    %c0 = arith.constant 0 : index
    %c0_0 = arith.constant 0 : index
    %0 = vector.load %arg1[%c0, %c0_0] : memref<56x128xbf16, #tpu.memory_space<vmem>>, vector<56x128xbf16>
    %c0_1 = arith.constant 0 : index
    %c0_2 = arith.constant 0 : index
    %1 = vector.load %arg2[%c0_1, %c0_2] : memref<128x128xbf16, #tpu.memory_space<vmem>>, vector<128x128xbf16>
    %cst = arith.constant dense<0.000000e+00> : vector<56x128xf32>
    %2 = tpu.matmul %0, %1, %cst {dimension_numbers = #tpu.dot_dimension_numbers<[1], [0], [0], [1], [0, 0, 1, 1], [], []>} : vector<56x128xbf16>, vector<128x128xbf16>, vector<56x128xf32> -> vector<56x128xf32>
    %c0_3 = arith.constant 0 : index
    %c0_4 = arith.constant 0 : index
    %3 = vector.load %arg3[%c0_3, %c0_4] : memref<1x128xf32, #tpu.memory_space<vmem>>, vector<1x128xf32>
    %4 = vector.broadcast %3 : vector<1x128xf32> to vector<56x128xf32>
    %5 = arith.mulf %2, %4 : vector<56x128xf32>
    %c0_5 = arith.constant 0 : index
    %c0_6 = arith.constant 0 : index
    %6 = vector.load %arg4[%c0_5, %c0_6] : memref<1x128xf32, #tpu.memory_space<vmem>>, vector<1x128xf32>
    %7 = vector.broadcast %6 : vector<1x128xf32> to vector<56x128xf32>
    %8 = arith.addf %5, %7 : vector<56x128xf32>
    %c0_7 = arith.constant 0 : index
    %c0_8 = arith.constant 0 : index
    %9 = vector.load %arg5[%c0_7, %c0_8] : memref<1x128xf32, #tpu.memory_space<vmem>>, vector<1x128xf32>
    %10 = vector.broadcast %9 : vector<1x128xf32> to vector<56x128xf32>
    %11 = arith.maximumf %8, %10 : vector<56x128xf32>
    %12 = arith.truncf %11 : vector<56x128xf32> to vector<56x128xbf16>
    %c0_9 = arith.constant 0 : index
    %c0_10 = arith.constant 0 : index
    %13 = vector.load %arg6[%c0_9, %c0_10] : memref<56x128xbf16, #tpu.memory_space<vmem>>, vector<56x128xbf16>
    tpu.vector_store %arg6[%c0_9, %c0_10], %12 {strides = array<i32>} : memref<56x128xbf16, #tpu.memory_space<vmem>>, vector<56x128xbf16>,
    return
  }
  func.func @transform_0(%arg0: i32) -> (i32, i32) {
    %c0_i32 = arith.constant 0 : i32
    %c0_i32_0 = arith.constant 0 : i32
    return %arg0, %c0_i32 : i32, i32
  }
  func.func @transform_1(%arg0: i32) -> (i32, i32) {
    %c0_i32 = arith.constant 0 : i32
    %c0_i32_0 = arith.constant 0 : i32
    %c0_i32_1 = arith.constant 0 : i32
    return %c0_i32, %c0_i32_0 : i32, i32
  }
  func.func @transform_2(%arg0: i32) -> (i32, i32) {
    %c0_i32 = arith.constant 0 : i32
    %c0_i32_0 = arith.constant 0 : i32
    %c0_i32_1 = arith.constant 0 : i32
    return %c0_i32, %c0_i32_0 : i32, i32
  }
  func.func @transform_3(%arg0: i32) -> (i32, i32) {
    %c0_i32 = arith.constant 0 : i32
    %c0_i32_0 = arith.constant 0 : i32
    %c0_i32_1 = arith.constant 0 : i32
    return %c0_i32, %c0_i32_0 : i32, i32
  }
  func.func @transform_4(%arg0: i32) -> (i32, i32) {
    %c0_i32 = arith.constant 0 : i32
    %c0_i32_0 = arith.constant 0 : i32
    %c0_i32_1 = arith.constant 0 : i32
    return %c0_i32, %c0_i32_0 : i32, i32
  }
  func.func @transform_5(%arg0: i32) -> (i32, i32) {
    %c0_i32 = arith.constant 0 : i32
    %c0_i32_0 = arith.constant 0 : i32
    return %arg0, %c0_i32 : i32, i32
  }
}

module attributes {stable_mosaic.version = 11 : i64} {
  func.func @_conv_sc_kernel(%arg0: i32, %arg1: memref<56x128xbf16, #tpu.memory_space<vmem>>, %arg2: memref<128x128xbf16, #tpu.memory_space<vmem>>, %arg3: memref<1x128xf32, #tpu.memory_space<vmem>>, %arg4: memref<1x128xf32, #tpu.memory_space<vmem>>, %arg5: memref<56x128xbf16, #tpu.memory_space<vmem>>, %arg6: memref<56x128xbf16, #tpu.memory_space<vmem>>) attributes {dimension_semantics = [#tpu.dimension_semantics<parallel>], iteration_bounds = array<i64: 2>, scalar_prefetch = 0 : i64, scratch_operands = 0 : i64, tpu.core_type = #tpu.core_type<tc>, window_params = [{transform_indices = @transform_0, window_bounds = array<i64: 56, 128>}, {pipeline_mode = #tpu.pipeline_mode<synchronous>, transform_indices = @transform_1, window_bounds = array<i64: 128, 128>}, {pipeline_mode = #tpu.pipeline_mode<synchronous>, transform_indices = @transform_2, window_bounds = array<i64: 1, 128>}, {pipeline_mode = #tpu.pipeline_mode<synchronous>, transform_indices = @transform_3, window_bounds = array<i64: 1, 128>}, {transform_indices = @transform_4, window_bounds = array<i64: 56, 128>}, {transform_indices = @transform_5, window_bounds = array<i64: 56, 128>}]} {
    %c0 = arith.constant 0 : index
    %c0_0 = arith.constant 0 : index
    %0 = vector.load %arg1[%c0, %c0_0] : memref<56x128xbf16, #tpu.memory_space<vmem>>, vector<56x128xbf16>
    %c0_1 = arith.constant 0 : index
    %c0_2 = arith.constant 0 : index
    %1 = vector.load %arg2[%c0_1, %c0_2] : memref<128x128xbf16, #tpu.memory_space<vmem>>, vector<128x128xbf16>
    %cst = arith.constant dense<0.000000e+00> : vector<56x128xf32>
    %2 = tpu.matmul %0, %1, %cst {dimension_numbers = #tpu.dot_dimension_numbers<[1], [0], [0], [1], [0, 0, 1, 1], [], []>} : vector<56x128xbf16>, vector<128x128xbf16>, vector<56x128xf32> -> vector<56x128xf32>
    %c0_3 = arith.constant 0 : index
    %c0_4 = arith.constant 0 : index
    %3 = vector.load %arg3[%c0_3, %c0_4] : memref<1x128xf32, #tpu.memory_space<vmem>>, vector<1x128xf32>
    %4 = vector.broadcast %3 : vector<1x128xf32> to vector<56x128xf32>
    %5 = arith.mulf %2, %4 : vector<56x128xf32>
    %c0_5 = arith.constant 0 : index
    %c0_6 = arith.constant 0 : index
    %6 = vector.load %arg4[%c0_5, %c0_6] : memref<1x128xf32, #tpu.memory_space<vmem>>, vector<1x128xf32>
    %7 = vector.broadcast %6 : vector<1x128xf32> to vector<56x128xf32>
    %8 = arith.addf %5, %7 : vector<56x128xf32>
    %c0_7 = arith.constant 0 : index
    %c0_8 = arith.constant 0 : index
    %9 = vector.load %arg5[%c0_7, %c0_8] : memref<56x128xbf16, #tpu.memory_space<vmem>>, vector<56x128xbf16>
    %10 = arith.extf %9 : vector<56x128xbf16> to vector<56x128xf32>
    %11 = arith.addf %8, %10 : vector<56x128xf32>
    %cst_9 = arith.constant 0.000000e+00 : f32
    %12 = vector.broadcast %cst_9 : f32 to vector<56x128xf32>
    %13 = arith.maximumf %11, %12 : vector<56x128xf32>
    %14 = arith.truncf %13 : vector<56x128xf32> to vector<56x128xbf16>
    %c0_10 = arith.constant 0 : index
    %c0_11 = arith.constant 0 : index
    %15 = vector.load %arg6[%c0_10, %c0_11] : memref<56x128xbf16, #tpu.memory_space<vmem>>, vector<56x128xbf16>
    tpu.vector_store %arg6[%c0_10, %c0_11], %14 {strides = array<i32>} : memref<56x128xbf16, #tpu.memory_space<vmem>>, vector<56x128xbf16>,
    return
  }
  func.func @transform_0(%arg0: i32) -> (i32, i32) {
    %c0_i32 = arith.constant 0 : i32
    %c0_i32_0 = arith.constant 0 : i32
    return %arg0, %c0_i32 : i32, i32
  }
  func.func @transform_1(%arg0: i32) -> (i32, i32) {
    %c0_i32 = arith.constant 0 : i32
    %c0_i32_0 = arith.constant 0 : i32
    %c0_i32_1 = arith.constant 0 : i32
    return %c0_i32, %c0_i32_0 : i32, i32
  }
  func.func @transform_2(%arg0: i32) -> (i32, i32) {
    %c0_i32 = arith.constant 0 : i32
    %c0_i32_0 = arith.constant 0 : i32
    %c0_i32_1 = arith.constant 0 : i32
    return %c0_i32, %c0_i32_0 : i32, i32
  }
  func.func @transform_3(%arg0: i32) -> (i32, i32) {
    %c0_i32 = arith.constant 0 : i32
    %c0_i32_0 = arith.constant 0 : i32
    %c0_i32_1 = arith.constant 0 : i32
    return %c0_i32, %c0_i32_0 : i32, i32
  }
  func.func @transform_4(%arg0: i32) -> (i32, i32) {
    %c0_i32 = arith.constant 0 : i32
    %c0_i32_0 = arith.constant 0 : i32
    return %arg0, %c0_i32 : i32, i32
  }
  func.func @transform_5(%arg0: i32) -> (i32, i32) {
    %c0_i32 = arith.constant 0 : i32
    %c0_i32_0 = arith.constant 0 : i32
    return %arg0, %c0_i32 : i32, i32
  }
}

module attributes {stable_mosaic.version = 11 : i64} {
  func.func @_conv_kernel(%arg0: i32, %arg1: memref<16x128xbf16, #tpu.memory_space<vmem>>, %arg2: memref<128x256xbf16, #tpu.memory_space<vmem>>, %arg3: memref<1x256xf32, #tpu.memory_space<vmem>>, %arg4: memref<1x256xf32, #tpu.memory_space<vmem>>, %arg5: memref<1x256xf32, #tpu.memory_space<vmem>>, %arg6: memref<16x256xbf16, #tpu.memory_space<vmem>>) attributes {dimension_semantics = [#tpu.dimension_semantics<parallel>], iteration_bounds = array<i64: 2>, scalar_prefetch = 0 : i64, scratch_operands = 0 : i64, tpu.core_type = #tpu.core_type<tc>, window_params = [{transform_indices = @transform_0, window_bounds = array<i64: 16, 128>}, {pipeline_mode = #tpu.pipeline_mode<synchronous>, transform_indices = @transform_1, window_bounds = array<i64: 128, 256>}, {pipeline_mode = #tpu.pipeline_mode<synchronous>, transform_indices = @transform_2, window_bounds = array<i64: 1, 256>}, {pipeline_mode = #tpu.pipeline_mode<synchronous>, transform_indices = @transform_3, window_bounds = array<i64: 1, 256>}, {pipeline_mode = #tpu.pipeline_mode<synchronous>, transform_indices = @transform_4, window_bounds = array<i64: 1, 256>}, {transform_indices = @transform_5, window_bounds = array<i64: 16, 256>}]} {
    %c0 = arith.constant 0 : index
    %c0_0 = arith.constant 0 : index
    %0 = vector.load %arg1[%c0, %c0_0] : memref<16x128xbf16, #tpu.memory_space<vmem>>, vector<16x128xbf16>
    %c0_1 = arith.constant 0 : index
    %c0_2 = arith.constant 0 : index
    %1 = vector.load %arg2[%c0_1, %c0_2] : memref<128x256xbf16, #tpu.memory_space<vmem>>, vector<128x256xbf16>
    %cst = arith.constant dense<0.000000e+00> : vector<16x256xf32>
    %2 = tpu.matmul %0, %1, %cst {dimension_numbers = #tpu.dot_dimension_numbers<[1], [0], [0], [1], [0, 0, 1, 1], [], []>} : vector<16x128xbf16>, vector<128x256xbf16>, vector<16x256xf32> -> vector<16x256xf32>
    %c0_3 = arith.constant 0 : index
    %c0_4 = arith.constant 0 : index
    %3 = vector.load %arg3[%c0_3, %c0_4] : memref<1x256xf32, #tpu.memory_space<vmem>>, vector<1x256xf32>
    %4 = vector.broadcast %3 : vector<1x256xf32> to vector<16x256xf32>
    %5 = arith.mulf %2, %4 : vector<16x256xf32>
    %c0_5 = arith.constant 0 : index
    %c0_6 = arith.constant 0 : index
    %6 = vector.load %arg4[%c0_5, %c0_6] : memref<1x256xf32, #tpu.memory_space<vmem>>, vector<1x256xf32>
    %7 = vector.broadcast %6 : vector<1x256xf32> to vector<16x256xf32>
    %8 = arith.addf %5, %7 : vector<16x256xf32>
    %c0_7 = arith.constant 0 : index
    %c0_8 = arith.constant 0 : index
    %9 = vector.load %arg5[%c0_7, %c0_8] : memref<1x256xf32, #tpu.memory_space<vmem>>, vector<1x256xf32>
    %10 = vector.broadcast %9 : vector<1x256xf32> to vector<16x256xf32>
    %11 = arith.maximumf %8, %10 : vector<16x256xf32>
    %12 = arith.truncf %11 : vector<16x256xf32> to vector<16x256xbf16>
    %c0_9 = arith.constant 0 : index
    %c0_10 = arith.constant 0 : index
    %13 = vector.load %arg6[%c0_9, %c0_10] : memref<16x256xbf16, #tpu.memory_space<vmem>>, vector<16x256xbf16>
    tpu.vector_store %arg6[%c0_9, %c0_10], %12 {strides = array<i32>} : memref<16x256xbf16, #tpu.memory_space<vmem>>, vector<16x256xbf16>,
    return
  }
  func.func @transform_0(%arg0: i32) -> (i32, i32) {
    %c0_i32 = arith.constant 0 : i32
    %c0_i32_0 = arith.constant 0 : i32
    return %arg0, %c0_i32 : i32, i32
  }
  func.func @transform_1(%arg0: i32) -> (i32, i32) {
    %c0_i32 = arith.constant 0 : i32
    %c0_i32_0 = arith.constant 0 : i32
    %c0_i32_1 = arith.constant 0 : i32
    return %c0_i32, %c0_i32_0 : i32, i32
  }
  func.func @transform_2(%arg0: i32) -> (i32, i32) {
    %c0_i32 = arith.constant 0 : i32
    %c0_i32_0 = arith.constant 0 : i32
    %c0_i32_1 = arith.constant 0 : i32
    return %c0_i32, %c0_i32_0 : i32, i32
  }
  func.func @transform_3(%arg0: i32) -> (i32, i32) {
    %c0_i32 = arith.constant 0 : i32
    %c0_i32_0 = arith.constant 0 : i32
    %c0_i32_1 = arith.constant 0 : i32
    return %c0_i32, %c0_i32_0 : i32, i32
  }
  func.func @transform_4(%arg0: i32) -> (i32, i32) {
    %c0_i32 = arith.constant 0 : i32
    %c0_i32_0 = arith.constant 0 : i32
    %c0_i32_1 = arith.constant 0 : i32
    return %c0_i32, %c0_i32_0 : i32, i32
  }
  func.func @transform_5(%arg0: i32) -> (i32, i32) {
    %c0_i32 = arith.constant 0 : i32
    %c0_i32_0 = arith.constant 0 : i32
    return %arg0, %c0_i32 : i32, i32
  }
}

module attributes {stable_mosaic.version = 11 : i64} {
  func.func @_conv_sc_kernel(%arg0: i32, %arg1: memref<16x256xbf16, #tpu.memory_space<vmem>>, %arg2: memref<256x128xbf16, #tpu.memory_space<vmem>>, %arg3: memref<1x128xf32, #tpu.memory_space<vmem>>, %arg4: memref<1x128xf32, #tpu.memory_space<vmem>>, %arg5: memref<16x128xbf16, #tpu.memory_space<vmem>>, %arg6: memref<16x128xbf16, #tpu.memory_space<vmem>>) attributes {dimension_semantics = [#tpu.dimension_semantics<parallel>], iteration_bounds = array<i64: 2>, scalar_prefetch = 0 : i64, scratch_operands = 0 : i64, tpu.core_type = #tpu.core_type<tc>, window_params = [{transform_indices = @transform_0, window_bounds = array<i64: 16, 256>}, {pipeline_mode = #tpu.pipeline_mode<synchronous>, transform_indices = @transform_1, window_bounds = array<i64: 256, 128>}, {pipeline_mode = #tpu.pipeline_mode<synchronous>, transform_indices = @transform_2, window_bounds = array<i64: 1, 128>}, {pipeline_mode = #tpu.pipeline_mode<synchronous>, transform_indices = @transform_3, window_bounds = array<i64: 1, 128>}, {transform_indices = @transform_4, window_bounds = array<i64: 16, 128>}, {transform_indices = @transform_5, window_bounds = array<i64: 16, 128>}]} {
    %c0 = arith.constant 0 : index
    %c0_0 = arith.constant 0 : index
    %0 = vector.load %arg1[%c0, %c0_0] : memref<16x256xbf16, #tpu.memory_space<vmem>>, vector<16x256xbf16>
    %c0_1 = arith.constant 0 : index
    %c0_2 = arith.constant 0 : index
    %1 = vector.load %arg2[%c0_1, %c0_2] : memref<256x128xbf16, #tpu.memory_space<vmem>>, vector<256x128xbf16>
    %cst = arith.constant dense<0.000000e+00> : vector<16x128xf32>
    %2 = tpu.matmul %0, %1, %cst {dimension_numbers = #tpu.dot_dimension_numbers<[1], [0], [0], [1], [0, 0, 1, 1], [], []>} : vector<16x256xbf16>, vector<256x128xbf16>, vector<16x128xf32> -> vector<16x128xf32>
    %c0_3 = arith.constant 0 : index
    %c0_4 = arith.constant 0 : index
    %3 = vector.load %arg3[%c0_3, %c0_4] : memref<1x128xf32, #tpu.memory_space<vmem>>, vector<1x128xf32>
    %4 = vector.broadcast %3 : vector<1x128xf32> to vector<16x128xf32>
    %5 = arith.mulf %2, %4 : vector<16x128xf32>
    %c0_5 = arith.constant 0 : index
    %c0_6 = arith.constant 0 : index
    %6 = vector.load %arg4[%c0_5, %c0_6] : memref<1x128xf32, #tpu.memory_space<vmem>>, vector<1x128xf32>
    %7 = vector.broadcast %6 : vector<1x128xf32> to vector<16x128xf32>
    %8 = arith.addf %5, %7 : vector<16x128xf32>
    %c0_7 = arith.constant 0 : index
    %c0_8 = arith.constant 0 : index
    %9 = vector.load %arg5[%c0_7, %c0_8] : memref<16x128xbf16, #tpu.memory_space<vmem>>, vector<16x128xbf16>
    %10 = arith.extf %9 : vector<16x128xbf16> to vector<16x128xf32>
    %11 = arith.addf %8, %10 : vector<16x128xf32>
    %cst_9 = arith.constant 0.000000e+00 : f32
    %12 = vector.broadcast %cst_9 : f32 to vector<16x128xf32>
    %13 = arith.maximumf %11, %12 : vector<16x128xf32>
    %14 = arith.truncf %13 : vector<16x128xf32> to vector<16x128xbf16>
    %c0_10 = arith.constant 0 : index
    %c0_11 = arith.constant 0 : index
    %15 = vector.load %arg6[%c0_10, %c0_11] : memref<16x128xbf16, #tpu.memory_space<vmem>>, vector<16x128xbf16>
    tpu.vector_store %arg6[%c0_10, %c0_11], %14 {strides = array<i32>} : memref<16x128xbf16, #tpu.memory_space<vmem>>, vector<16x128xbf16>,
    return
  }
  func.func @transform_0(%arg0: i32) -> (i32, i32) {
    %c0_i32 = arith.constant 0 : i32
    %c0_i32_0 = arith.constant 0 : i32
    return %arg0, %c0_i32 : i32, i32
  }
  func.func @transform_1(%arg0: i32) -> (i32, i32) {
    %c0_i32 = arith.constant 0 : i32
    %c0_i32_0 = arith.constant 0 : i32
    %c0_i32_1 = arith.constant 0 : i32
    return %c0_i32, %c0_i32_0 : i32, i32
  }
  func.func @transform_2(%arg0: i32) -> (i32, i32) {
    %c0_i32 = arith.constant 0 : i32
    %c0_i32_0 = arith.constant 0 : i32
    %c0_i32_1 = arith.constant 0 : i32
    return %c0_i32, %c0_i32_0 : i32, i32
  }
  func.func @transform_3(%arg0: i32) -> (i32, i32) {
    %c0_i32 = arith.constant 0 : i32
    %c0_i32_0 = arith.constant 0 : i32
    %c0_i32_1 = arith.constant 0 : i32
    return %c0_i32, %c0_i32_0 : i32, i32
  }
  func.func @transform_4(%arg0: i32) -> (i32, i32) {
    %c0_i32 = arith.constant 0 : i32
    %c0_i32_0 = arith.constant 0 : i32
    return %arg0, %c0_i32 : i32, i32
  }
  func.func @transform_5(%arg0: i32) -> (i32, i32) {
    %c0_i32 = arith.constant 0 : i32
    %c0_i32_0 = arith.constant 0 : i32
    return %arg0, %c0_i32 : i32, i32
  }
}

module attributes {stable_mosaic.version = 11 : i64} {
  func.func @_conv_kernel(%arg0: i32, %arg1: memref<16x256xbf16, #tpu.memory_space<vmem>>, %arg2: memref<256x128xbf16, #tpu.memory_space<vmem>>, %arg3: memref<1x128xf32, #tpu.memory_space<vmem>>, %arg4: memref<1x128xf32, #tpu.memory_space<vmem>>, %arg5: memref<1x128xf32, #tpu.memory_space<vmem>>, %arg6: memref<16x128xbf16, #tpu.memory_space<vmem>>) attributes {dimension_semantics = [#tpu.dimension_semantics<parallel>], iteration_bounds = array<i64: 2>, scalar_prefetch = 0 : i64, scratch_operands = 0 : i64, tpu.core_type = #tpu.core_type<tc>, window_params = [{transform_indices = @transform_0, window_bounds = array<i64: 16, 256>}, {pipeline_mode = #tpu.pipeline_mode<synchronous>, transform_indices = @transform_1, window_bounds = array<i64: 256, 128>}, {pipeline_mode = #tpu.pipeline_mode<synchronous>, transform_indices = @transform_2, window_bounds = array<i64: 1, 128>}, {pipeline_mode = #tpu.pipeline_mode<synchronous>, transform_indices = @transform_3, window_bounds = array<i64: 1, 128>}, {pipeline_mode = #tpu.pipeline_mode<synchronous>, transform_indices = @transform_4, window_bounds = array<i64: 1, 128>}, {transform_indices = @transform_5, window_bounds = array<i64: 16, 128>}]} {
    %c0 = arith.constant 0 : index
    %c0_0 = arith.constant 0 : index
    %0 = vector.load %arg1[%c0, %c0_0] : memref<16x256xbf16, #tpu.memory_space<vmem>>, vector<16x256xbf16>
    %c0_1 = arith.constant 0 : index
    %c0_2 = arith.constant 0 : index
    %1 = vector.load %arg2[%c0_1, %c0_2] : memref<256x128xbf16, #tpu.memory_space<vmem>>, vector<256x128xbf16>
    %cst = arith.constant dense<0.000000e+00> : vector<16x128xf32>
    %2 = tpu.matmul %0, %1, %cst {dimension_numbers = #tpu.dot_dimension_numbers<[1], [0], [0], [1], [0, 0, 1, 1], [], []>} : vector<16x256xbf16>, vector<256x128xbf16>, vector<16x128xf32> -> vector<16x128xf32>
    %c0_3 = arith.constant 0 : index
    %c0_4 = arith.constant 0 : index
    %3 = vector.load %arg3[%c0_3, %c0_4] : memref<1x128xf32, #tpu.memory_space<vmem>>, vector<1x128xf32>
    %4 = vector.broadcast %3 : vector<1x128xf32> to vector<16x128xf32>
    %5 = arith.mulf %2, %4 : vector<16x128xf32>
    %c0_5 = arith.constant 0 : index
    %c0_6 = arith.constant 0 : index
    %6 = vector.load %arg4[%c0_5, %c0_6] : memref<1x128xf32, #tpu.memory_space<vmem>>, vector<1x128xf32>
    %7 = vector.broadcast %6 : vector<1x128xf32> to vector<16x128xf32>
    %8 = arith.addf %5, %7 : vector<16x128xf32>
    %c0_7 = arith.constant 0 : index
    %c0_8 = arith.constant 0 : index
    %9 = vector.load %arg5[%c0_7, %c0_8] : memref<1x128xf32, #tpu.memory_space<vmem>>, vector<1x128xf32>
    %10 = vector.broadcast %9 : vector<1x128xf32> to vector<16x128xf32>
    %11 = arith.maximumf %8, %10 : vector<16x128xf32>
    %12 = arith.truncf %11 : vector<16x128xf32> to vector<16x128xbf16>
    %c0_9 = arith.constant 0 : index
    %c0_10 = arith.constant 0 : index
    %13 = vector.load %arg6[%c0_9, %c0_10] : memref<16x128xbf16, #tpu.memory_space<vmem>>, vector<16x128xbf16>
    tpu.vector_store %arg6[%c0_9, %c0_10], %12 {strides = array<i32>} : memref<16x128xbf16, #tpu.memory_space<vmem>>, vector<16x128xbf16>,
    return
  }
  func.func @transform_0(%arg0: i32) -> (i32, i32) {
    %c0_i32 = arith.constant 0 : i32
    %c0_i32_0 = arith.constant 0 : i32
    return %arg0, %c0_i32 : i32, i32
  }
  func.func @transform_1(%arg0: i32) -> (i32, i32) {
    %c0_i32 = arith.constant 0 : i32
    %c0_i32_0 = arith.constant 0 : i32
    %c0_i32_1 = arith.constant 0 : i32
    return %c0_i32, %c0_i32_0 : i32, i32
  }
  func.func @transform_2(%arg0: i32) -> (i32, i32) {
    %c0_i32 = arith.constant 0 : i32
    %c0_i32_0 = arith.constant 0 : i32
    %c0_i32_1 = arith.constant 0 : i32
    return %c0_i32, %c0_i32_0 : i32, i32
  }
  func.func @transform_3(%arg0: i32) -> (i32, i32) {
    %c0_i32 = arith.constant 0 : i32
    %c0_i32_0 = arith.constant 0 : i32
    %c0_i32_1 = arith.constant 0 : i32
    return %c0_i32, %c0_i32_0 : i32, i32
  }
  func.func @transform_4(%arg0: i32) -> (i32, i32) {
    %c0_i32 = arith.constant 0 : i32
    %c0_i32_0 = arith.constant 0 : i32
    %c0_i32_1 = arith.constant 0 : i32
    return %c0_i32, %c0_i32_0 : i32, i32
  }
  func.func @transform_5(%arg0: i32) -> (i32, i32) {
    %c0_i32 = arith.constant 0 : i32
    %c0_i32_0 = arith.constant 0 : i32
    return %arg0, %c0_i32 : i32, i32
  }
}

module attributes {stable_mosaic.version = 11 : i64} {
  func.func @_conv_kernel(%arg0: i32, %arg1: memref<8x256xbf16, #tpu.memory_space<vmem>>, %arg2: memref<256x256xbf16, #tpu.memory_space<vmem>>, %arg3: memref<1x256xf32, #tpu.memory_space<vmem>>, %arg4: memref<1x256xf32, #tpu.memory_space<vmem>>, %arg5: memref<1x256xf32, #tpu.memory_space<vmem>>, %arg6: memref<8x256xbf16, #tpu.memory_space<vmem>>) attributes {dimension_semantics = [#tpu.dimension_semantics<parallel>], iteration_bounds = array<i64: 2>, scalar_prefetch = 0 : i64, scratch_operands = 0 : i64, tpu.core_type = #tpu.core_type<tc>, window_params = [{transform_indices = @transform_0, window_bounds = array<i64: 8, 256>}, {pipeline_mode = #tpu.pipeline_mode<synchronous>, transform_indices = @transform_1, window_bounds = array<i64: 256, 256>}, {pipeline_mode = #tpu.pipeline_mode<synchronous>, transform_indices = @transform_2, window_bounds = array<i64: 1, 256>}, {pipeline_mode = #tpu.pipeline_mode<synchronous>, transform_indices = @transform_3, window_bounds = array<i64: 1, 256>}, {pipeline_mode = #tpu.pipeline_mode<synchronous>, transform_indices = @transform_4, window_bounds = array<i64: 1, 256>}, {transform_indices = @transform_5, window_bounds = array<i64: 8, 256>}]} {
    %c0 = arith.constant 0 : index
    %c0_0 = arith.constant 0 : index
    %0 = vector.load %arg1[%c0, %c0_0] : memref<8x256xbf16, #tpu.memory_space<vmem>>, vector<8x256xbf16>
    %c0_1 = arith.constant 0 : index
    %c0_2 = arith.constant 0 : index
    %1 = vector.load %arg2[%c0_1, %c0_2] : memref<256x256xbf16, #tpu.memory_space<vmem>>, vector<256x256xbf16>
    %cst = arith.constant dense<0.000000e+00> : vector<8x256xf32>
    %2 = tpu.matmul %0, %1, %cst {dimension_numbers = #tpu.dot_dimension_numbers<[1], [0], [0], [1], [0, 0, 1, 1], [], []>} : vector<8x256xbf16>, vector<256x256xbf16>, vector<8x256xf32> -> vector<8x256xf32>
    %c0_3 = arith.constant 0 : index
    %c0_4 = arith.constant 0 : index
    %3 = vector.load %arg3[%c0_3, %c0_4] : memref<1x256xf32, #tpu.memory_space<vmem>>, vector<1x256xf32>
    %4 = vector.broadcast %3 : vector<1x256xf32> to vector<8x256xf32>
    %5 = arith.mulf %2, %4 : vector<8x256xf32>
    %c0_5 = arith.constant 0 : index
    %c0_6 = arith.constant 0 : index
    %6 = vector.load %arg4[%c0_5, %c0_6] : memref<1x256xf32, #tpu.memory_space<vmem>>, vector<1x256xf32>
    %7 = vector.broadcast %6 : vector<1x256xf32> to vector<8x256xf32>
    %8 = arith.addf %5, %7 : vector<8x256xf32>
    %c0_7 = arith.constant 0 : index
    %c0_8 = arith.constant 0 : index
    %9 = vector.load %arg5[%c0_7, %c0_8] : memref<1x256xf32, #tpu.memory_space<vmem>>, vector<1x256xf32>
    %10 = vector.broadcast %9 : vector<1x256xf32> to vector<8x256xf32>
    %11 = arith.maximumf %8, %10 : vector<8x256xf32>
    %12 = arith.truncf %11 : vector<8x256xf32> to vector<8x256xbf16>
    %c0_9 = arith.constant 0 : index
    %c0_10 = arith.constant 0 : index
    %13 = vector.load %arg6[%c0_9, %c0_10] : memref<8x256xbf16, #tpu.memory_space<vmem>>, vector<8x256xbf16>
    tpu.vector_store %arg6[%c0_9, %c0_10], %12 {strides = array<i32>} : memref<8x256xbf16, #tpu.memory_space<vmem>>, vector<8x256xbf16>,
    return
  }
  func.func @transform_0(%arg0: i32) -> (i32, i32) {
    %c0_i32 = arith.constant 0 : i32
    %c0_i32_0 = arith.constant 0 : i32
    return %arg0, %c0_i32 : i32, i32
  }
  func.func @transform_1(%arg0: i32) -> (i32, i32) {
    %c0_i32 = arith.constant 0 : i32
    %c0_i32_0 = arith.constant 0 : i32
    %c0_i32_1 = arith.constant 0 : i32
    return %c0_i32, %c0_i32_0 : i32, i32
  }
  func.func @transform_2(%arg0: i32) -> (i32, i32) {
    %c0_i32 = arith.constant 0 : i32
    %c0_i32_0 = arith.constant 0 : i32
    %c0_i32_1 = arith.constant 0 : i32
    return %c0_i32, %c0_i32_0 : i32, i32
  }
  func.func @transform_3(%arg0: i32) -> (i32, i32) {
    %c0_i32 = arith.constant 0 : i32
    %c0_i32_0 = arith.constant 0 : i32
    %c0_i32_1 = arith.constant 0 : i32
    return %c0_i32, %c0_i32_0 : i32, i32
  }
  func.func @transform_4(%arg0: i32) -> (i32, i32) {
    %c0_i32 = arith.constant 0 : i32
    %c0_i32_0 = arith.constant 0 : i32
    %c0_i32_1 = arith.constant 0 : i32
    return %c0_i32, %c0_i32_0 : i32, i32
  }
  func.func @transform_5(%arg0: i32) -> (i32, i32) {
    %c0_i32 = arith.constant 0 : i32
    %c0_i32_0 = arith.constant 0 : i32
    return %arg0, %c0_i32 : i32, i32
  }
}

module attributes {stable_mosaic.version = 11 : i64} {
  func.func @_conv_sc_kernel(%arg0: i32, %arg1: memref<8x384xbf16, #tpu.memory_space<vmem>>, %arg2: memref<384x128xbf16, #tpu.memory_space<vmem>>, %arg3: memref<1x128xf32, #tpu.memory_space<vmem>>, %arg4: memref<1x128xf32, #tpu.memory_space<vmem>>, %arg5: memref<8x128xbf16, #tpu.memory_space<vmem>>, %arg6: memref<8x128xbf16, #tpu.memory_space<vmem>>) attributes {dimension_semantics = [#tpu.dimension_semantics<parallel>], iteration_bounds = array<i64: 2>, scalar_prefetch = 0 : i64, scratch_operands = 0 : i64, tpu.core_type = #tpu.core_type<tc>, window_params = [{transform_indices = @transform_0, window_bounds = array<i64: 8, 384>}, {pipeline_mode = #tpu.pipeline_mode<synchronous>, transform_indices = @transform_1, window_bounds = array<i64: 384, 128>}, {pipeline_mode = #tpu.pipeline_mode<synchronous>, transform_indices = @transform_2, window_bounds = array<i64: 1, 128>}, {pipeline_mode = #tpu.pipeline_mode<synchronous>, transform_indices = @transform_3, window_bounds = array<i64: 1, 128>}, {transform_indices = @transform_4, window_bounds = array<i64: 8, 128>}, {transform_indices = @transform_5, window_bounds = array<i64: 8, 128>}]} {
    %c0 = arith.constant 0 : index
    %c0_0 = arith.constant 0 : index
    %0 = vector.load %arg1[%c0, %c0_0] : memref<8x384xbf16, #tpu.memory_space<vmem>>, vector<8x384xbf16>
    %c0_1 = arith.constant 0 : index
    %c0_2 = arith.constant 0 : index
    %1 = vector.load %arg2[%c0_1, %c0_2] : memref<384x128xbf16, #tpu.memory_space<vmem>>, vector<384x128xbf16>
    %cst = arith.constant dense<0.000000e+00> : vector<8x128xf32>
    %2 = tpu.matmul %0, %1, %cst {dimension_numbers = #tpu.dot_dimension_numbers<[1], [0], [0], [1], [0, 0, 1, 1], [], []>} : vector<8x384xbf16>, vector<384x128xbf16>, vector<8x128xf32> -> vector<8x128xf32>
    %c0_3 = arith.constant 0 : index
    %c0_4 = arith.constant 0 : index
    %3 = vector.load %arg3[%c0_3, %c0_4] : memref<1x128xf32, #tpu.memory_space<vmem>>, vector<1x128xf32>
    %4 = vector.broadcast %3 : vector<1x128xf32> to vector<8x128xf32>
    %5 = arith.mulf %2, %4 : vector<8x128xf32>
    %c0_5 = arith.constant 0 : index
    %c0_6 = arith.constant 0 : index
    %6 = vector.load %arg4[%c0_5, %c0_6] : memref<1x128xf32, #tpu.memory_space<vmem>>, vector<1x128xf32>
    %7 = vector.broadcast %6 : vector<1x128xf32> to vector<8x128xf32>
    %8 = arith.addf %5, %7 : vector<8x128xf32>
    %c0_7 = arith.constant 0 : index
    %c0_8 = arith.constant 0 : index
    %9 = vector.load %arg5[%c0_7, %c0_8] : memref<8x128xbf16, #tpu.memory_space<vmem>>, vector<8x128xbf16>
    %10 = arith.extf %9 : vector<8x128xbf16> to vector<8x128xf32>
    %11 = arith.addf %8, %10 : vector<8x128xf32>
    %cst_9 = arith.constant 0.000000e+00 : f32
    %12 = vector.broadcast %cst_9 : f32 to vector<8x128xf32>
    %13 = arith.maximumf %11, %12 : vector<8x128xf32>
    %14 = arith.truncf %13 : vector<8x128xf32> to vector<8x128xbf16>
    %c0_10 = arith.constant 0 : index
    %c0_11 = arith.constant 0 : index
    %15 = vector.load %arg6[%c0_10, %c0_11] : memref<8x128xbf16, #tpu.memory_space<vmem>>, vector<8x128xbf16>
    tpu.vector_store %arg6[%c0_10, %c0_11], %14 {strides = array<i32>} : memref<8x128xbf16, #tpu.memory_space<vmem>>, vector<8x128xbf16>,
    return
  }
  func.func @transform_0(%arg0: i32) -> (i32, i32) {
    %c0_i32 = arith.constant 0 : i32
    %c0_i32_0 = arith.constant 0 : i32
    return %arg0, %c0_i32 : i32, i32
  }
  func.func @transform_1(%arg0: i32) -> (i32, i32) {
    %c0_i32 = arith.constant 0 : i32
    %c0_i32_0 = arith.constant 0 : i32
    %c0_i32_1 = arith.constant 0 : i32
    return %c0_i32, %c0_i32_0 : i32, i32
  }
  func.func @transform_2(%arg0: i32) -> (i32, i32) {
    %c0_i32 = arith.constant 0 : i32
    %c0_i32_0 = arith.constant 0 : i32
    %c0_i32_1 = arith.constant 0 : i32
    return %c0_i32, %c0_i32_0 : i32, i32
  }
  func.func @transform_3(%arg0: i32) -> (i32, i32) {
    %c0_i32 = arith.constant 0 : i32
    %c0_i32_0 = arith.constant 0 : i32
    %c0_i32_1 = arith.constant 0 : i32
    return %c0_i32, %c0_i32_0 : i32, i32
  }
  func.func @transform_4(%arg0: i32) -> (i32, i32) {
    %c0_i32 = arith.constant 0 : i32
    %c0_i32_0 = arith.constant 0 : i32
    return %arg0, %c0_i32 : i32, i32
  }
  func.func @transform_5(%arg0: i32) -> (i32, i32) {
    %c0_i32 = arith.constant 0 : i32
    %c0_i32_0 = arith.constant 0 : i32
    return %arg0, %c0_i32 : i32, i32
  }
}

module attributes {stable_mosaic.version = 11 : i64} {
  func.func @_conv_kernel(%arg0: i32, %arg1: memref<8x384xbf16, #tpu.memory_space<vmem>>, %arg2: memref<384x128xbf16, #tpu.memory_space<vmem>>, %arg3: memref<1x128xf32, #tpu.memory_space<vmem>>, %arg4: memref<1x128xf32, #tpu.memory_space<vmem>>, %arg5: memref<1x128xf32, #tpu.memory_space<vmem>>, %arg6: memref<8x128xbf16, #tpu.memory_space<vmem>>) attributes {dimension_semantics = [#tpu.dimension_semantics<parallel>], iteration_bounds = array<i64: 2>, scalar_prefetch = 0 : i64, scratch_operands = 0 : i64, tpu.core_type = #tpu.core_type<tc>, window_params = [{transform_indices = @transform_0, window_bounds = array<i64: 8, 384>}, {pipeline_mode = #tpu.pipeline_mode<synchronous>, transform_indices = @transform_1, window_bounds = array<i64: 384, 128>}, {pipeline_mode = #tpu.pipeline_mode<synchronous>, transform_indices = @transform_2, window_bounds = array<i64: 1, 128>}, {pipeline_mode = #tpu.pipeline_mode<synchronous>, transform_indices = @transform_3, window_bounds = array<i64: 1, 128>}, {pipeline_mode = #tpu.pipeline_mode<synchronous>, transform_indices = @transform_4, window_bounds = array<i64: 1, 128>}, {transform_indices = @transform_5, window_bounds = array<i64: 8, 128>}]} {
    %c0 = arith.constant 0 : index
    %c0_0 = arith.constant 0 : index
    %0 = vector.load %arg1[%c0, %c0_0] : memref<8x384xbf16, #tpu.memory_space<vmem>>, vector<8x384xbf16>
    %c0_1 = arith.constant 0 : index
    %c0_2 = arith.constant 0 : index
    %1 = vector.load %arg2[%c0_1, %c0_2] : memref<384x128xbf16, #tpu.memory_space<vmem>>, vector<384x128xbf16>
    %cst = arith.constant dense<0.000000e+00> : vector<8x128xf32>
    %2 = tpu.matmul %0, %1, %cst {dimension_numbers = #tpu.dot_dimension_numbers<[1], [0], [0], [1], [0, 0, 1, 1], [], []>} : vector<8x384xbf16>, vector<384x128xbf16>, vector<8x128xf32> -> vector<8x128xf32>
    %c0_3 = arith.constant 0 : index
    %c0_4 = arith.constant 0 : index
    %3 = vector.load %arg3[%c0_3, %c0_4] : memref<1x128xf32, #tpu.memory_space<vmem>>, vector<1x128xf32>
    %4 = vector.broadcast %3 : vector<1x128xf32> to vector<8x128xf32>
    %5 = arith.mulf %2, %4 : vector<8x128xf32>
    %c0_5 = arith.constant 0 : index
    %c0_6 = arith.constant 0 : index
    %6 = vector.load %arg4[%c0_5, %c0_6] : memref<1x128xf32, #tpu.memory_space<vmem>>, vector<1x128xf32>
    %7 = vector.broadcast %6 : vector<1x128xf32> to vector<8x128xf32>
    %8 = arith.addf %5, %7 : vector<8x128xf32>
    %c0_7 = arith.constant 0 : index
    %c0_8 = arith.constant 0 : index
    %9 = vector.load %arg5[%c0_7, %c0_8] : memref<1x128xf32, #tpu.memory_space<vmem>>, vector<1x128xf32>
    %10 = vector.broadcast %9 : vector<1x128xf32> to vector<8x128xf32>
    %11 = arith.maximumf %8, %10 : vector<8x128xf32>
    %12 = arith.truncf %11 : vector<8x128xf32> to vector<8x128xbf16>
    %c0_9 = arith.constant 0 : index
    %c0_10 = arith.constant 0 : index
    %13 = vector.load %arg6[%c0_9, %c0_10] : memref<8x128xbf16, #tpu.memory_space<vmem>>, vector<8x128xbf16>
    tpu.vector_store %arg6[%c0_9, %c0_10], %12 {strides = array<i32>} : memref<8x128xbf16, #tpu.memory_space<vmem>>, vector<8x128xbf16>,
    return
  }
  func.func @transform_0(%arg0: i32) -> (i32, i32) {
    %c0_i32 = arith.constant 0 : i32
    %c0_i32_0 = arith.constant 0 : i32
    return %arg0, %c0_i32 : i32, i32
  }
  func.func @transform_1(%arg0: i32) -> (i32, i32) {
    %c0_i32 = arith.constant 0 : i32
    %c0_i32_0 = arith.constant 0 : i32
    %c0_i32_1 = arith.constant 0 : i32
    return %c0_i32, %c0_i32_0 : i32, i32
  }
  func.func @transform_2(%arg0: i32) -> (i32, i32) {
    %c0_i32 = arith.constant 0 : i32
    %c0_i32_0 = arith.constant 0 : i32
    %c0_i32_1 = arith.constant 0 : i32
    return %c0_i32, %c0_i32_0 : i32, i32
  }
  func.func @transform_3(%arg0: i32) -> (i32, i32) {
    %c0_i32 = arith.constant 0 : i32
    %c0_i32_0 = arith.constant 0 : i32
    %c0_i32_1 = arith.constant 0 : i32
    return %c0_i32, %c0_i32_0 : i32, i32
  }
  func.func @transform_4(%arg0: i32) -> (i32, i32) {
    %c0_i32 = arith.constant 0 : i32
    %c0_i32_0 = arith.constant 0 : i32
    %c0_i32_1 = arith.constant 0 : i32
    return %c0_i32, %c0_i32_0 : i32, i32
  }
  func.func @transform_5(%arg0: i32) -> (i32, i32) {
    %c0_i32 = arith.constant 0 : i32
    %c0_i32_0 = arith.constant 0 : i32
    return %arg0, %c0_i32 : i32, i32
  }
}

module attributes {stable_mosaic.version = 11 : i64} {
  func.func @_conv_kernel(%arg0: i32, %arg1: memref<8x384xbf16, #tpu.memory_space<vmem>>, %arg2: memref<384x256xbf16, #tpu.memory_space<vmem>>, %arg3: memref<1x256xf32, #tpu.memory_space<vmem>>, %arg4: memref<1x256xf32, #tpu.memory_space<vmem>>, %arg5: memref<1x256xf32, #tpu.memory_space<vmem>>, %arg6: memref<8x256xbf16, #tpu.memory_space<vmem>>) attributes {dimension_semantics = [#tpu.dimension_semantics<parallel>], iteration_bounds = array<i64: 2>, scalar_prefetch = 0 : i64, scratch_operands = 0 : i64, tpu.core_type = #tpu.core_type<tc>, window_params = [{transform_indices = @transform_0, window_bounds = array<i64: 8, 384>}, {pipeline_mode = #tpu.pipeline_mode<synchronous>, transform_indices = @transform_1, window_bounds = array<i64: 384, 256>}, {pipeline_mode = #tpu.pipeline_mode<synchronous>, transform_indices = @transform_2, window_bounds = array<i64: 1, 256>}, {pipeline_mode = #tpu.pipeline_mode<synchronous>, transform_indices = @transform_3, window_bounds = array<i64: 1, 256>}, {pipeline_mode = #tpu.pipeline_mode<synchronous>, transform_indices = @transform_4, window_bounds = array<i64: 1, 256>}, {transform_indices = @transform_5, window_bounds = array<i64: 8, 256>}]} {
    %c0 = arith.constant 0 : index
    %c0_0 = arith.constant 0 : index
    %0 = vector.load %arg1[%c0, %c0_0] : memref<8x384xbf16, #tpu.memory_space<vmem>>, vector<8x384xbf16>
    %c0_1 = arith.constant 0 : index
    %c0_2 = arith.constant 0 : index
    %1 = vector.load %arg2[%c0_1, %c0_2] : memref<384x256xbf16, #tpu.memory_space<vmem>>, vector<384x256xbf16>
    %cst = arith.constant dense<0.000000e+00> : vector<8x256xf32>
    %2 = tpu.matmul %0, %1, %cst {dimension_numbers = #tpu.dot_dimension_numbers<[1], [0], [0], [1], [0, 0, 1, 1], [], []>} : vector<8x384xbf16>, vector<384x256xbf16>, vector<8x256xf32> -> vector<8x256xf32>
    %c0_3 = arith.constant 0 : index
    %c0_4 = arith.constant 0 : index
    %3 = vector.load %arg3[%c0_3, %c0_4] : memref<1x256xf32, #tpu.memory_space<vmem>>, vector<1x256xf32>
    %4 = vector.broadcast %3 : vector<1x256xf32> to vector<8x256xf32>
    %5 = arith.mulf %2, %4 : vector<8x256xf32>
    %c0_5 = arith.constant 0 : index
    %c0_6 = arith.constant 0 : index
    %6 = vector.load %arg4[%c0_5, %c0_6] : memref<1x256xf32, #tpu.memory_space<vmem>>, vector<1x256xf32>
    %7 = vector.broadcast %6 : vector<1x256xf32> to vector<8x256xf32>
    %8 = arith.addf %5, %7 : vector<8x256xf32>
    %c0_7 = arith.constant 0 : index
    %c0_8 = arith.constant 0 : index
    %9 = vector.load %arg5[%c0_7, %c0_8] : memref<1x256xf32, #tpu.memory_space<vmem>>, vector<1x256xf32>
    %10 = vector.broadcast %9 : vector<1x256xf32> to vector<8x256xf32>
    %11 = arith.maximumf %8, %10 : vector<8x256xf32>
    %12 = arith.truncf %11 : vector<8x256xf32> to vector<8x256xbf16>
    %c0_9 = arith.constant 0 : index
    %c0_10 = arith.constant 0 : index
    %13 = vector.load %arg6[%c0_9, %c0_10] : memref<8x256xbf16, #tpu.memory_space<vmem>>, vector<8x256xbf16>
    tpu.vector_store %arg6[%c0_9, %c0_10], %12 {strides = array<i32>} : memref<8x256xbf16, #tpu.memory_space<vmem>>, vector<8x256xbf16>,
    return
  }
  func.func @transform_0(%arg0: i32) -> (i32, i32) {
    %c0_i32 = arith.constant 0 : i32
    %c0_i32_0 = arith.constant 0 : i32
    return %arg0, %c0_i32 : i32, i32
  }
  func.func @transform_1(%arg0: i32) -> (i32, i32) {
    %c0_i32 = arith.constant 0 : i32
    %c0_i32_0 = arith.constant 0 : i32
    %c0_i32_1 = arith.constant 0 : i32
    return %c0_i32, %c0_i32_0 : i32, i32
  }
  func.func @transform_2(%arg0: i32) -> (i32, i32) {
    %c0_i32 = arith.constant 0 : i32
    %c0_i32_0 = arith.constant 0 : i32
    %c0_i32_1 = arith.constant 0 : i32
    return %c0_i32, %c0_i32_0 : i32, i32
  }
  func.func @transform_3(%arg0: i32) -> (i32, i32) {
    %c0_i32 = arith.constant 0 : i32
    %c0_i32_0 = arith.constant 0 : i32
    %c0_i32_1 = arith.constant 0 : i32
    return %c0_i32, %c0_i32_0 : i32, i32
  }
  func.func @transform_4(%arg0: i32) -> (i32, i32) {
    %c0_i32 = arith.constant 0 : i32
    %c0_i32_0 = arith.constant 0 : i32
    %c0_i32_1 = arith.constant 0 : i32
    return %c0_i32, %c0_i32_0 : i32, i32
  }
  func.func @transform_5(%arg0: i32) -> (i32, i32) {
    %c0_i32 = arith.constant 0 : i32
    %c0_i32_0 = arith.constant 0 : i32
    return %arg0, %c0_i32 : i32, i32
  }
}

module attributes {stable_mosaic.version = 11 : i64} {
  func.func @_conv_sc_kernel(%arg0: i32, %arg1: memref<8x640xbf16, #tpu.memory_space<vmem>>, %arg2: memref<640x128xbf16, #tpu.memory_space<vmem>>, %arg3: memref<1x128xf32, #tpu.memory_space<vmem>>, %arg4: memref<1x128xf32, #tpu.memory_space<vmem>>, %arg5: memref<8x128xbf16, #tpu.memory_space<vmem>>, %arg6: memref<8x128xbf16, #tpu.memory_space<vmem>>) attributes {dimension_semantics = [#tpu.dimension_semantics<parallel>], iteration_bounds = array<i64: 2>, scalar_prefetch = 0 : i64, scratch_operands = 0 : i64, tpu.core_type = #tpu.core_type<tc>, window_params = [{transform_indices = @transform_0, window_bounds = array<i64: 8, 640>}, {pipeline_mode = #tpu.pipeline_mode<synchronous>, transform_indices = @transform_1, window_bounds = array<i64: 640, 128>}, {pipeline_mode = #tpu.pipeline_mode<synchronous>, transform_indices = @transform_2, window_bounds = array<i64: 1, 128>}, {pipeline_mode = #tpu.pipeline_mode<synchronous>, transform_indices = @transform_3, window_bounds = array<i64: 1, 128>}, {transform_indices = @transform_4, window_bounds = array<i64: 8, 128>}, {transform_indices = @transform_5, window_bounds = array<i64: 8, 128>}]} {
    %c0 = arith.constant 0 : index
    %c0_0 = arith.constant 0 : index
    %0 = vector.load %arg1[%c0, %c0_0] : memref<8x640xbf16, #tpu.memory_space<vmem>>, vector<8x640xbf16>
    %c0_1 = arith.constant 0 : index
    %c0_2 = arith.constant 0 : index
    %1 = vector.load %arg2[%c0_1, %c0_2] : memref<640x128xbf16, #tpu.memory_space<vmem>>, vector<640x128xbf16>
    %cst = arith.constant dense<0.000000e+00> : vector<8x128xf32>
    %2 = tpu.matmul %0, %1, %cst {dimension_numbers = #tpu.dot_dimension_numbers<[1], [0], [0], [1], [0, 0, 1, 1], [], []>} : vector<8x640xbf16>, vector<640x128xbf16>, vector<8x128xf32> -> vector<8x128xf32>
    %c0_3 = arith.constant 0 : index
    %c0_4 = arith.constant 0 : index
    %3 = vector.load %arg3[%c0_3, %c0_4] : memref<1x128xf32, #tpu.memory_space<vmem>>, vector<1x128xf32>
    %4 = vector.broadcast %3 : vector<1x128xf32> to vector<8x128xf32>
    %5 = arith.mulf %2, %4 : vector<8x128xf32>
    %c0_5 = arith.constant 0 : index
    %c0_6 = arith.constant 0 : index
    %6 = vector.load %arg4[%c0_5, %c0_6] : memref<1x128xf32, #tpu.memory_space<vmem>>, vector<1x128xf32>
    %7 = vector.broadcast %6 : vector<1x128xf32> to vector<8x128xf32>
    %8 = arith.addf %5, %7 : vector<8x128xf32>
    %c0_7 = arith.constant 0 : index
    %c0_8 = arith.constant 0 : index
    %9 = vector.load %arg5[%c0_7, %c0_8] : memref<8x128xbf16, #tpu.memory_space<vmem>>, vector<8x128xbf16>
    %10 = arith.extf %9 : vector<8x128xbf16> to vector<8x128xf32>
    %11 = arith.addf %8, %10 : vector<8x128xf32>
    %cst_9 = arith.constant 0.000000e+00 : f32
    %12 = vector.broadcast %cst_9 : f32 to vector<8x128xf32>
    %13 = arith.maximumf %11, %12 : vector<8x128xf32>
    %14 = arith.truncf %13 : vector<8x128xf32> to vector<8x128xbf16>
    %c0_10 = arith.constant 0 : index
    %c0_11 = arith.constant 0 : index
    %15 = vector.load %arg6[%c0_10, %c0_11] : memref<8x128xbf16, #tpu.memory_space<vmem>>, vector<8x128xbf16>
    tpu.vector_store %arg6[%c0_10, %c0_11], %14 {strides = array<i32>} : memref<8x128xbf16, #tpu.memory_space<vmem>>, vector<8x128xbf16>,
    return
  }
  func.func @transform_0(%arg0: i32) -> (i32, i32) {
    %c0_i32 = arith.constant 0 : i32
    %c0_i32_0 = arith.constant 0 : i32
    return %arg0, %c0_i32 : i32, i32
  }
  func.func @transform_1(%arg0: i32) -> (i32, i32) {
    %c0_i32 = arith.constant 0 : i32
    %c0_i32_0 = arith.constant 0 : i32
    %c0_i32_1 = arith.constant 0 : i32
    return %c0_i32, %c0_i32_0 : i32, i32
  }
  func.func @transform_2(%arg0: i32) -> (i32, i32) {
    %c0_i32 = arith.constant 0 : i32
    %c0_i32_0 = arith.constant 0 : i32
    %c0_i32_1 = arith.constant 0 : i32
    return %c0_i32, %c0_i32_0 : i32, i32
  }
  func.func @transform_3(%arg0: i32) -> (i32, i32) {
    %c0_i32 = arith.constant 0 : i32
    %c0_i32_0 = arith.constant 0 : i32
    %c0_i32_1 = arith.constant 0 : i32
    return %c0_i32, %c0_i32_0 : i32, i32
  }
  func.func @transform_4(%arg0: i32) -> (i32, i32) {
    %c0_i32 = arith.constant 0 : i32
    %c0_i32_0 = arith.constant 0 : i32
    return %arg0, %c0_i32 : i32, i32
  }
  func.func @transform_5(%arg0: i32) -> (i32, i32) {
    %c0_i32 = arith.constant 0 : i32
    %c0_i32_0 = arith.constant 0 : i32
    return %arg0, %c0_i32 : i32, i32
  }
}

module attributes {stable_mosaic.version = 11 : i64} {
  func.func @_conv_kernel(%arg0: i32, %arg1: memref<8x640xbf16, #tpu.memory_space<vmem>>, %arg2: memref<640x128xbf16, #tpu.memory_space<vmem>>, %arg3: memref<1x128xf32, #tpu.memory_space<vmem>>, %arg4: memref<1x128xf32, #tpu.memory_space<vmem>>, %arg5: memref<1x128xf32, #tpu.memory_space<vmem>>, %arg6: memref<8x128xbf16, #tpu.memory_space<vmem>>) attributes {dimension_semantics = [#tpu.dimension_semantics<parallel>], iteration_bounds = array<i64: 2>, scalar_prefetch = 0 : i64, scratch_operands = 0 : i64, tpu.core_type = #tpu.core_type<tc>, window_params = [{transform_indices = @transform_0, window_bounds = array<i64: 8, 640>}, {pipeline_mode = #tpu.pipeline_mode<synchronous>, transform_indices = @transform_1, window_bounds = array<i64: 640, 128>}, {pipeline_mode = #tpu.pipeline_mode<synchronous>, transform_indices = @transform_2, window_bounds = array<i64: 1, 128>}, {pipeline_mode = #tpu.pipeline_mode<synchronous>, transform_indices = @transform_3, window_bounds = array<i64: 1, 128>}, {pipeline_mode = #tpu.pipeline_mode<synchronous>, transform_indices = @transform_4, window_bounds = array<i64: 1, 128>}, {transform_indices = @transform_5, window_bounds = array<i64: 8, 128>}]} {
    %c0 = arith.constant 0 : index
    %c0_0 = arith.constant 0 : index
    %0 = vector.load %arg1[%c0, %c0_0] : memref<8x640xbf16, #tpu.memory_space<vmem>>, vector<8x640xbf16>
    %c0_1 = arith.constant 0 : index
    %c0_2 = arith.constant 0 : index
    %1 = vector.load %arg2[%c0_1, %c0_2] : memref<640x128xbf16, #tpu.memory_space<vmem>>, vector<640x128xbf16>
    %cst = arith.constant dense<0.000000e+00> : vector<8x128xf32>
    %2 = tpu.matmul %0, %1, %cst {dimension_numbers = #tpu.dot_dimension_numbers<[1], [0], [0], [1], [0, 0, 1, 1], [], []>} : vector<8x640xbf16>, vector<640x128xbf16>, vector<8x128xf32> -> vector<8x128xf32>
    %c0_3 = arith.constant 0 : index
    %c0_4 = arith.constant 0 : index
    %3 = vector.load %arg3[%c0_3, %c0_4] : memref<1x128xf32, #tpu.memory_space<vmem>>, vector<1x128xf32>
    %4 = vector.broadcast %3 : vector<1x128xf32> to vector<8x128xf32>
    %5 = arith.mulf %2, %4 : vector<8x128xf32>
    %c0_5 = arith.constant 0 : index
    %c0_6 = arith.constant 0 : index
    %6 = vector.load %arg4[%c0_5, %c0_6] : memref<1x128xf32, #tpu.memory_space<vmem>>, vector<1x128xf32>
    %7 = vector.broadcast %6 : vector<1x128xf32> to vector<8x128xf32>
    %8 = arith.addf %5, %7 : vector<8x128xf32>
    %c0_7 = arith.constant 0 : index
    %c0_8 = arith.constant 0 : index
    %9 = vector.load %arg5[%c0_7, %c0_8] : memref<1x128xf32, #tpu.memory_space<vmem>>, vector<1x128xf32>
    %10 = vector.broadcast %9 : vector<1x128xf32> to vector<8x128xf32>
    %11 = arith.maximumf %8, %10 : vector<8x128xf32>
    %12 = arith.truncf %11 : vector<8x128xf32> to vector<8x128xbf16>
    %c0_9 = arith.constant 0 : index
    %c0_10 = arith.constant 0 : index
    %13 = vector.load %arg6[%c0_9, %c0_10] : memref<8x128xbf16, #tpu.memory_space<vmem>>, vector<8x128xbf16>
    tpu.vector_store %arg6[%c0_9, %c0_10], %12 {strides = array<i32>} : memref<8x128xbf16, #tpu.memory_space<vmem>>, vector<8x128xbf16>,
    return
  }
  func.func @transform_0(%arg0: i32) -> (i32, i32) {
    %c0_i32 = arith.constant 0 : i32
    %c0_i32_0 = arith.constant 0 : i32
    return %arg0, %c0_i32 : i32, i32
  }
  func.func @transform_1(%arg0: i32) -> (i32, i32) {
    %c0_i32 = arith.constant 0 : i32
    %c0_i32_0 = arith.constant 0 : i32
    %c0_i32_1 = arith.constant 0 : i32
    return %c0_i32, %c0_i32_0 : i32, i32
  }
  func.func @transform_2(%arg0: i32) -> (i32, i32) {
    %c0_i32 = arith.constant 0 : i32
    %c0_i32_0 = arith.constant 0 : i32
    %c0_i32_1 = arith.constant 0 : i32
    return %c0_i32, %c0_i32_0 : i32, i32
  }
  func.func @transform_3(%arg0: i32) -> (i32, i32) {
    %c0_i32 = arith.constant 0 : i32
    %c0_i32_0 = arith.constant 0 : i32
    %c0_i32_1 = arith.constant 0 : i32
    return %c0_i32, %c0_i32_0 : i32, i32
  }
  func.func @transform_4(%arg0: i32) -> (i32, i32) {
    %c0_i32 = arith.constant 0 : i32
    %c0_i32_0 = arith.constant 0 : i32
    %c0_i32_1 = arith.constant 0 : i32
    return %c0_i32, %c0_i32_0 : i32, i32
  }
  func.func @transform_5(%arg0: i32) -> (i32, i32) {
    %c0_i32 = arith.constant 0 : i32
    %c0_i32_0 = arith.constant 0 : i32
    return %arg0, %c0_i32 : i32, i32
  }
}

module attributes {stable_mosaic.version = 11 : i64} {
  func.func @_gap_fc_kernel(%arg0: memref<2x1x128xbf16, #tpu.memory_space<vmem>>, %arg1: memref<128x128xf32, #tpu.memory_space<vmem>>, %arg2: memref<1x128xf32, #tpu.memory_space<vmem>>, %arg3: memref<2x128xf32, #tpu.memory_space<vmem>>, %arg4: memref<2x128xf32, #tpu.memory_space<vmem>>) attributes {dimension_semantics = [], scalar_prefetch = 0 : i64, scratch_operands = 0 : i64, tpu.core_type = #tpu.core_type<tc>} {
    %c0 = arith.constant 0 : index
    %c0_0 = arith.constant 0 : index
    %c0_1 = arith.constant 0 : index
    %0 = vector.load %arg0[%c0, %c0_0, %c0_1] : memref<2x1x128xbf16, #tpu.memory_space<vmem>>, vector<2x1x128xbf16>
    %1 = arith.extf %0 : vector<2x1x128xbf16> to vector<2x1x128xf32>
    %cst = arith.constant dense<0.000000e+00> : vector<2x128xf32>
    %2 = vector.multi_reduction <add>, %1, %cst [1] : vector<2x1x128xf32> to vector<2x128xf32>
    %cst_2 = arith.constant 1.000000e+00 : f32
    %3 = vector.broadcast %cst_2 : f32 to vector<2x128xf32>
    %4 = arith.divf %2, %3 : vector<2x128xf32>
    %c0_3 = arith.constant 0 : index
    %c0_4 = arith.constant 0 : index
    %5 = vector.load %arg3[%c0_3, %c0_4] : memref<2x128xf32, #tpu.memory_space<vmem>>, vector<2x128xf32>
    tpu.vector_store %arg3[%c0_3, %c0_4], %4 {strides = array<i32>} : memref<2x128xf32, #tpu.memory_space<vmem>>, vector<2x128xf32>,
    %c0_5 = arith.constant 0 : index
    %c0_6 = arith.constant 0 : index
    %6 = vector.load %arg1[%c0_5, %c0_6] : memref<128x128xf32, #tpu.memory_space<vmem>>, vector<128x128xf32>
    %cst_7 = arith.constant dense<0.000000e+00> : vector<2x128xf32>
    %7 = tpu.matmul %4, %6, %cst_7 {dimension_numbers = #tpu.dot_dimension_numbers<[1], [0], [0], [1], [0, 0, 1, 1], [], []>} : vector<2x128xf32>, vector<128x128xf32>, vector<2x128xf32> -> vector<2x128xf32>
    %c0_8 = arith.constant 0 : index
    %c0_9 = arith.constant 0 : index
    %8 = vector.load %arg2[%c0_8, %c0_9] : memref<1x128xf32, #tpu.memory_space<vmem>>, vector<1x128xf32>
    %9 = vector.broadcast %8 : vector<1x128xf32> to vector<2x128xf32>
    %10 = arith.addf %7, %9 : vector<2x128xf32>
    %c0_10 = arith.constant 0 : index
    %c0_11 = arith.constant 0 : index
    %11 = vector.load %arg4[%c0_10, %c0_11] : memref<2x128xf32, #tpu.memory_space<vmem>>, vector<2x128xf32>
    tpu.vector_store %arg4[%c0_10, %c0_11], %10 {strides = array<i32>} : memref<2x128xf32, #tpu.memory_space<vmem>>, vector<2x128xf32>,
    return
  }
}

</mosaic_0001>

<bundles_post_ra>
// kernel: network_forward.35
= control target key start
LH: loop header
LB: loop body
LE: loop exit
PB: predicated region body
PF: predicated region fallthrough
CT: control target
= control target key end

     0   :  { %s1270_s18 = smov 0   ;;  %s1465_s0 = inlined_call_operand.vmem [shape: bf16[512,128], index: 0, kind: input, shape index: {}]   ;;  %s1466_s1 = inlined_call_operand.vmem [shape: bf16[128,128], index: 1, kind: input, shape index: {}]   ;;  %s1467_s2 = inlined_call_operand.vmem [shape: f32[1,128], index: 2, kind: input, shape index: {}]   ;;  %s1468_s3 = inlined_call_operand.vmem [shape: f32[1,128], index: 3, kind: input, shape index: {}, may-alias: {3,4}]   ;;  %s1469_s4 = inlined_call_operand.vmem [shape: f32[1,128], index: 4, kind: input, shape index: {}, may-alias: {3,4}]   ;;  %s1470_s5 = inlined_call_operand.vmem [shape: bf16[512,128], index: 5, kind: output, shape index: {}]  }
   0x1 LB: > { %s915_s19 = sadd.s32 4294967295, %s1238_s18   ;;  %p919_p0 = scmp.ge.s32.totalorder %s1238_s18, 1  ;;  %s1238_s18 = sphi %s1270_s18, %s15_s18  }
   0x2   : > { %p188_p1 = scmp.lt.s32.totalorder %s1238_s18, 3 }
   0x4   : > { %p189_p2 = pnand %p919_p0, %p188_p1 }
   0x5   : > { %s920_s22 = sshll.u32 (!%p189_p2), %s915_s19, 5 }
   0x6   : > { %192 = sbr.rel (%p189_p2) target bundleno = 276 (0x114), region = 40  ;;  %p217_p3 = scmp.lt.s32.totalorder (!%p189_p2), %s920_s22, 63 }
   0xb   : > { %v1208_v0 = vld [vmem:[%s1466_s1 + $0x38] sm:$0xff]   ;;  %v1209_v1 = vld [vmem:[%s1466_s1 + $0x30] sm:$0xff]   ;;  %s1472_s22 = smov (!%p217_p3, %s920_s22), 63  ;;  %v1210_v2 = vld [vmem:[%s1466_s1 + $0x28] sm:$0xff]  }
   0xc   : > { %1136 = vmatprep.subr.bf16.mxu0 %v1208_v0  ;;  %1184 = vmatprep.subr.bf16.mxu1 %v1208_v0  ;;  %s921_s27 = sshll.u32 %s1472_s22, 2  ;;  %v1211_v3 = vld [vmem:[%s1466_s1 + $0x20] sm:$0xff]   ;;  %v1212_v6 = vld [vmem:[%s1466_s1 + $0x18] sm:$0xff]   ;;  %v1213_v7 = vld [vmem:[%s1466_s1 + $0x10] sm:$0xff]  }
   0xd   : > { %1137 = vmatpush3.bf16.msra.mxu0 %v1208_v0  ;;  %1192 = vmatpush3.bf16.msra.mxu1 %v1208_v0  ;;  %s1295_s30 = scalar_lea.vmem %s1465_s0, %s921_s27  ;;  %v1214_v8 = vld [vmem:[%s1466_s1 + $0x8] sm:$0xff]   ;;  %v1215_v9 = vld [vmem:[%s1466_s1] sm:$0xff]   ;;  %s1372_s26 = scalar_lea.vmem %s1470_s5, %s921_s27 }
   0xe   : > { %1138 = vmatprep.subr.bf16.mxu0 %v1209_v1  ;;  %1185 = vmatprep.subr.bf16.mxu1 %v1209_v1  ;;  %v1216_v4 = vld [vmem:[%s1295_s30] sm:$0xff]   ;;  %v1218_v10 = vld [vmem:[%s1295_s30 + $0x8] sm:$0xff]   ;;  %v1220_v12 = vld [vmem:[%s1295_s30 + $0x10] sm:$0xff]  }
   0xf   : > { %v1217_v5 = vld [vmem:[%s1295_s30 + $0x40] sm:$0xff]   ;;  %1152 = vmatprep.mubr.bf16.mxu0 %v1216_v4  ;;  %v1219_v11 = vld [vmem:[%s1295_s30 + $0x48] sm:$0xff]   ;;  %v1221_v13 = vld [vmem:[%s1295_s30 + $0x50] sm:$0xff]  }
  0x10   : > { %1168 = vmatprep.mubr.bf16.mxu1 %v1217_v5  ;;  %v1222_v14 = vld [vmem:[%s1295_s30 + $0x18] sm:$0xff]   ;;  %v1224_v16 = vld [vmem:[%s1295_s30 + $0x20] sm:$0xff]   ;;  %v1226_v18 = vld [vmem:[%s1295_s30 + $0x28] sm:$0xff]  }
  0x11   : > { %1139 = vmatpush3.bf16.msra.mxu0 %v1209_v1  ;;  %1193 = vmatpush3.bf16.msra.mxu1 %v1209_v1  ;;  %v1223_v15 = vld [vmem:[%s1295_s30 + $0x58] sm:$0xff]   ;;  %v1225_v17 = vld [vmem:[%s1295_s30 + $0x60] sm:$0xff]   ;;  %v1227_v19 = vld [vmem:[%s1295_s30 + $0x68] sm:$0xff]  }
  0x12   : > { %1140 = vmatprep.subr.bf16.mxu0 %v1210_v2  ;;  %1186 = vmatprep.subr.bf16.mxu1 %v1210_v2  ;;  %v1228_v20 = vld [vmem:[%s1295_s30 + $0x30] sm:$0xff]   ;;  %v1230_v22 = vld [vmem:[%s1295_s30 + $0x38] sm:$0xff]   ;;  %v1331_v24 = vld [vmem:[%s1467_s2] ss:$0 sm:$0xff] }
  0x13   : > { %v1229_v21 = vld [vmem:[%s1295_s30 + $0x70] sm:$0xff]   ;;  %v1231_v23 = vld [vmem:[%s1295_s30 + $0x78] sm:$0xff]   ;;  %v1338_v29 = vld [vmem:[%s1468_s3] ss:$0 sm:$0xff] }
  0x14   : > { %v1347_v38 = vld [vmem:[%s1469_s4] ss:$0 sm:$0xff] }
  0x15   : > { %1141 = vmatpush3.bf16.msra.mxu0 %v1210_v2  ;;  %1194 = vmatpush3.bf16.msra.mxu1 %v1210_v2 }
  0x16   : > { %1142 = vmatprep.subr.bf16.mxu0 %v1211_v3  ;;  %1187 = vmatprep.subr.bf16.mxu1 %v1211_v3 }
  0x19   : > { %1143 = vmatpush3.bf16.msra.mxu0 %v1211_v3  ;;  %1195 = vmatpush3.bf16.msra.mxu1 %v1211_v3 }
  0x1a   : > { %1144 = vmatprep.subr.bf16.mxu0 %v1212_v6  ;;  %1188 = vmatprep.subr.bf16.mxu1 %v1212_v6 }
  0x1d   : > { %1145 = vmatpush3.bf16.msra.mxu0 %v1212_v6  ;;  %1196 = vmatpush3.bf16.msra.mxu1 %v1212_v6 }
  0x1e   : > { %1146 = vmatprep.subr.bf16.mxu0 %v1213_v7  ;;  %1189 = vmatprep.subr.bf16.mxu1 %v1213_v7 }
  0x21   : > { %1147 = vmatpush3.bf16.msra.mxu0 %v1213_v7  ;;  %1197 = vmatpush3.bf16.msra.mxu1 %v1213_v7 }
  0x22   : > { %1148 = vmatprep.subr.bf16.mxu0 %v1214_v8  ;;  %1190 = vmatprep.subr.bf16.mxu1 %v1214_v8 }
  0x25   : > { %1149 = vmatpush3.bf16.msra.mxu0 %v1214_v8  ;;  %1198 = vmatpush3.bf16.msra.mxu1 %v1214_v8 }
  0x26   : > { %1150 = vmatprep.subr.bf16.mxu0 %v1215_v9  ;;  %1191 = vmatprep.subr.bf16.mxu1 %v1215_v9 }
  0x29   : > { %1151 = vmatpush3.bf16.msra.mxu0 %v1215_v9  ;;  %1199 = vmatpush3.bf16.msra.mxu1 %v1215_v9 }
  0x2c   : > { %1153 = vmatmul.mubr.bf16.vlgmr.msra.gmra.mxu0 %v1218_v10  ;;  %1169 = vmatmul.mubr.bf16.vlgmr.msra.gmra.mxu1 %v1219_v11 }
  0x2d   : > { %1156 = vmatprep.mubr.bf16.mxu0 %v1220_v12  ;;  %1172 = vmatprep.mubr.bf16.mxu1 %v1221_v13 }
  0x34   : > { %1157 = vmatmul.mubr.bf16.gmra.mxu0 %v1222_v14  ;;  %1173 = vmatmul.mubr.bf16.gmra.mxu1 %v1223_v15 }
  0x35   : > { %1160 = vmatprep.mubr.bf16.mxu0 %v1224_v16  ;;  %1176 = vmatprep.mubr.bf16.mxu1 %v1225_v17 }
  0x3c   : > { %1161 = vmatmul.mubr.bf16.gmra.mxu0 %v1226_v18  ;;  %1177 = vmatmul.mubr.bf16.gmra.mxu1 %v1227_v19 }
  0x3d   : > { %1164 = vmatprep.mubr.bf16.mxu0 %v1228_v20  ;;  %1180 = vmatprep.mubr.bf16.mxu1 %v1229_v21 }
  0x44   : > { %1165 = vmatmul.mubr.bf16.gmra.mxu0 %v1230_v22  ;;  %1181 = vmatmul.mubr.bf16.gmra.mxu1 %v1231_v23 }
  0xec   : > { %v1154_v25 = vpop.f32.mrf.mxu0  ;;  %v1170_v26 = vpop.f32.mrf.mxu1 }
  0xed   : > { %v591_v27 = vmul.f32 %v1154_v25, %v1331_v24  ;;  %v607_v28 = vmul.f32 %v1170_v26, %v1331_v24 }
  0xee   : > { %v455_v30 = vpop.f32.mrf.mxu0  ;;  %v519_v31 = vpop.f32.mrf.mxu1 }
  0xef   : > { %v589_v32 = vmul.f32 %v1331_v24, %v455_v30  ;;  %v605_v33 = vmul.f32 %v1331_v24, %v519_v31  ;;  %v630_v36 = vadd.f32 %v1338_v29, %v591_v27  ;;  %v646_v37 = vadd.f32 %v1338_v29, %v607_v28 }
  0xf0   : > { %v1155_v34 = vpop.f32.mrf.mxu0  ;;  %v1171_v35 = vpop.f32.mrf.mxu1 }
  0xf1   : > { %v592_v39 = vmul.f32 %v1155_v34, %v1331_v24  ;;  %v608_v40 = vmul.f32 %v1171_v35, %v1331_v24  ;;  %v628_v43 = vadd.f32 %v1338_v29, %v589_v32  ;;  %v644_v44 = vadd.f32 %v1338_v29, %v605_v33 }
  0xf2   : > { %v458_v41 = vpop.f32.mrf.mxu0  ;;  %v522_v42 = vpop.f32.mrf.mxu1  ;;  %v669_v51 = vmax.f32 %v630_v36, %v1347_v38  ;;  %v685_v52 = vmax.f32 %v646_v37, %v1347_v38 }
  0xf3   : > { %v590_v45 = vmul.f32 %v1331_v24, %v458_v41  ;;  %v606_v46 = vmul.f32 %v1331_v24, %v522_v42  ;;  %v631_v47 = vadd.f32 %v1338_v29, %v592_v39  ;;  %v647_v48 = vadd.f32 %v1338_v29, %v608_v40 }
  0xf4   : > { %v1158_v49 = vpop.f32.mrf.mxu0  ;;  %v1174_v50 = vpop.f32.mrf.mxu1  ;;  %v667_v61 = vmax.f32 %v628_v43, %v1347_v38  ;;  %v683_v62 = vmax.f32 %v644_v44, %v1347_v38 }
  0xf5   : > { %v629_v53 = vadd.f32 %v1338_v29, %v590_v45  ;;  %v645_v54 = vadd.f32 %v1338_v29, %v606_v46  ;;  %v670_v55 = vmax.f32 %v631_v47, %v1347_v38  ;;  %v686_v56 = vmax.f32 %v647_v48, %v1347_v38 }
  0xf6   : > { %v595_v57 = vmul.f32 %v1158_v49, %v1331_v24  ;;  %v611_v58 = vmul.f32 %v1174_v50, %v1331_v24  ;;  %v471_v59 = vpop.f32.mrf.mxu0  ;;  %v535_v60 = vpop.f32.mrf.mxu1 }
  0xf7   : > { %v668_v63 = vmax.f32 %v629_v53, %v1347_v38  ;;  %v684_v0 = vmax.f32 %v645_v54, %v1347_v38  ;;  %v1025_v1 = vpack.c.bf16 %v670_v55, %v669_v51  ;;  %v1065_v2 = vpack.c.bf16 %v686_v56, %v685_v52 }
  0xf8   : > { %v593_v3 = vmul.f32 %v1331_v24, %v471_v59  ;;  %v609_v4 = vmul.f32 %v1331_v24, %v535_v60  ;;  %v1159_v5 = vpop.f32.mrf.mxu0  ;;  %v1175_v6 = vpop.f32.mrf.mxu1  ;;  %v634_v9 = vadd.f32 %v1338_v29, %v595_v57  ;;  %v650_v10 = vadd.f32 %v1338_v29, %v611_v58 }
  0xf9   : > { %v1020_v7 = vpack.c.bf16 %v668_v63, %v667_v61  ;;  %v1060_v8 = vpack.c.bf16 %v684_v0, %v683_v62  ;;  %1097 = vst [vmem:[%s1372_s26 + $0x8] sm:$0xff] %v1025_v1   ;;  %1105 = vst [vmem:[%s1372_s26 + $0x48] sm:$0xff] %v1065_v2   ;;  %v596_v11 = vmul.f32 %v1159_v5, %v1331_v24 }
  0xfa   : > { %v612_v12 = vmul.f32 %v1175_v6, %v1331_v24  ;;  %v474_v13 = vpop.f32.mrf.mxu0  ;;  %v538_v14 = vpop.f32.mrf.mxu1  ;;  %v632_v15 = vadd.f32 %v1338_v29, %v593_v3  ;;  %v648_v16 = vadd.f32 %v1338_v29, %v609_v4  ;;  %v673_v28 = vmax.f32 %v634_v9, %v1347_v38 }
  0xfb   : > { %1021 = vst [vmem:[%s1372_s26] sm:$0xff] %v1020_v7   ;;  %1104 = vst [vmem:[%s1372_s26 + $0x40] sm:$0xff] %v1060_v8   ;;  %v594_v17 = vmul.f32 %v1331_v24, %v474_v13  ;;  %v610_v18 = vmul.f32 %v1331_v24, %v538_v14  ;;  %v635_v19 = vadd.f32 %v1338_v29, %v596_v11 }
  0xfc   : > { %v651_v20 = vadd.f32 %v1338_v29, %v612_v12  ;;  %v1162_v21 = vpop.f32.mrf.mxu0  ;;  %v1178_v22 = vpop.f32.mrf.mxu1  ;;  %v689_v30 = vmax.f32 %v650_v10, %v1347_v38  ;;  %v671_v35 = vmax.f32 %v632_v15, %v1347_v38  ;;  %v687_v36 = vmax.f32 %v648_v16, %v1347_v38 }
  0xfd   : > { %v633_v23 = vadd.f32 %v1338_v29, %v594_v17  ;;  %v649_v25 = vadd.f32 %v1338_v29, %v610_v18  ;;  %v599_v26 = vmul.f32 %v1162_v21, %v1331_v24  ;;  %v615_v27 = vmul.f32 %v1178_v22, %v1331_v24 }
  0xfe   : > { %v674_v31 = vmax.f32 %v635_v19, %v1347_v38  ;;  %v690_v32 = vmax.f32 %v651_v20, %v1347_v38  ;;  %v487_v33 = vpop.f32.mrf.mxu0  ;;  %v551_v34 = vpop.f32.mrf.mxu1 }
  0xff   : > { %v672_v37 = vmax.f32 %v633_v23, %v1347_v38  ;;  %v688_v39 = vmax.f32 %v649_v25, %v1347_v38  ;;  %v597_v42 = vmul.f32 %v1331_v24, %v487_v33  ;;  %v613_v43 = vmul.f32 %v1331_v24, %v551_v34 }
 0x100   : > { %v1035_v40 = vpack.c.bf16 %v674_v31, %v673_v28  ;;  %v1075_v41 = vpack.c.bf16 %v690_v32, %v689_v30  ;;  %v1163_v44 = vpop.f32.mrf.mxu0  ;;  %v1179_v45 = vpop.f32.mrf.mxu1  ;;  %v638_v48 = vadd.f32 %v1338_v29, %v599_v26  ;;  %v654_v49 = vadd.f32 %v1338_v29, %v615_v27 }
 0x101   : > { %v1030_v46 = vpack.c.bf16 %v672_v37, %v671_v35  ;;  %v1070_v47 = vpack.c.bf16 %v688_v39, %v687_v36  ;;  %v600_v50 = vmul.f32 %v1163_v44, %v1331_v24  ;;  %v616_v51 = vmul.f32 %v1179_v45, %v1331_v24 }
 0x102   : > { %1099 = vst [vmem:[%s1372_s26 + $0x18] sm:$0xff] %v1035_v40   ;;  %1107 = vst [vmem:[%s1372_s26 + $0x58] sm:$0xff] %v1075_v41   ;;  %v490_v52 = vpop.f32.mrf.mxu0  ;;  %v554_v53 = vpop.f32.mrf.mxu1  ;;  %v636_v54 = vadd.f32 %v1338_v29, %v597_v42  ;;  %v652_v55 = vadd.f32 %v1338_v29, %v613_v43  ;;  %v677_v62 = vmax.f32 %v638_v48, %v1347_v38 }
 0x103   : > { %1098 = vst [vmem:[%s1372_s26 + $0x10] sm:$0xff] %v1030_v46   ;;  %1106 = vst [vmem:[%s1372_s26 + $0x50] sm:$0xff] %v1070_v47   ;;  %v598_v56 = vmul.f32 %v1331_v24, %v490_v52  ;;  %v614_v57 = vmul.f32 %v1331_v24, %v554_v53  ;;  %v639_v58 = vadd.f32 %v1338_v29, %v600_v50 }
 0x104   : > { %v655_v59 = vadd.f32 %v1338_v29, %v616_v51  ;;  %v1166_v60 = vpop.f32.mrf.mxu0  ;;  %v1182_v61 = vpop.f32.mrf.mxu1  ;;  %v693_v63 = vmax.f32 %v654_v49, %v1347_v38  ;;  %v675_v8 = vmax.f32 %v636_v54, %v1347_v38  ;;  %v691_v9 = vmax.f32 %v652_v55, %v1347_v38 }
 0x105   : > { %v637_v0 = vadd.f32 %v1338_v29, %v598_v56  ;;  %v653_v1 = vadd.f32 %v1338_v29, %v614_v57  ;;  %v678_v2 = vmax.f32 %v639_v58, %v1347_v38  ;;  %v603_v4 = vmul.f32 %v1166_v60, %v1331_v24 }
 0x106   : > { %v694_v3 = vmax.f32 %v655_v59, %v1347_v38  ;;  %v619_v5 = vmul.f32 %v1182_v61, %v1331_v24  ;;  %v503_v6 = vpop.f32.mrf.mxu0  ;;  %v567_v7 = vpop.f32.mrf.mxu1 }
 0x107   : > { %v676_v10 = vmax.f32 %v637_v0, %v1347_v38  ;;  %v692_v11 = vmax.f32 %v653_v1, %v1347_v38  ;;  %v1045_v12 = vpack.c.bf16 %v678_v2, %v677_v62  ;;  %v601_v14 = vmul.f32 %v1331_v24, %v503_v6 }
 0x108   : > { %v1085_v13 = vpack.c.bf16 %v694_v3, %v693_v63  ;;  %v617_v15 = vmul.f32 %v1331_v24, %v567_v7  ;;  %v1167_v16 = vpop.f32.mrf.mxu0  ;;  %v1183_v17 = vpop.f32.mrf.mxu1  ;;  %v642_v20 = vadd.f32 %v1338_v29, %v603_v4  ;;  %v658_v21 = vadd.f32 %v1338_v29, %v619_v5 }
 0x109   : > { %v1040_v18 = vpack.c.bf16 %v676_v10, %v675_v8  ;;  %v1080_v19 = vpack.c.bf16 %v692_v11, %v691_v9  ;;  %1101 = vst [vmem:[%s1372_s26 + $0x28] sm:$0xff] %v1045_v12   ;;  %v604_v22 = vmul.f32 %v1167_v16, %v1331_v24  ;;  %v620_v23 = vmul.f32 %v1183_v17, %v1331_v24 }
 0x10a   : > { %1109 = vst [vmem:[%s1372_s26 + $0x68] sm:$0xff] %v1085_v13   ;;  %v506_v25 = vpop.f32.mrf.mxu0  ;;  %v570_v26 = vpop.f32.mrf.mxu1  ;;  %v640_v27 = vadd.f32 %v1338_v29, %v601_v14  ;;  %v656_v28 = vadd.f32 %v1338_v29, %v617_v15  ;;  %v681_v36 = vmax.f32 %v642_v20, %v1347_v38  ;;  %v697_v37 = vmax.f32 %v658_v21, %v1347_v38 }
 0x10b   : > { %1100 = vst [vmem:[%s1372_s26 + $0x20] sm:$0xff] %v1040_v18   ;;  %1108 = vst [vmem:[%s1372_s26 + $0x60] sm:$0xff] %v1080_v19   ;;  %v602_v30 = vmul.f32 %v1331_v24, %v506_v25  ;;  %v618_v31 = vmul.f32 %v1331_v24, %v570_v26  ;;  %v643_v32 = vadd.f32 %v1338_v29, %v604_v22 }
 0x10c   : > { %v659_v33 = vadd.f32 %v1338_v29, %v620_v23  ;;  %v679_v40 = vmax.f32 %v640_v27, %v1347_v38  ;;  %v695_v41 = vmax.f32 %v656_v28, %v1347_v38 }
 0x10d   : > { %v641_v34 = vadd.f32 %v1338_v29, %v602_v30  ;;  %v657_v35 = vadd.f32 %v1338_v29, %v618_v31  ;;  %v682_v39 = vmax.f32 %v643_v32, %v1347_v38 }
 0x10e   : > { %v698_v24 = vmax.f32 %v659_v33, %v1347_v38 }
 0x10f   : > { %v680_v42 = vmax.f32 %v641_v34, %v1347_v38  ;;  %v696_v43 = vmax.f32 %v657_v35, %v1347_v38  ;;  %v1055_v44 = vpack.c.bf16 %v682_v39, %v681_v36 }
 0x110   : > { %v1095_v45 = vpack.c.bf16 %v698_v24, %v697_v37 }
 0x111   : > { %v1050_v29 = vpack.c.bf16 %v680_v42, %v679_v40  ;;  %v1090_v46 = vpack.c.bf16 %v696_v43, %v695_v41  ;;  %1103 = vst [vmem:[%s1372_s26 + $0x38] sm:$0xff] %v1055_v44  }
 0x112   : > { %1111 = vst [vmem:[%s1372_s26 + $0x78] sm:$0xff] %v1095_v45  }
 0x113   : > { %1102 = vst [vmem:[%s1372_s26 + $0x30] sm:$0xff] %v1050_v29   ;;  %1110 = vst [vmem:[%s1372_s26 + $0x70] sm:$0xff] %v1090_v46  }
 0x114 PF: > { %s15_s18 = sadd.s32 1, %s1238_s18  }
 0x115   : > { %p12_p4 = scmp.ge.s32.totalorder %s15_s18, 4  }
 0x117   :  { %14 = sbr.rel (!%p12_p4) target bundleno = 1 (0x1), region = 70 }

// kernel: network_forward.36
= control target key start
LH: loop header
LB: loop body
LE: loop exit
PB: predicated region body
PF: predicated region fallthrough
CT: control target
= control target key end

     0   :  { %s669_s15 = smov 0   ;;  %s811_s0 = inlined_call_operand.vmem [shape: bf16[2,8,8,128], index: 0, kind: input, shape index: {}]   ;;  %s812_s1 = inlined_call_operand.vmem [shape: bf16[2,8,8,128], index: 1, kind: input, shape index: {}]   ;;  %s813_s2 = inlined_call_operand.vmem [shape: bf16[2,8,8,128], index: 2, kind: input, shape index: {}]   ;;  %s814_s3 = inlined_call_operand.vmem [shape: bf16[2,8,8,128], index: 3, kind: input, shape index: {}]   ;;  %s815_s4 = inlined_call_operand.vmem [shape: bf16[2,7,7,128], index: 4, kind: output, shape index: {}]  }
   0x1 LB: > { %s541_s16 = sadd.s32 4294967295, %s642_s15   ;;  %p545_p0 = scmp.ge.s32.totalorder %s642_s15, 1  ;;  %s642_s15 = sphi %s669_s15, %s14_s15  }
   0x2   : > { %p192_p1 = scmp.lt.s32.totalorder %s642_s15, 3 }
   0x4   : > { %p193_p2 = pnand %p545_p0, %p192_p1 }
   0x5   : > { %p233_p3 = scmp.lt.s32.totalorder (!%p193_p2), %s541_s16, 1 }
   0x6   : > { %196 = sbr.rel (%p193_p2) target bundleno = 55 (0x37), region = 36 }
   0xb   : > { %s819_s16 = smov (!%p233_p3, %s541_s16), 1  ;;  %vm426_vm0 = vcmask 1043456   ;;  %vm427_vm1 = vsmask.f32 3328 }
   0xc   : > { %s557_s17 = sshll.u32 %s819_s16, 5  ;;  %s627_s30 = smul.u32 28, %s819_s16  ;;  %vm771_vm2 = vmand %vm426_vm0, %vm427_vm1 }
   0xd   : > { %s683_s20 = scalar_lea.vmem %s811_s0, %s557_s17  ;;  %s688_s23 = scalar_lea.vmem %s812_s1, %s557_s17 }
   0xe   : > { %s693_s26 = scalar_lea.vmem %s813_s2, %s557_s17  ;;  %s698_s29 = scalar_lea.vmem %s814_s3, %s557_s17  ;;  %v562_v0 = vld [vmem:[%s683_s20] sm:$0xff]   ;;  %v617_v2 = vld [vmem:[%s683_s20 + $0x8] sm:$0xff]   ;;  %v618_v28 = vld [vmem:[%s683_s20 + $0x10] sm:$0xff]  }
   0xf   : > { %v702_v1 = vld [vmem:[%s688_s23] sm:$0xff]   ;;  %v563_v3 = vunpack.c.l.bf16 %v562_v0  ;;  %v705_v4 = vunpack.c.h.bf16 %v562_v0  ;;  %v712_v9 = vld [vmem:[%s688_s23 + $0x8] sm:$0xff]   ;;  %v714_v13 = vunpack.c.l.bf16 %v617_v2  ;;  %v728_v30 = vunpack.c.h.bf16 %v617_v2  ;;  %v732_v33 = vld [vmem:[%s688_s23 + $0x10] sm:$0xff]   ;;  %s757_s7 = scalar_lea.vmem %s815_s4, %s627_s30 }
  0x10   : > { %v579_v5 = vunpack.c.l.bf16 %v702_v1  ;;  %v580_v6 = vunpack.c.h.bf16 %v702_v1  ;;  %v594_v7 = vld [vmem:[%s693_s26] sm:$0xff]   ;;  %v623_v14 = vld [vmem:[%s693_s26 + $0x8] sm:$0xff]   ;;  %v583_v20 = vunpack.c.l.bf16 %v712_v9  ;;  %v584_v31 = vunpack.c.h.bf16 %v712_v9  ;;  %v735_v34 = vld [vmem:[%s693_s26 + $0x10] sm:$0xff]  }
  0x11   : > { %v606_v8 = vld [vmem:[%s698_s29] sm:$0xff]   ;;  %v595_v10 = vunpack.c.l.bf16 %v594_v7  ;;  %v596_v11 = vunpack.c.h.bf16 %v594_v7  ;;  %v332_v17 = vrot.slane %v563_v3, 1  ;;  %v333_v18 = vrot.slane %v705_v4, 1  ;;  %v625_v23 = vld [vmem:[%s698_s29 + $0x8] sm:$0xff]   ;;  %v626_v55 = vld [vmem:[%s698_s29 + $0x10] sm:$0xff]  }
  0x12   : > { %v607_v12 = vunpack.c.l.bf16 %v606_v8  ;;  %v318_v15 = vmax.f32 %v563_v3, %v579_v5  ;;  %v319_v16 = vmax.f32 %v705_v4, %v580_v6  ;;  %v599_v21 = vunpack.c.l.bf16 %v623_v14  ;;  %v752_v0 = vld [vmem:[%s683_s20 + $0x18] sm:$0xff]  }
  0x13   : > { %v374_v19 = vrot.slane %v595_v10, 1  ;;  %v608_v22 = vunpack.c.h.bf16 %v606_v8  ;;  %v334_v26 = vrot.slane %v714_v13, 1  ;;  %v375_v27 = vrot.slane %v596_v11, 1 }
  0x14   : > { %v346_v24 = vmax.f32 %v318_v15, %v332_v17  ;;  %v347_v25 = vmax.f32 %v319_v16, %v333_v18  ;;  %v320_v29 = vmax.f32 %v714_v13, %v583_v20  ;;  %v600_v32 = vunpack.c.h.bf16 %v623_v14 }
  0x15   : > { %v611_v37 = vunpack.c.l.bf16 %v625_v23  ;;  %v376_v38 = vrot.slane %v599_v21, 1  ;;  %v321_v40 = vmax.f32 %v728_v30, %v584_v31  ;;  %v335_v41 = vrot.slane %v728_v30, 1 }
  0x16   : > { %v353_v35 = vmax.f32 %v346_v24, %v595_v10  ;;  %v354_v36 = vmax.f32 %v347_v25, %v596_v11  ;;  %v348_v39 = vmax.f32 %v320_v29, %v334_v26  ;;  %v739_v42 = vunpack.c.l.bf16 %v618_v28 }
  0x17   : > { %v587_v45 = vunpack.c.l.bf16 %v732_v33  ;;  %v603_v46 = vunpack.c.l.bf16 %v735_v34  ;;  %v349_v48 = vmax.f32 %v321_v40, %v335_v41  ;;  %v612_v49 = vunpack.c.h.bf16 %v625_v23  ;;  %v432_v23 = vld [vmem:[%s757_s7 + $0x4] sm:$0xf] }
  0x18   : > { %v360_v43 = vmax.f32 %v353_v35, %v607_v12  ;;  %v361_v44 = vmax.f32 %v354_v36, %v608_v22  ;;  %v355_v47 = vmax.f32 %v348_v39, %v599_v21  ;;  %v336_v50 = vrot.slane %v739_v42, 1  ;;  %v762_v12 = vld [vmem:[%s688_s23 + $0x18] sm:$0xff]   ;;  %v435_v36 = vld [vmem:[%s757_s7 + $0x8] sm:$0xf] }
  0x19   : > { %v322_v53 = vmax.f32 %v739_v42, %v587_v45  ;;  %v377_v54 = vrot.slane %v600_v32, 1  ;;  %v356_v56 = vmax.f32 %v349_v48, %v600_v32  ;;  %v572_v58 = vunpack.c.h.bf16 %v618_v28  ;;  %v310_v39 = vld [vmem:[%s698_s29 + $0x18] sm:$0xf] }
  0x1a   : > { %v388_v51 = vmax.f32 %v360_v43, %v374_v19  ;;  %v389_v52 = vmax.f32 %v361_v44, %v375_v27  ;;  %v362_v57 = vmax.f32 %v355_v47, %v611_v37  ;;  %v588_v59 = vunpack.c.h.bf16 %v732_v33  ;;  %v438_v44 = vld [vmem:[%s757_s7 + $0xc] sm:$0xf] }
  0x1b   : > { %v350_v62 = vmax.f32 %v322_v53, %v336_v50  ;;  %v604_v63 = vunpack.c.h.bf16 %v735_v34  ;;  %v363_v3 = vmax.f32 %v356_v56, %v612_v49  ;;  %v615_v5 = vunpack.c.l.bf16 %v626_v55 }
  0x1c   : > { %v395_v60 = vmax.f32 %v388_v51, %v705_v4  ;;  %v396_v61 = vmax.f32 %v389_v52, %v714_v13  ;;  %v390_v2 = vmax.f32 %v362_v57, %v376_v38  ;;  %v323_v7 = vmax.f32 %v572_v58, %v588_v59  ;;  %v296_v13 = vld [vmem:[%s693_s26 + $0x18] sm:$0xf] }
  0x1d   : > { %v357_v10 = vmax.f32 %v350_v62, %v603_v46  ;;  %v337_v11 = vrot.slane %v572_v58, 1  ;;  %v391_v15 = vmax.f32 %v363_v3, %v377_v54  ;;  %v378_v16 = vrot.slane %v603_v46, 1  ;;  %v444_v3 = vld [vmem:[%s757_s7 + $0x14] sm:$0xf] }
  0x1e   : > { %v402_v8 = vmax.f32 %v395_v60, %v580_v6  ;;  %v403_v9 = vmax.f32 %v396_v61, %v583_v20  ;;  %v397_v14 = vmax.f32 %v390_v2, %v728_v30  ;;  %v575_v17 = vunpack.c.l.bf16 %v752_v0  ;;  %v429_v20 = vld [vmem:[%s757_s7] sm:$0xf] }
  0x1f   : > { %v351_v1 = vmax.f32 %v323_v7, %v337_v11  ;;  %v364_v22 = vmax.f32 %v357_v10, %v615_v5  ;;  %v398_v25 = vmax.f32 %v391_v15, %v739_v42  ;;  %v591_v27 = vunpack.c.l.bf16 %v762_v12 }
  0x20   : > { %v412_v19 = vmax.f32 %v402_v8, %v333_v18  ;;  %v413_v21 = vmax.f32 %v403_v9, %v334_v26  ;;  %v404_v24 = vmax.f32 %v397_v14, %v584_v31  ;;  %v303_v4 = vunpack.c.l.bf16 %v296_v13 }
  0x21   : > { %v358_v28 = vmax.f32 %v351_v1, %v604_v63  ;;  %v392_v29 = vmax.f32 %v364_v22, %v378_v16  ;;  %v405_v32 = vmax.f32 %v398_v25, %v587_v45  ;;  %v616_v33 = vunpack.c.h.bf16 %v626_v55  ;;  %v441_v55 = vld [vmem:[%s757_s7 + $0x10] sm:$0xf] }
  0x22   : > { %v419_v18 = vpack.c.bf16 %v412_v19, %v412_v19  ;;  %v420_v26 = vpack.c.bf16 %v413_v21, %v413_v21  ;;  %v414_v30 = vmax.f32 %v404_v24, %v335_v41  ;;  %v324_v34 = vmax.f32 %v575_v17, %v591_v27 }
  0x23   : > { %v399_v37 = vmax.f32 %v392_v29, %v572_v58  ;;  %v338_v38 = vrot.slane %v575_v17, 1  ;;  %v415_v41 = vmax.f32 %v405_v32, %v336_v50  ;;  %v365_v42 = vmax.f32 %v358_v28, %v616_v33 }
  0x24   : > { %v430_v31 = vsel %vm771_vm2, %v419_v18, %v429_v20  ;;  %v433_v35 = vsel %vm771_vm2, %v420_v26, %v432_v23  ;;  %v421_v40 = vpack.c.bf16 %v414_v30, %v414_v30  ;;  %v379_v43 = vrot.slane %v604_v63, 1 }
  0x25   : > { %431 = vst [vmem:[%s757_s7] sm:$0xf] %v430_v31  ;;  %434 = vst [vmem:[%s757_s7 + $0x4] sm:$0xf] %v433_v35  ;;  %v406_v45 = vmax.f32 %v399_v37, %v588_v59  ;;  %v352_v46 = vmax.f32 %v324_v34, %v338_v38  ;;  %v422_v48 = vpack.c.bf16 %v415_v41, %v415_v41  ;;  %v317_v51 = vunpack.c.l.bf16 %v310_v39 }
  0x26   : > { %v436_v47 = vsel %vm771_vm2, %v421_v40, %v435_v36  ;;  %v393_v49 = vmax.f32 %v365_v42, %v379_v43  ;;  %v380_v54 = vrot.slane %v303_v4, 1  ;;  %v576_v58 = vunpack.c.h.bf16 %v752_v0 }
  0x27   : > { %437 = vst [vmem:[%s757_s7 + $0x8] sm:$0xf] %v436_v47  ;;  %v416_v52 = vmax.f32 %v406_v45, %v337_v11  ;;  %v359_v53 = vmax.f32 %v352_v46, %v303_v4  ;;  %v439_v50 = vsel %vm771_vm2, %v422_v48, %v438_v44  ;;  %v592_v62 = vunpack.c.h.bf16 %v762_v12  ;;  %v447_v11 = vld [vmem:[%s757_s7 + $0x18] sm:$0xf] }
  0x28   : > { %v400_v56 = vmax.f32 %v393_v49, %v575_v17  ;;  %440 = vst [vmem:[%s757_s7 + $0xc] sm:$0xf] %v439_v50  ;;  %v410_v7 = vrot.slane %v576_v58, 1 }
  0x29   : > { %v423_v57 = vpack.c.bf16 %v416_v52, %v416_v52  ;;  %v366_v59 = vmax.f32 %v359_v53, %v317_v51 }
  0x2a   : > { %v407_v60 = vmax.f32 %v400_v56, %v591_v27 }
  0x2b   : > { %v442_v61 = vsel %vm771_vm2, %v423_v57, %v441_v55  ;;  %v394_v63 = vmax.f32 %v366_v59, %v380_v54 }
  0x2c   : > { %443 = vst [vmem:[%s757_s7 + $0x10] sm:$0xf] %v442_v61  ;;  %v417_v2 = vmax.f32 %v407_v60, %v338_v38 }
  0x2d   : > { %v401_v5 = vmax.f32 %v394_v63, %v576_v58 }
  0x2e   : > { %v424_v8 = vpack.c.bf16 %v417_v2, %v417_v2 }
  0x2f   : > { %v408_v9 = vmax.f32 %v401_v5, %v592_v62 }
  0x30   : > { %v445_v0 = vsel %vm771_vm2, %v424_v8, %v444_v3 }
  0x31   : > { %446 = vst [vmem:[%s757_s7 + $0x14] sm:$0xf] %v445_v0  ;;  %v418_v10 = vmax.f32 %v408_v9, %v410_v7 }
  0x33   : > { %v425_v13 = vpack.c.bf16 %v418_v10, %v418_v10 }
  0x35   : > { %v448_v14 = vsel %vm771_vm2, %v425_v13, %v447_v11 }
  0x36   : > { %449 = vst [vmem:[%s757_s7 + $0x18] sm:$0xf] %v448_v14 }
  0x37 PF: > { %s14_s15 = sadd.s32 1, %s642_s15  }
  0x38   : > { %p11_p4 = scmp.ge.s32.totalorder %s14_s15, 4  }
  0x3a   :  { %13 = sbr.rel (!%p11_p4) target bundleno = 1 (0x1), region = 75 }

// kernel: network_forward.37
= control target key start
LH: loop header
LB: loop body
LE: loop exit
PB: predicated region body
PF: predicated region fallthrough
CT: control target
= control target key end

     0   :  { %s685_s18 = smov 0   ;;  %s748_s0 = inlined_call_operand.vmem [shape: bf16[112,128], index: 0, kind: input, shape index: {}]   ;;  %s749_s1 = inlined_call_operand.vmem [shape: bf16[128,128], index: 1, kind: input, shape index: {}]   ;;  %s750_s2 = inlined_call_operand.vmem [shape: f32[1,128], index: 2, kind: input, shape index: {}]   ;;  %s751_s3 = inlined_call_operand.vmem [shape: f32[1,128], index: 3, kind: input, shape index: {}, may-alias: {3,4}]   ;;  %s752_s4 = inlined_call_operand.vmem [shape: f32[1,128], index: 4, kind: input, shape index: {}, may-alias: {3,4}]   ;;  %s753_s5 = inlined_call_operand.vmem [shape: bf16[112,128], index: 5, kind: output, shape index: {}]  }
   0x1 LB: > { %s520_s19 = sadd.s32 4294967295, %s653_s18   ;;  %p524_p0 = scmp.ge.s32.totalorder %s653_s18, 1  ;;  %s653_s18 = sphi %s685_s18, %s15_s18  }
   0x2   : > { %p188_p1 = scmp.lt.s32.totalorder %s653_s18, 3 }
   0x4   : > { %p189_p2 = pnand %p524_p0, %p188_p1 }
   0x5   : > { %s216_s22 = smul.u32 (!%p189_p2), 7, %s520_s19 }
   0x6   : > { %192 = sbr.rel (%p189_p2) target bundleno = 252 (0xfc), region = 40 }
   0x7   : > { %p217_p3 = scmp.lt.s32.totalorder (!%p189_p2), %s216_s22, 13 }
   0xb   : > { %v635_v0 = vld [vmem:[%s749_s1 + $0x38] sm:$0xff]   ;;  %v636_v1 = vld [vmem:[%s749_s1 + $0x30] sm:$0xff]   ;;  %v637_v2 = vld [vmem:[%s749_s1 + $0x28] sm:$0xff]   ;;  %s755_s22 = smov (!%p217_p3, %s216_s22), 13 }
   0xc   : > { %587 = vmatprep.subr.bf16.mxu0 %v635_v0  ;;  %611 = vmatprep.subr.bf16.mxu1 %v635_v0  ;;  %s525_s27 = sshll.u32 %s755_s22, 2  ;;  %v638_v3 = vld [vmem:[%s749_s1 + $0x20] sm:$0xff]   ;;  %v639_v6 = vld [vmem:[%s749_s1 + $0x18] sm:$0xff]   ;;  %v640_v7 = vld [vmem:[%s749_s1 + $0x10] sm:$0xff]  }
   0xd   : > { %588 = vmatpush3.bf16.msra.mxu0 %v635_v0  ;;  %619 = vmatpush3.bf16.msra.mxu1 %v635_v0  ;;  %s713_s7 = scalar_lea.vmem %s748_s0, %s525_s27  ;;  %v641_v8 = vld [vmem:[%s749_s1 + $0x8] sm:$0xff]   ;;  %v642_v9 = vld [vmem:[%s749_s1] sm:$0xff]   ;;  %s226_s26 = scalar_lea.vmem %s753_s5, %s525_s27 }
   0xe   : > { %589 = vmatprep.subr.bf16.mxu0 %v636_v1  ;;  %612 = vmatprep.subr.bf16.mxu1 %v636_v1  ;;  %v643_v4 = vld [vmem:[%s713_s7] sm:$0xff]   ;;  %v644_v5 = vld [vmem:[%s713_s7 + $0x10] sm:$0xff]   ;;  %v645_v10 = vld [vmem:[%s713_s7 + $0x8] sm:$0xff]  }
   0xf   : > { %603 = vmatprep.mubr.bf16.mxu0 %v643_v4  ;;  %607 = vmatprep.mubr.bf16.mxu1 %v644_v5  ;;  %v646_v11 = vld [vmem:[%s713_s7 + $0x18] ss:$0 sps:$4 sm:$0xff]   ;;  %v539_v12 = vld [vmem:[%s750_s2] ss:$0 sm:$0xff] }
  0x10   : > { %v540_v14 = vld [vmem:[%s751_s3] ss:$0 sm:$0xff] }
  0x11   : > { %590 = vmatpush3.bf16.msra.mxu0 %v636_v1  ;;  %620 = vmatpush3.bf16.msra.mxu1 %v636_v1  ;;  %v541_v18 = vld [vmem:[%s752_s4] ss:$0 sm:$0xff] }
  0x12   : > { %591 = vmatprep.subr.bf16.mxu0 %v637_v2  ;;  %613 = vmatprep.subr.bf16.mxu1 %v637_v2 }
  0x15   : > { %592 = vmatpush3.bf16.msra.mxu0 %v637_v2  ;;  %621 = vmatpush3.bf16.msra.mxu1 %v637_v2 }
  0x16   : > { %593 = vmatprep.subr.bf16.mxu0 %v638_v3  ;;  %614 = vmatprep.subr.bf16.mxu1 %v638_v3 }
  0x19   : > { %594 = vmatpush3.bf16.msra.mxu0 %v638_v3  ;;  %622 = vmatpush3.bf16.msra.mxu1 %v638_v3 }
  0x1a   : > { %595 = vmatprep.subr.bf16.mxu0 %v639_v6  ;;  %615 = vmatprep.subr.bf16.mxu1 %v639_v6 }
  0x1d   : > { %596 = vmatpush3.bf16.msra.mxu0 %v639_v6  ;;  %623 = vmatpush3.bf16.msra.mxu1 %v639_v6 }
  0x1e   : > { %597 = vmatprep.subr.bf16.mxu0 %v640_v7  ;;  %616 = vmatprep.subr.bf16.mxu1 %v640_v7 }
  0x21   : > { %598 = vmatpush3.bf16.msra.mxu0 %v640_v7  ;;  %624 = vmatpush3.bf16.msra.mxu1 %v640_v7 }
  0x22   : > { %599 = vmatprep.subr.bf16.mxu0 %v641_v8  ;;  %617 = vmatprep.subr.bf16.mxu1 %v641_v8 }
  0x25   : > { %600 = vmatpush3.bf16.msra.mxu0 %v641_v8  ;;  %625 = vmatpush3.bf16.msra.mxu1 %v641_v8 }
  0x26   : > { %601 = vmatprep.subr.bf16.mxu0 %v642_v9  ;;  %618 = vmatprep.subr.bf16.mxu1 %v642_v9 }
  0x29   : > { %602 = vmatpush3.bf16.msra.mxu0 %v642_v9  ;;  %626 = vmatpush3.bf16.msra.mxu1 %v642_v9 }
  0x2c   : > { %604 = vmatmul.mubr.bf16.vlgmr.msra.gmra.mxu0 %v645_v10  ;;  %608 = vmatmul.mubr.bf16.vlgmr.msra.gmra.mxu1 %v646_v11 }
  0xec   : > { %v605_v13 = vpop.f32.mrf.mxu0  ;;  %v609_v15 = vpop.f32.mrf.mxu1 }
  0xed   : > { %v399_v16 = vmul.f32 %v609_v15, %v539_v12  ;;  %v395_v17 = vmul.f32 %v605_v13, %v539_v12 }
  0xee   : > { %v356_v19 = vpop.f32.mrf.mxu0  ;;  %v372_v20 = vpop.f32.mrf.mxu1 }
  0xef   : > { %v413_v21 = vadd.f32 %v540_v14, %v399_v16  ;;  %v393_v22 = vmul.f32 %v539_v12, %v356_v19  ;;  %v397_v23 = vmul.f32 %v539_v12, %v372_v20  ;;  %v409_v27 = vadd.f32 %v540_v14, %v395_v17 }
  0xf0   : > { %v606_v24 = vpop.f32.mrf.mxu0  ;;  %v610_v25 = vpop.f32.mrf.mxu1 }
  0xf1   : > { %v427_v26 = vmax.f32 %v413_v21, %v541_v18  ;;  %v396_v28 = vmul.f32 %v606_v24, %v539_v12  ;;  %v407_v32 = vadd.f32 %v540_v14, %v393_v22  ;;  %v411_v34 = vadd.f32 %v540_v14, %v397_v23 }
  0xf2   : > { %v359_v29 = vpop.f32.mrf.mxu0  ;;  %v375_v30 = vpop.f32.mrf.mxu1  ;;  %v423_v38 = vmax.f32 %v409_v27, %v541_v18 }
  0xf3   : > { %v557_v31 = vpack.c.bf16 %v427_v26, %v427_v26  ;;  %v394_v33 = vmul.f32 %v539_v12, %v359_v29  ;;  %v410_v35 = vadd.f32 %v540_v14, %v396_v28  ;;  %v398_v36 = vmul.f32 %v539_v12, %v375_v30 }
  0xf4   : > { %v421_v41 = vmax.f32 %v407_v32, %v541_v18  ;;  %v425_v43 = vmax.f32 %v411_v34, %v541_v18 }
  0xf5   : > { %463 = vst [vmem:[%s226_s26 + $0x18] sm:$0xf] %v557_v31  ;;  %v408_v37 = vadd.f32 %v540_v14, %v394_v33  ;;  %v424_v39 = vmax.f32 %v410_v35, %v541_v18  ;;  %v412_v40 = vadd.f32 %v540_v14, %v398_v36 }
  0xf7   : > { %v422_v42 = vmax.f32 %v408_v37, %v541_v18  ;;  %v566_v44 = vpack.c.bf16 %v424_v39, %v423_v38  ;;  %v426_v45 = vmax.f32 %v412_v40, %v541_v18 }
  0xf9   : > { %v561_v46 = vpack.c.bf16 %v422_v42, %v421_v41  ;;  %573 = vst [vmem:[%s226_s26 + $0x8] sm:$0xff] %v566_v44   ;;  %v571_v47 = vpack.c.bf16 %v426_v45, %v425_v43 }
  0xfb   : > { %562 = vst [vmem:[%s226_s26] sm:$0xff] %v561_v46   ;;  %574 = vst [vmem:[%s226_s26 + $0x10] sm:$0xff] %v571_v47  }
  0xfc PF: > { %s15_s18 = sadd.s32 1, %s653_s18  }
  0xfd   : > { %p12_p4 = scmp.ge.s32.totalorder %s15_s18, 4  }
  0xff   :  { %14 = sbr.rel (!%p12_p4) target bundleno = 1 (0x1), region = 70 }

// kernel: network_forward.38
= control target key start
LH: loop header
LB: loop body
LE: loop exit
PB: predicated region body
PF: predicated region fallthrough
CT: control target
= control target key end

     0   :  { %s747_s18 = smov 0   ;;  %s808_s0 = inlined_call_operand.vmem [shape: bf16[112,128], index: 0, kind: input, shape index: {}]   ;;  %s809_s1 = inlined_call_operand.vmem [shape: bf16[128,128], index: 1, kind: input, shape index: {}]   ;;  %s810_s2 = inlined_call_operand.vmem [shape: f32[1,128], index: 2, kind: input, shape index: {}]   ;;  %s811_s3 = inlined_call_operand.vmem [shape: f32[1,128], index: 3, kind: input, shape index: {}]   ;;  %s812_s4 = inlined_call_operand.vmem [shape: bf16[112,128], index: 4, kind: input, shape index: {}]   ;;  %s813_s5 = inlined_call_operand.vmem [shape: bf16[112,128], index: 5, kind: output, shape index: {}]  }
   0x1 LB: > { %s568_s19 = sadd.s32 4294967295, %s715_s18   ;;  %p572_p0 = scmp.ge.s32.totalorder %s715_s18, 1  ;;  %s715_s18 = sphi %s747_s18, %s15_s18  }
   0x2   : > { %p199_p1 = scmp.lt.s32.totalorder %s715_s18, 3 }
   0x4   : > { %p200_p2 = pnand %p572_p0, %p199_p1 }
   0x5   : > { %s232_s22 = smul.u32 (!%p200_p2), 7, %s568_s19 }
   0x6   : > { %203 = sbr.rel (%p200_p2) target bundleno = 254 (0xfe), region = 40 }
   0x7   : > { %p233_p3 = scmp.lt.s32.totalorder (!%p200_p2), %s232_s22, 13 }
   0xb   : > { %v697_v0 = vld [vmem:[%s809_s1 + $0x38] sm:$0xff]   ;;  %v698_v1 = vld [vmem:[%s809_s1 + $0x30] sm:$0xff]   ;;  %v699_v2 = vld [vmem:[%s809_s1 + $0x28] sm:$0xff]   ;;  %s815_s22 = smov (!%p233_p3, %s232_s22), 13 }
   0xc   : > { %649 = vmatprep.subr.bf16.mxu0 %v697_v0  ;;  %673 = vmatprep.subr.bf16.mxu1 %v697_v0  ;;  %s764_s27 = sshll.u32 %s815_s22, 2  ;;  %v700_v3 = vld [vmem:[%s809_s1 + $0x20] sm:$0xff]   ;;  %v701_v6 = vld [vmem:[%s809_s1 + $0x18] sm:$0xff]   ;;  %v702_v7 = vld [vmem:[%s809_s1 + $0x10] sm:$0xff]  }
   0xd   : > { %650 = vmatpush3.bf16.msra.mxu0 %v697_v0  ;;  %681 = vmatpush3.bf16.msra.mxu1 %v697_v0  ;;  %s773_s7 = scalar_lea.vmem %s808_s0, %s764_s27  ;;  %v703_v8 = vld [vmem:[%s809_s1 + $0x8] sm:$0xff]   ;;  %v704_v9 = vld [vmem:[%s809_s1] sm:$0xff]   ;;  %s242_s19 = scalar_lea.vmem %s812_s4, %s764_s27 }
   0xe   : > { %651 = vmatprep.subr.bf16.mxu0 %v698_v1  ;;  %674 = vmatprep.subr.bf16.mxu1 %v698_v1  ;;  %v705_v4 = vld [vmem:[%s773_s7] sm:$0xff]   ;;  %v706_v5 = vld [vmem:[%s773_s7 + $0x10] sm:$0xff]   ;;  %v707_v10 = vld [vmem:[%s773_s7 + $0x8] sm:$0xff]   ;;  %s248_s26 = scalar_lea.vmem %s813_s5, %s764_s27 }
   0xf   : > { %665 = vmatprep.mubr.bf16.mxu0 %v705_v4  ;;  %669 = vmatprep.mubr.bf16.mxu1 %v706_v5  ;;  %v708_v11 = vld [vmem:[%s773_s7 + $0x18] ss:$0 sps:$4 sm:$0xff]   ;;  %v588_v12 = vld [vmem:[%s810_s2] ss:$0 sm:$0xff]  ;;  %v633_v18 = vld [vmem:[%s242_s19 + $0x8] sm:$0xff]  }
  0x10   : > { %v442_v13 = vld [vmem:[%s242_s19 + $0x18] sm:$0xf]  ;;  %v589_v15 = vld [vmem:[%s811_s3] ss:$0 sm:$0xff]  ;;  %v634_v27 = vld [vmem:[%s242_s19 + $0x10] sm:$0xff]   ;;  %v612_v29 = vunpack.c.l.bf16 %v633_v18  ;;  %v613_v38 = vunpack.c.h.bf16 %v633_v18 }
  0x11   : > { %652 = vmatpush3.bf16.msra.mxu0 %v698_v1  ;;  %682 = vmatpush3.bf16.msra.mxu1 %v698_v1  ;;  %v449_v20 = vunpack.c.l.bf16 %v442_v13  ;;  %v607_v22 = vld [vmem:[%s242_s19] sm:$0xff]   ;;  %v616_v36 = vunpack.c.l.bf16 %v634_v27  ;;  %v617_v43 = vunpack.c.h.bf16 %v634_v27 }
  0x12   : > { %653 = vmatprep.subr.bf16.mxu0 %v699_v2  ;;  %675 = vmatprep.subr.bf16.mxu1 %v699_v2  ;;  %v608_v34 = vunpack.c.l.bf16 %v607_v22  ;;  %v609_v42 = vunpack.c.h.bf16 %v607_v22 }
  0x15   : > { %654 = vmatpush3.bf16.msra.mxu0 %v699_v2  ;;  %683 = vmatpush3.bf16.msra.mxu1 %v699_v2 }
  0x16   : > { %655 = vmatprep.subr.bf16.mxu0 %v700_v3  ;;  %676 = vmatprep.subr.bf16.mxu1 %v700_v3 }
  0x19   : > { %656 = vmatpush3.bf16.msra.mxu0 %v700_v3  ;;  %684 = vmatpush3.bf16.msra.mxu1 %v700_v3 }
  0x1a   : > { %657 = vmatprep.subr.bf16.mxu0 %v701_v6  ;;  %677 = vmatprep.subr.bf16.mxu1 %v701_v6 }
  0x1d   : > { %658 = vmatpush3.bf16.msra.mxu0 %v701_v6  ;;  %685 = vmatpush3.bf16.msra.mxu1 %v701_v6 }
  0x1e   : > { %659 = vmatprep.subr.bf16.mxu0 %v702_v7  ;;  %678 = vmatprep.subr.bf16.mxu1 %v702_v7 }
  0x21   : > { %660 = vmatpush3.bf16.msra.mxu0 %v702_v7  ;;  %686 = vmatpush3.bf16.msra.mxu1 %v702_v7 }
  0x22   : > { %661 = vmatprep.subr.bf16.mxu0 %v703_v8  ;;  %679 = vmatprep.subr.bf16.mxu1 %v703_v8 }
  0x25   : > { %662 = vmatpush3.bf16.msra.mxu0 %v703_v8  ;;  %687 = vmatpush3.bf16.msra.mxu1 %v703_v8 }
  0x26   : > { %663 = vmatprep.subr.bf16.mxu0 %v704_v9  ;;  %680 = vmatprep.subr.bf16.mxu1 %v704_v9 }
  0x29   : > { %664 = vmatpush3.bf16.msra.mxu0 %v704_v9  ;;  %688 = vmatpush3.bf16.msra.mxu1 %v704_v9 }
  0x2c   : > { %666 = vmatmul.mubr.bf16.vlgmr.msra.gmra.mxu0 %v707_v10  ;;  %670 = vmatmul.mubr.bf16.vlgmr.msra.gmra.mxu1 %v708_v11 }
  0xec   : > { %v667_v14 = vpop.f32.mrf.mxu0  ;;  %v671_v16 = vpop.f32.mrf.mxu1 }
  0xed   : > { %v417_v17 = vmul.f32 %v667_v14, %v588_v12  ;;  %v421_v19 = vmul.f32 %v671_v16, %v588_v12 }
  0xee   : > { %v378_v21 = vpop.f32.mrf.mxu0  ;;  %v394_v23 = vpop.f32.mrf.mxu1 }
  0xef   : > { %v435_v24 = vadd.f32 %v589_v15, %v421_v19  ;;  %v415_v25 = vmul.f32 %v588_v12, %v378_v21  ;;  %v419_v26 = vmul.f32 %v588_v12, %v394_v23  ;;  %v431_v28 = vadd.f32 %v589_v15, %v417_v17 }
  0xf0   : > { %v668_v30 = vpop.f32.mrf.mxu0  ;;  %v672_v31 = vpop.f32.mrf.mxu1 }
  0xf1   : > { %v456_v32 = vadd.f32 %v449_v20, %v435_v24  ;;  %v429_v33 = vadd.f32 %v589_v15, %v415_v25  ;;  %v433_v35 = vadd.f32 %v589_v15, %v419_v26  ;;  %v418_v37 = vmul.f32 %v668_v30, %v588_v12 }
  0xf2   : > { %v381_v39 = vpop.f32.mrf.mxu0  ;;  %v397_v40 = vpop.f32.mrf.mxu1  ;;  %v452_v44 = vadd.f32 %v612_v29, %v431_v28 }
  0xf3   : > { %v463_v41 = vmax.f32 %v456_v32, 0.0  ;;  %v432_v45 = vadd.f32 %v589_v15, %v418_v37  ;;  %v416_v46 = vmul.f32 %v588_v12, %v381_v39  ;;  %v420_v47 = vmul.f32 %v588_v12, %v397_v40 }
  0xf4   : > { %v450_v49 = vadd.f32 %v608_v34, %v429_v33  ;;  %v454_v50 = vadd.f32 %v616_v36, %v433_v35  ;;  %v459_v54 = vmax.f32 %v452_v44, 0.0 }
  0xf5   : > { %v605_v48 = vpack.c.bf16 %v463_v41, %v463_v41  ;;  %v453_v51 = vadd.f32 %v613_v38, %v432_v45  ;;  %v430_v52 = vadd.f32 %v589_v15, %v416_v46  ;;  %v434_v53 = vadd.f32 %v589_v15, %v420_v47 }
  0xf6   : > { %v457_v58 = vmax.f32 %v450_v49, 0.0  ;;  %v461_v59 = vmax.f32 %v454_v50, 0.0 }
  0xf7   : > { %499 = vst [vmem:[%s248_s26 + $0x18] sm:$0xf] %v605_v48  ;;  %v460_v55 = vmax.f32 %v453_v51, 0.0  ;;  %v451_v56 = vadd.f32 %v609_v42, %v430_v52  ;;  %v455_v57 = vadd.f32 %v617_v43, %v434_v53 }
  0xf9   : > { %v626_v60 = vpack.c.bf16 %v460_v55, %v459_v54  ;;  %v458_v61 = vmax.f32 %v451_v56, 0.0  ;;  %v462_v62 = vmax.f32 %v455_v57, 0.0 }
  0xfb   : > { %635 = vst [vmem:[%s248_s26 + $0x8] sm:$0xff] %v626_v60   ;;  %v621_v63 = vpack.c.bf16 %v458_v61, %v457_v58  ;;  %v631_v0 = vpack.c.bf16 %v462_v62, %v461_v59 }
  0xfd   : > { %622 = vst [vmem:[%s248_s26] sm:$0xff] %v621_v63   ;;  %636 = vst [vmem:[%s248_s26 + $0x10] sm:$0xff] %v631_v0  }
  0xfe PF: > { %s15_s18 = sadd.s32 1, %s715_s18  }
  0xff   : > { %p12_p4 = scmp.ge.s32.totalorder %s15_s18, 4  }
 0x101   :  { %14 = sbr.rel (!%p12_p4) target bundleno = 1 (0x1), region = 73 }

// kernel: network_forward.43
= control target key start
LH: loop header
LB: loop body
LE: loop exit
PB: predicated region body
PF: predicated region fallthrough
CT: control target
= control target key end

     0   :  { %s605_s18 = smov 0   ;;  %s683_s0 = inlined_call_operand.vmem [shape: bf16[32,128], index: 0, kind: input, shape index: {}]   ;;  %s684_s1 = inlined_call_operand.vmem [shape: bf16[128,256], index: 1, kind: input, shape index: {}]   ;;  %s685_s2 = inlined_call_operand.vmem [shape: f32[1,256], index: 2, kind: input, shape index: {}]   ;;  %s686_s3 = inlined_call_operand.vmem [shape: f32[1,256], index: 3, kind: input, shape index: {}]   ;;  %s687_s4 = inlined_call_operand.vmem [shape: f32[1,256], index: 4, kind: input, shape index: {}]   ;;  %s688_s5 = inlined_call_operand.vmem [shape: bf16[32,256], index: 5, kind: output, shape index: {}]  }
   0x1 LB: > { %s498_s19 = sadd.s32 4294967295, %s572_s18   ;;  %p502_p0 = scmp.ge.s32.totalorder %s572_s18, 1  ;;  %s572_s18 = sphi %s605_s18, %s15_s18  }
   0x2   : > { %p188_p1 = scmp.lt.s32.totalorder %s572_s18, 3 }
   0x4   : > { %p189_p2 = pnand %p502_p0, %p188_p1 }
   0x5   : > { %s503_s22 = sshll.u32 (!%p189_p2), %s498_s19, 1 }
   0x6   : > { %192 = sbr.rel (%p189_p2) target bundleno = 252 (0xfc), region = 40  ;;  %p218_p3 = scmp.lt.s32.totalorder (!%p189_p2), %s503_s22, 3 }
   0xb   : > { %v541_v0 = vld [vmem:[%s684_s1 + $0x74] ss:$8 sps:$4 sm:$0xff]   ;;  %v543_v1 = vld [vmem:[%s684_s1 + $0x70] ss:$8 sps:$4 sm:$0xff]   ;;  %v574_v2 = vmov 0   ;;  %s690_s22 = smov (!%p218_p3, %s503_s22), 3  ;;  %v380_v18 = vlaneseq }
   0xc   : > { %367 = vmatprep.mubr.bf16.mxu0 %v574_v2  ;;  %335 = vmatprep.subr.bf16.mxu0 %v541_v0  ;;  %v544_v3 = vld [vmem:[%s684_s1 + $0x64] ss:$8 sps:$4 sm:$0xff]   ;;  %v546_v4 = vld [vmem:[%s684_s1 + $0x60] ss:$8 sps:$4 sm:$0xff]   ;;  %v547_v5 = vld [vmem:[%s684_s1 + $0x54] ss:$8 sps:$4 sm:$0xff]  }
   0xd   : > { %336 = vmatpush1.bf16.msra.mxu0 %v543_v1  ;;  %s504_s6 = sshll.u32 %s690_s22, 2  ;;  %v549_v6 = vld [vmem:[%s684_s1 + $0x50] ss:$8 sps:$4 sm:$0xff]   ;;  %v550_v7 = vld [vmem:[%s684_s1 + $0x44] ss:$8 sps:$4 sm:$0xff]   ;;  %v381_v19 = vshrl.u32 %v380_v18, 7 }
   0xe   : > { %337 = vmatprep.subr.bf16.mxu0 %v544_v3  ;;  %s221_s13 = scalar_lea.vmem %s683_s0, %s504_s6  ;;  %v552_v8 = vld [vmem:[%s684_s1 + $0x40] ss:$8 sps:$4 sm:$0xff]   ;;  %v553_v9 = vld [vmem:[%s684_s1 + $0x34] ss:$8 sps:$4 sm:$0xff]   ;;  %v555_v10 = vld [vmem:[%s684_s1 + $0x30] ss:$8 sps:$4 sm:$0xff]  }
   0xf   : > { %v556_v11 = vld [vmem:[%s684_s1 + $0x24] ss:$8 sps:$4 sm:$0xff]   ;;  %v558_v12 = vld [vmem:[%s684_s1 + $0x20] ss:$8 sps:$4 sm:$0xff]   ;;  %v559_v13 = vld [vmem:[%s684_s1 + $0x14] ss:$8 sps:$4 sm:$0xff]  }
  0x10   : > { %v561_v14 = vld [vmem:[%s684_s1 + $0x10] ss:$8 sps:$4 sm:$0xff]   ;;  %v562_v15 = vld [vmem:[%s684_s1 + $0x4] ss:$8 sps:$4 sm:$0xff]   ;;  %v564_v16 = vld [vmem:[%s684_s1] ss:$8 sps:$4 sm:$0xff]  }
  0x11   : > { %338 = vmatpush1.bf16.msra.mxu0 %v546_v4  ;;  %v565_v17 = vld [vmem:[%s221_s13] sm:$0xff]   ;;  %v382_v20 = vsub.s32 0, %v381_v19  ;;  %v386_v22 = vsub.s32 1, %v381_v19  ;;  %s529_s15 = sshll.u32 %s690_s22, 3 }
  0x12   : > { %339 = vmatprep.subr.bf16.mxu0 %v547_v5  ;;  %v378_v21 = vld [vmem:[%s685_s2] sm:$0x3]  ;;  %s228_s19 = scalar_lea.vmem %s688_s5, %s529_s15 }
  0x13   : > { %v394_v23 = vld [vmem:[%s686_s3] sm:$0x3]  ;;  %v383_v24 = vrot.slane %v378_v21, %v382_v20  ;;  %v387_v26 = vrot.slane %v378_v21, %v386_v22 }
  0x14   : > { %v399_v25 = vrot.slane %v394_v23, %v382_v20  ;;  %v410_v28 = vld [vmem:[%s687_s4] sm:$0x3]  ;;  %v403_v30 = vrot.slane %v394_v23, %v386_v22 }
  0x15   : > { %340 = vmatpush1.bf16.msra.mxu0 %v549_v6  ;;  %v415_v33 = vrot.slane %v410_v28, %v382_v20  ;;  %v419_v35 = vrot.slane %v410_v28, %v386_v22 }
  0x16   : > { %341 = vmatprep.subr.bf16.mxu0 %v550_v7 }
  0x19   : > { %342 = vmatpush1.bf16.msra.mxu0 %v552_v8 }
  0x1a   : > { %343 = vmatprep.subr.bf16.mxu0 %v553_v9 }
  0x1d   : > { %344 = vmatpush1.bf16.msra.mxu0 %v555_v10 }
  0x1e   : > { %345 = vmatprep.subr.bf16.mxu0 %v556_v11 }
  0x21   : > { %346 = vmatpush1.bf16.msra.mxu0 %v558_v12 }
  0x22   : > { %347 = vmatprep.subr.bf16.mxu0 %v559_v13 }
  0x25   : > { %348 = vmatpush1.bf16.msra.mxu0 %v561_v14 }
  0x26   : > { %349 = vmatprep.subr.bf16.mxu0 %v562_v15 }
  0x29   : > { %350 = vmatpush1.bf16.msra.mxu0 %v564_v16 }
  0x2c   : > { %368 = vmatmul.mubr.bf16.vlgmr.msra.gmra.mxu0 %v565_v17 }
  0xec   : > { %v369_v27 = vpop.f32.mrf.mxu0 }
  0xed   : > { %v390_v29 = vmul.f32 %v383_v24, %v369_v27 }
  0xee   : > { %v371_v31 = vpop.f32.mrf.mxu0 }
  0xef   : > { %v406_v32 = vadd.f32 %v399_v25, %v390_v29  ;;  %v391_v34 = vmul.f32 %v387_v26, %v371_v31 }
  0xf0   : > { %v373_v36 = vpop.f32.mrf.mxu0 }
  0xf1   : > { %v407_v37 = vadd.f32 %v403_v30, %v391_v34  ;;  %v392_v38 = vmul.f32 %v383_v24, %v373_v36  ;;  %v422_v40 = vmax.f32 %v406_v32, %v415_v33 }
  0xf2   : > { %v375_v39 = vpop.f32.mrf.mxu0 }
  0xf3   : > { %v423_v41 = vmax.f32 %v407_v37, %v419_v35  ;;  %v408_v42 = vadd.f32 %v399_v25, %v392_v38  ;;  %v393_v43 = vmul.f32 %v387_v26, %v375_v39 }
  0xf5   : > { %v530_v44 = vpack.c.bf16 %v423_v41, %v422_v40  ;;  %v409_v45 = vadd.f32 %v403_v30, %v393_v43  ;;  %v424_v46 = vmax.f32 %v408_v42, %v415_v33 }
  0xf7   : > { %438 = vst [vmem:[%s228_s19] sm:$0xff] %v530_v44  ;;  %v425_v47 = vmax.f32 %v409_v45, %v419_v35 }
  0xf9   : > { %v531_v48 = vpack.c.bf16 %v425_v47, %v424_v46 }
  0xfb   : > { %439 = vst [vmem:[%s228_s19 + $0x8] sm:$0xff] %v531_v48 }
  0xfc PF: > { %s15_s18 = sadd.s32 1, %s572_s18  }
  0xfd   : > { %p12_p4 = scmp.ge.s32.totalorder %s15_s18, 4  }
  0xff   :  { %14 = sbr.rel (!%p12_p4) target bundleno = 1 (0x1), region = 70 }

// kernel: network_forward.44
= control target key start
LH: loop header
LB: loop body
LE: loop exit
PB: predicated region body
PF: predicated region fallthrough
CT: control target
= control target key end

     0   :  { %s674_s18 = smov 0   ;;  %s752_s0 = inlined_call_operand.vmem [shape: bf16[32,256], index: 0, kind: input, shape index: {}]   ;;  %s753_s1 = inlined_call_operand.vmem [shape: bf16[256,128], index: 1, kind: input, shape index: {}]   ;;  %s754_s2 = inlined_call_operand.vmem [shape: f32[1,128], index: 2, kind: input, shape index: {}]   ;;  %s755_s3 = inlined_call_operand.vmem [shape: f32[1,128], index: 3, kind: input, shape index: {}]   ;;  %s756_s4 = inlined_call_operand.vmem [shape: bf16[32,128], index: 4, kind: input, shape index: {}]   ;;  %s757_s5 = inlined_call_operand.vmem [shape: bf16[32,128], index: 5, kind: output, shape index: {}]  }
   0x1 LB: > { %s539_s19 = sadd.s32 4294967295, %s642_s18   ;;  %p543_p0 = scmp.ge.s32.totalorder %s642_s18, 1  ;;  %s642_s18 = sphi %s674_s18, %s15_s18  }
   0x2   : > { %p200_p1 = scmp.lt.s32.totalorder %s642_s18, 3 }
   0x4   : > { %p201_p2 = pnand %p543_p0, %p200_p1 }
   0x5   : > { %s544_s22 = sshll.u32 (!%p201_p2), %s539_s19, 1 }
   0x6   : > { %204 = sbr.rel (%p201_p2) target bundleno = 256 (0x100), region = 40  ;;  %p235_p3 = scmp.lt.s32.totalorder (!%p201_p2), %s544_s22, 3 }
   0xb   : > { %v617_v0 = vld [vmem:[%s753_s1 + $0x78] sm:$0xff]   ;;  %v619_v2 = vld [vmem:[%s753_s1 + $0x70] sm:$0xff]   ;;  %v621_v4 = vld [vmem:[%s753_s1 + $0x68] sm:$0xff]   ;;  %s759_s22 = smov (!%p235_p3, %s544_s22), 3 }
   0xc   : > { %v618_v1 = vld [vmem:[%s753_s1 + $0x38] sm:$0xff]   ;;  %587 = vmatprep.subr.bf16.mxu0 %v617_v0  ;;  %v620_v3 = vld [vmem:[%s753_s1 + $0x30] sm:$0xff]   ;;  %v622_v5 = vld [vmem:[%s753_s1 + $0x28] sm:$0xff]   ;;  %s575_s12 = sshll.u32 %s759_s22, 3  ;;  %s548_s9 = sshll.u32 %s759_s22, 2 }
   0xd   : > { %588 = vmatpush3.bf16.msra.mxu0 %v618_v1  ;;  %v623_v6 = vld [vmem:[%s753_s1 + $0x60] sm:$0xff]   ;;  %v625_v8 = vld [vmem:[%s753_s1 + $0x58] sm:$0xff]   ;;  %s239_s17 = scalar_lea.vmem %s752_s0, %s575_s12  ;;  %v627_v10 = vld [vmem:[%s753_s1 + $0x50] sm:$0xff]   ;;  %s245_s12 = scalar_lea.vmem %s756_s4, %s548_s9 }
   0xe   : > { %589 = vmatprep.subr.bf16.mxu0 %v619_v2  ;;  %v624_v7 = vld [vmem:[%s753_s1 + $0x20] sm:$0xff]   ;;  %v626_v9 = vld [vmem:[%s753_s1 + $0x18] sm:$0xff]   ;;  %v628_v12 = vld [vmem:[%s753_s1 + $0x10] sm:$0xff]   ;;  %s251_s19 = scalar_lea.vmem %s757_s5, %s548_s9 }
   0xf   : > { %v635_v11 = vld [vmem:[%s239_s17 + $0x4] ss:$8 sps:$4 sm:$0xff]   ;;  %v633_v17 = vld [vmem:[%s239_s17] ss:$8 sps:$4 sm:$0xff]  }
  0x10   : > { %426 = vmatprep.mubr.bf16.mxu0 %v635_v11  ;;  %v629_v13 = vld [vmem:[%s753_s1 + $0x48] sm:$0xff]   ;;  %v631_v15 = vld [vmem:[%s753_s1 + $0x40] sm:$0xff]  }
  0x11   : > { %590 = vmatpush3.bf16.msra.mxu0 %v620_v3  ;;  %v630_v14 = vld [vmem:[%s753_s1 + $0x8] sm:$0xff]   ;;  %v632_v16 = vld [vmem:[%s753_s1] sm:$0xff]  }
  0x12   : > { %591 = vmatprep.subr.bf16.mxu0 %v621_v4  ;;  %v569_v20 = vld [vmem:[%s754_s2] ss:$0 sm:$0xff] }
  0x13   : > { %v579_v22 = vld [vmem:[%s245_s12] sm:$0xff]  }
  0x14   : > { %v570_v23 = vld [vmem:[%s755_s3] ss:$0 sm:$0xff]  ;;  %v580_v28 = vunpack.c.l.bf16 %v579_v22  ;;  %v581_v31 = vunpack.c.h.bf16 %v579_v22 }
  0x15   : > { %592 = vmatpush3.bf16.msra.mxu0 %v622_v5 }
  0x16   : > { %593 = vmatprep.subr.bf16.mxu0 %v623_v6 }
  0x19   : > { %594 = vmatpush3.bf16.msra.mxu0 %v624_v7 }
  0x1a   : > { %595 = vmatprep.subr.bf16.mxu0 %v625_v8 }
  0x1d   : > { %596 = vmatpush3.bf16.msra.mxu0 %v626_v9 }
  0x1e   : > { %597 = vmatprep.subr.bf16.mxu0 %v627_v10 }
  0x21   : > { %598 = vmatpush3.bf16.msra.mxu0 %v628_v12 }
  0x22   : > { %599 = vmatprep.subr.bf16.mxu0 %v629_v13 }
  0x25   : > { %600 = vmatpush3.bf16.msra.mxu0 %v630_v14 }
  0x26   : > { %601 = vmatprep.subr.bf16.mxu0 %v631_v15 }
  0x29   : > { %602 = vmatpush3.bf16.msra.mxu0 %v632_v16 }
  0x2c   : > { %427 = vmatmul.mubr.bf16.vlgmr.msra.gmra.mxu0 %v633_v17 }
  0xec   : > { %v603_v18 = vpop.f32.mrf.mxu0 }
  0xee   : > { %v604_v19 = vpop.f32.mrf.mxu0 }
  0xef   : > { %v605_v21 = vadd.f32 %v604_v19, %v603_v18 }
  0xf0   : > { %v606_v24 = vpop.f32.mrf.mxu0 }
  0xf1   : > { %v442_v25 = vmul.f32 %v605_v21, %v569_v20 }
  0xf2   : > { %v607_v26 = vpop.f32.mrf.mxu0 }
  0xf3   : > { %v451_v27 = vadd.f32 %v570_v23, %v442_v25  ;;  %v608_v29 = vadd.f32 %v607_v26, %v606_v24 }
  0xf5   : > { %v443_v30 = vmul.f32 %v608_v29, %v569_v20  ;;  %v457_v32 = vadd.f32 %v580_v28, %v451_v27 }
  0xf7   : > { %v452_v33 = vadd.f32 %v570_v23, %v443_v30  ;;  %v459_v35 = vmax.f32 %v457_v32, 0.0 }
  0xf9   : > { %v458_v34 = vadd.f32 %v581_v31, %v452_v33 }
  0xfb   : > { %v460_v36 = vmax.f32 %v458_v34, 0.0 }
  0xfd   : > { %v585_v37 = vpack.c.bf16 %v460_v36, %v459_v35 }
  0xff   : > { %586 = vst [vmem:[%s251_s19] sm:$0xff] %v585_v37  }
 0x100 PF: > { %s15_s18 = sadd.s32 1, %s642_s18  }
 0x101   : > { %p12_p4 = scmp.ge.s32.totalorder %s15_s18, 4  }
 0x103   :  { %14 = sbr.rel (!%p12_p4) target bundleno = 1 (0x1), region = 73 }

// kernel: network_forward.45
= control target key start
LH: loop header
LB: loop body
LE: loop exit
PB: predicated region body
PF: predicated region fallthrough
CT: control target
= control target key end

     0   :  { %s636_s18 = smov 0   ;;  %s714_s0 = inlined_call_operand.vmem [shape: bf16[32,256], index: 0, kind: input, shape index: {}]   ;;  %s715_s1 = inlined_call_operand.vmem [shape: bf16[256,128], index: 1, kind: input, shape index: {}]   ;;  %s716_s2 = inlined_call_operand.vmem [shape: f32[1,128], index: 2, kind: input, shape index: {}]   ;;  %s717_s3 = inlined_call_operand.vmem [shape: f32[1,128], index: 3, kind: input, shape index: {}, may-alias: {3,4}]   ;;  %s718_s4 = inlined_call_operand.vmem [shape: f32[1,128], index: 4, kind: input, shape index: {}, may-alias: {3,4}]   ;;  %s719_s5 = inlined_call_operand.vmem [shape: bf16[32,128], index: 5, kind: output, shape index: {}]  }
   0x1 LB: > { %s506_s19 = sadd.s32 4294967295, %s604_s18   ;;  %p510_p0 = scmp.ge.s32.totalorder %s604_s18, 1  ;;  %s604_s18 = sphi %s636_s18, %s15_s18  }
   0x2   : > { %p189_p1 = scmp.lt.s32.totalorder %s604_s18, 3 }
   0x4   : > { %p190_p2 = pnand %p510_p0, %p189_p1 }
   0x5   : > { %s511_s22 = sshll.u32 (!%p190_p2), %s506_s19, 1 }
   0x6   : > { %193 = sbr.rel (%p190_p2) target bundleno = 254 (0xfe), region = 40  ;;  %p219_p3 = scmp.lt.s32.totalorder (!%p190_p2), %s511_s22, 3 }
   0xb   : > { %v579_v0 = vld [vmem:[%s715_s1 + $0x78] sm:$0xff]   ;;  %v581_v2 = vld [vmem:[%s715_s1 + $0x70] sm:$0xff]   ;;  %v583_v4 = vld [vmem:[%s715_s1 + $0x68] sm:$0xff]   ;;  %s721_s22 = smov (!%p219_p3, %s511_s22), 3 }
   0xc   : > { %v580_v1 = vld [vmem:[%s715_s1 + $0x38] sm:$0xff]   ;;  %549 = vmatprep.subr.bf16.mxu0 %v579_v0  ;;  %v582_v3 = vld [vmem:[%s715_s1 + $0x30] sm:$0xff]   ;;  %v584_v5 = vld [vmem:[%s715_s1 + $0x28] sm:$0xff]   ;;  %s541_s12 = sshll.u32 %s721_s22, 3  ;;  %s515_s15 = sshll.u32 %s721_s22, 2 }
   0xd   : > { %550 = vmatpush3.bf16.msra.mxu0 %v580_v1  ;;  %v585_v6 = vld [vmem:[%s715_s1 + $0x60] sm:$0xff]   ;;  %v587_v8 = vld [vmem:[%s715_s1 + $0x58] sm:$0xff]   ;;  %s223_s17 = scalar_lea.vmem %s714_s0, %s541_s12  ;;  %v589_v10 = vld [vmem:[%s715_s1 + $0x50] sm:$0xff]   ;;  %s229_s19 = scalar_lea.vmem %s719_s5, %s515_s15 }
   0xe   : > { %551 = vmatprep.subr.bf16.mxu0 %v581_v2  ;;  %v586_v7 = vld [vmem:[%s715_s1 + $0x20] sm:$0xff]   ;;  %v588_v9 = vld [vmem:[%s715_s1 + $0x18] sm:$0xff]   ;;  %v590_v12 = vld [vmem:[%s715_s1 + $0x10] sm:$0xff]  }
   0xf   : > { %v597_v11 = vld [vmem:[%s223_s17 + $0x4] ss:$8 sps:$4 sm:$0xff]   ;;  %v595_v17 = vld [vmem:[%s223_s17] ss:$8 sps:$4 sm:$0xff]  }
  0x10   : > { %404 = vmatprep.mubr.bf16.mxu0 %v597_v11  ;;  %v591_v13 = vld [vmem:[%s715_s1 + $0x48] sm:$0xff]   ;;  %v593_v15 = vld [vmem:[%s715_s1 + $0x40] sm:$0xff]  }
  0x11   : > { %552 = vmatpush3.bf16.msra.mxu0 %v582_v3  ;;  %v592_v14 = vld [vmem:[%s715_s1 + $0x8] sm:$0xff]   ;;  %v594_v16 = vld [vmem:[%s715_s1] sm:$0xff]  }
  0x12   : > { %553 = vmatprep.subr.bf16.mxu0 %v583_v4  ;;  %v534_v20 = vld [vmem:[%s716_s2] ss:$0 sm:$0xff] }
  0x13   : > { %v535_v24 = vld [vmem:[%s717_s3] ss:$0 sm:$0xff] }
  0x14   : > { %v536_v29 = vld [vmem:[%s718_s4] ss:$0 sm:$0xff] }
  0x15   : > { %554 = vmatpush3.bf16.msra.mxu0 %v584_v5 }
  0x16   : > { %555 = vmatprep.subr.bf16.mxu0 %v585_v6 }
  0x19   : > { %556 = vmatpush3.bf16.msra.mxu0 %v586_v7 }
  0x1a   : > { %557 = vmatprep.subr.bf16.mxu0 %v587_v8 }
  0x1d   : > { %558 = vmatpush3.bf16.msra.mxu0 %v588_v9 }
  0x1e   : > { %559 = vmatprep.subr.bf16.mxu0 %v589_v10 }
  0x21   : > { %560 = vmatpush3.bf16.msra.mxu0 %v590_v12 }
  0x22   : > { %561 = vmatprep.subr.bf16.mxu0 %v591_v13 }
  0x25   : > { %562 = vmatpush3.bf16.msra.mxu0 %v592_v14 }
  0x26   : > { %563 = vmatprep.subr.bf16.mxu0 %v593_v15 }
  0x29   : > { %564 = vmatpush3.bf16.msra.mxu0 %v594_v16 }
  0x2c   : > { %405 = vmatmul.mubr.bf16.vlgmr.msra.gmra.mxu0 %v595_v17 }
  0xec   : > { %v565_v18 = vpop.f32.mrf.mxu0 }
  0xee   : > { %v566_v19 = vpop.f32.mrf.mxu0 }
  0xef   : > { %v567_v21 = vadd.f32 %v566_v19, %v565_v18 }
  0xf0   : > { %v568_v22 = vpop.f32.mrf.mxu0 }
  0xf1   : > { %v420_v23 = vmul.f32 %v567_v21, %v534_v20 }
  0xf2   : > { %v569_v25 = vpop.f32.mrf.mxu0 }
  0xf3   : > { %v570_v26 = vadd.f32 %v569_v25, %v568_v22  ;;  %v429_v27 = vadd.f32 %v535_v24, %v420_v23 }
  0xf5   : > { %v421_v28 = vmul.f32 %v570_v26, %v534_v20  ;;  %v438_v31 = vmax.f32 %v429_v27, %v536_v29 }
  0xf7   : > { %v430_v30 = vadd.f32 %v535_v24, %v421_v28 }
  0xf9   : > { %v439_v32 = vmax.f32 %v430_v30, %v536_v29 }
  0xfb   : > { %v547_v33 = vpack.c.bf16 %v439_v32, %v438_v31 }
  0xfd   : > { %548 = vst [vmem:[%s229_s19] sm:$0xff] %v547_v33  }
  0xfe PF: > { %s15_s18 = sadd.s32 1, %s604_s18  }
  0xff   : > { %p12_p4 = scmp.ge.s32.totalorder %s15_s18, 4  }
 0x101   :  { %14 = sbr.rel (!%p12_p4) target bundleno = 1 (0x1), region = 70 }

// kernel: network_forward.51
= control target key start
LH: loop header
LB: loop body
LE: loop exit
PB: predicated region body
PF: predicated region fallthrough
CT: control target
= control target key end

     0   :  { %s717_s18 = smov 0   ;;  %s846_s0 = inlined_call_operand.vmem [shape: bf16[16,256], index: 0, kind: input, shape index: {}]   ;;  %s847_s1 = inlined_call_operand.vmem [shape: bf16[256,256], index: 1, kind: input, shape index: {}]   ;;  %s848_s2 = inlined_call_operand.vmem [shape: f32[1,256], index: 2, kind: input, shape index: {}]   ;;  %s849_s3 = inlined_call_operand.vmem [shape: f32[1,256], index: 3, kind: input, shape index: {}]   ;;  %s850_s4 = inlined_call_operand.vmem [shape: f32[1,256], index: 4, kind: input, shape index: {}]   ;;  %s851_s5 = inlined_call_operand.vmem [shape: bf16[16,256], index: 5, kind: output, shape index: {}]  }
   0x1 LB: > { %s572_s19 = sadd.s32 4294967295, %s685_s18   ;;  %p576_p0 = scmp.ge.s32.totalorder %s685_s18, 1  ;;  %s685_s18 = sphi %s717_s18, %s15_s18  }
   0x2   : > { %p187_p1 = scmp.lt.s32.totalorder %s685_s18, 3 }
   0x4   : > { %p188_p2 = pnand %p576_p0, %p187_p1 }
   0x5   : > { %p215_p3 = scmp.lt.s32.totalorder (!%p188_p2), %s572_s19, 1 }
   0x6   : > { %191 = sbr.rel (%p188_p2) target bundleno = 280 (0x118), region = 40 }
   0xb   : > { %v629_v0 = vld [vmem:[%s847_s1 + $0x74] ss:$8 sps:$4 sm:$0xff]   ;;  %v631_v1 = vld [vmem:[%s847_s1 + $0x70] ss:$8 sps:$4 sm:$0xff]   ;;  %v632_v2 = vld [vmem:[%s847_s1 + $0x64] ss:$8 sps:$4 sm:$0xff]   ;;  %v468_v35 = vlaneseq }
   0xc   : > { %425 = vmatprep.subr.bf16.mxu0 %v629_v0  ;;  %v634_v3 = vld [vmem:[%s847_s1 + $0x60] ss:$8 sps:$4 sm:$0xff]   ;;  %v635_v4 = vld [vmem:[%s847_s1 + $0x54] ss:$8 sps:$4 sm:$0xff]   ;;  %v637_v5 = vld [vmem:[%s847_s1 + $0x50] ss:$8 sps:$4 sm:$0xff]  }
   0xd   : > { %426 = vmatpush1.bf16.msra.mxu0 %v631_v1  ;;  %v638_v6 = vld [vmem:[%s847_s1 + $0x44] ss:$8 sps:$4 sm:$0xff]   ;;  %v640_v7 = vld [vmem:[%s847_s1 + $0x40] ss:$8 sps:$4 sm:$0xff]   ;;  %s853_s19 = smov (!%p215_p3, %s572_s19), 1  ;;  %v469_v36 = vshrl.u32 %v468_v35, 7 }
   0xe   : > { %427 = vmatprep.subr.bf16.mxu0 %v632_v2  ;;  %v641_v8 = vld [vmem:[%s847_s1 + $0x34] ss:$8 sps:$4 sm:$0xff]   ;;  %v643_v9 = vld [vmem:[%s847_s1 + $0x30] ss:$8 sps:$4 sm:$0xff]   ;;  %s618_s15 = sshll.u32 %s853_s19, 3 }
   0xf   : > { %v644_v10 = vld [vmem:[%s847_s1 + $0x24] ss:$8 sps:$4 sm:$0xff]   ;;  %s219_s22 = scalar_lea.vmem %s846_s0, %s618_s15  ;;  %v646_v11 = vld [vmem:[%s847_s1 + $0x20] ss:$8 sps:$4 sm:$0xff]   ;;  %v647_v12 = vld [vmem:[%s847_s1 + $0x14] ss:$8 sps:$4 sm:$0xff]   ;;  %s224_s29 = scalar_lea.vmem %s851_s5, %s618_s15 }
  0x10   : > { %v225_v13 = vld [vmem:[%s219_s22] sm:$0xff]  ;;  %v649_v15 = vld [vmem:[%s847_s1 + $0x10] ss:$8 sps:$4 sm:$0xff]   ;;  %v653_v18 = vld [vmem:[%s847_s1 + $0xf4] ss:$8 sps:$4 sm:$0xff]   ;;  %v470_v37 = vsub.s32 0, %v469_v36 }
  0x11   : > { %428 = vmatpush1.bf16.msra.mxu0 %v634_v3  ;;  %v582_v14 = vcombine.high %v225_v13, %v225_v13  ;;  %v650_v16 = vld [vmem:[%s847_s1 + $0x4] ss:$8 sps:$4 sm:$0xff]   ;;  %v652_v17 = vld [vmem:[%s847_s1] ss:$8 sps:$4 sm:$0xff]   ;;  %v655_v19 = vld [vmem:[%s847_s1 + $0xf0] ss:$8 sps:$4 sm:$0xff]   ;;  %v581_v34 = vcombine.low %v225_v13, %v225_v13 }
  0x12   : > { %429 = vmatprep.subr.bf16.mxu0 %v635_v4  ;;  %v656_v20 = vld [vmem:[%s847_s1 + $0xe4] ss:$8 sps:$4 sm:$0xff]   ;;  %v658_v21 = vld [vmem:[%s847_s1 + $0xe0] ss:$8 sps:$4 sm:$0xff]   ;;  %v659_v22 = vld [vmem:[%s847_s1 + $0xd4] ss:$8 sps:$4 sm:$0xff]  }
  0x13   : > { %457 = vmatprep.mubr.bf16.mxu0 %v582_v14  ;;  %v661_v23 = vld [vmem:[%s847_s1 + $0xd0] ss:$8 sps:$4 sm:$0xff]   ;;  %v662_v24 = vld [vmem:[%s847_s1 + $0xc4] ss:$8 sps:$4 sm:$0xff]   ;;  %v664_v25 = vld [vmem:[%s847_s1 + $0xc0] ss:$8 sps:$4 sm:$0xff]  }
  0x14   : > { %v665_v26 = vld [vmem:[%s847_s1 + $0xb4] ss:$8 sps:$4 sm:$0xff]   ;;  %v667_v27 = vld [vmem:[%s847_s1 + $0xb0] ss:$8 sps:$4 sm:$0xff]   ;;  %v668_v28 = vld [vmem:[%s847_s1 + $0xa4] ss:$8 sps:$4 sm:$0xff]  }
  0x15   : > { %430 = vmatpush1.bf16.msra.mxu0 %v637_v5  ;;  %v670_v29 = vld [vmem:[%s847_s1 + $0xa0] ss:$8 sps:$4 sm:$0xff]   ;;  %v671_v30 = vld [vmem:[%s847_s1 + $0x94] ss:$8 sps:$4 sm:$0xff]   ;;  %v673_v31 = vld [vmem:[%s847_s1 + $0x90] ss:$8 sps:$4 sm:$0xff]  }
  0x16   : > { %431 = vmatprep.subr.bf16.mxu0 %v638_v6  ;;  %v674_v32 = vld [vmem:[%s847_s1 + $0x84] ss:$8 sps:$4 sm:$0xff]   ;;  %v676_v33 = vld [vmem:[%s847_s1 + $0x80] ss:$8 sps:$4 sm:$0xff]   ;;  %v474_v39 = vsub.s32 1, %v469_v36 }
  0x17   : > { %v466_v38 = vld [vmem:[%s848_s2] sm:$0x3] }
  0x18   : > { %v480_v40 = vld [vmem:[%s849_s3] sm:$0x3]  ;;  %v471_v41 = vrot.slane %v466_v38, %v470_v37  ;;  %v475_v43 = vrot.slane %v466_v38, %v474_v39 }
  0x19   : > { %432 = vmatpush1.bf16.msra.mxu0 %v640_v7  ;;  %v485_v42 = vrot.slane %v480_v40, %v470_v37  ;;  %v494_v45 = vld [vmem:[%s850_s4] sm:$0x3]  ;;  %v489_v47 = vrot.slane %v480_v40, %v474_v39 }
  0x1a   : > { %433 = vmatprep.subr.bf16.mxu0 %v641_v8  ;;  %v499_v50 = vrot.slane %v494_v45, %v470_v37  ;;  %v503_v52 = vrot.slane %v494_v45, %v474_v39 }
  0x1d   : > { %434 = vmatpush1.bf16.msra.mxu0 %v643_v9 }
  0x1e   : > { %435 = vmatprep.subr.bf16.mxu0 %v644_v10 }
  0x21   : > { %436 = vmatpush1.bf16.msra.mxu0 %v646_v11 }
  0x22   : > { %437 = vmatprep.subr.bf16.mxu0 %v647_v12 }
  0x25   : > { %438 = vmatpush1.bf16.msra.mxu0 %v649_v15 }
  0x26   : > { %439 = vmatprep.subr.bf16.mxu0 %v650_v16 }
  0x29   : > { %440 = vmatpush1.bf16.msra.mxu0 %v652_v17 }
  0x2a   : > { %441 = vmatprep.subr.bf16.mxu0 %v653_v18 }
  0x2d   : > { %442 = vmatpush2.bf16.msra.mxu0 %v655_v19 }
  0x2e   : > { %443 = vmatprep.subr.bf16.mxu0 %v656_v20 }
  0x31   : > { %444 = vmatpush2.bf16.msra.mxu0 %v658_v21 }
  0x32   : > { %445 = vmatprep.subr.bf16.mxu0 %v659_v22 }
  0x35   : > { %446 = vmatpush2.bf16.msra.mxu0 %v661_v23 }
  0x36   : > { %447 = vmatprep.subr.bf16.mxu0 %v662_v24 }
  0x39   : > { %448 = vmatpush2.bf16.msra.mxu0 %v664_v25 }
  0x3a   : > { %449 = vmatprep.subr.bf16.mxu0 %v665_v26 }
  0x3d   : > { %450 = vmatpush2.bf16.msra.mxu0 %v667_v27 }
  0x3e   : > { %451 = vmatprep.subr.bf16.mxu0 %v668_v28 }
  0x41   : > { %452 = vmatpush2.bf16.msra.mxu0 %v670_v29 }
  0x42   : > { %453 = vmatprep.subr.bf16.mxu0 %v671_v30 }
  0x45   : > { %454 = vmatpush2.bf16.msra.mxu0 %v673_v31 }
  0x46   : > { %455 = vmatprep.subr.bf16.mxu0 %v674_v32 }
  0x49   : > { %456 = vmatpush2.bf16.msra.mxu0 %v676_v33 }
  0x4c   : > { %458 = vmatmul.mubr.bf16.vlgmr.msra.gmra.mxu0 %v581_v34 }
 0x10c   : > { %v459_v44 = vpop.f32.mrf.mxu0 }
 0x10d   : > { %v478_v46 = vmul.f32 %v471_v41, %v459_v44 }
 0x10e   : > { %v461_v48 = vpop.f32.mrf.mxu0 }
 0x10f   : > { %v492_v49 = vadd.f32 %v485_v42, %v478_v46  ;;  %v479_v51 = vmul.f32 %v475_v43, %v461_v48 }
 0x110   : > { %v463_v53 = vpop.f32.mrf.mxu0 }
 0x111   : > { %v493_v54 = vadd.f32 %v489_v47, %v479_v51  ;;  %v506_v56 = vmax.f32 %v492_v49, %v499_v50 }
 0x112   : > { %v464_v55 = vpop.f32.mrf.mxu0 }
 0x113   : > { %v507_v57 = vmax.f32 %v493_v54, %v503_v52 }
 0x115   : > { %v620_v58 = vpack.c.bf16 %v507_v57, %v506_v56 }
 0x117   : > { %516 = vst [vmem:[%s224_s29] sm:$0xff] %v620_v58 }
 0x118 PF: > { %s15_s18 = sadd.s32 1, %s685_s18  }
 0x119   : > { %p12_p4 = scmp.ge.s32.totalorder %s15_s18, 4  }
 0x11b   :  { %14 = sbr.rel (!%p12_p4) target bundleno = 1 (0x1), region = 70 }

// kernel: network_forward.52
= control target key start
LH: loop header
LB: loop body
LE: loop exit
PB: predicated region body
PF: predicated region fallthrough
CT: control target
= control target key end

     0   :  { %s781_s18 = smov 0   ;;  %s887_s0 = inlined_call_operand.vmem [shape: bf16[16,384], index: 0, kind: input, shape index: {}]   ;;  %s888_s1 = inlined_call_operand.vmem [shape: bf16[384,128], index: 1, kind: input, shape index: {}]   ;;  %s889_s2 = inlined_call_operand.vmem [shape: f32[1,128], index: 2, kind: input, shape index: {}]   ;;  %s890_s3 = inlined_call_operand.vmem [shape: f32[1,128], index: 3, kind: input, shape index: {}]   ;;  %s891_s4 = inlined_call_operand.vmem [shape: bf16[16,128], index: 4, kind: input, shape index: {}]   ;;  %s892_s5 = inlined_call_operand.vmem [shape: bf16[16,128], index: 5, kind: output, shape index: {}]  }
   0x1 LB: > { %s613_s19 = sadd.s32 4294967295, %s747_s18   ;;  %p617_p0 = scmp.ge.s32.totalorder %s747_s18, 1  ;;  %s747_s18 = sphi %s781_s18, %s15_s18  }
   0x2   : > { %p196_p1 = scmp.lt.s32.totalorder %s747_s18, 3 }
   0x4   : > { %p197_p2 = pnand %p617_p0, %p196_p1 }
   0x5   : > { %p227_p3 = scmp.lt.s32.totalorder (!%p197_p2), %s613_s19, 1 }
   0x6   : > { %200 = sbr.rel (%p197_p2) target bundleno = 255 (0xff), region = 40 }
   0xb   : > { %v714_v0 = vld [vmem:[%s888_s1 + $0x78] sm:$0xff]   ;;  %v749_v1 = vmov 0.0   ;;  %vm750_vm0 = vmmov 0   ;;  %v717_v4 = vld [vmem:[%s888_s1 + $0x70] sm:$0xff]   ;;  %v720_v7 = vld [vmem:[%s888_s1 + $0x68] sm:$0xff]   ;;  %s894_s19 = smov (!%p227_p3, %s613_s19), 1 }
   0xc   : > { %683 = vmatprep.subr.bf16.mxu1 %v749_v1  ;;  %v715_v2 = vld [vmem:[%s888_s1 + $0xb8] sm:$0xff]   ;;  %652 = vmatprep.subr.bf16.mxu0 %v714_v0  ;;  %v718_v5 = vld [vmem:[%s888_s1 + $0xb0] sm:$0xff]   ;;  %v721_v8 = vld [vmem:[%s888_s1 + $0xa8] sm:$0xff]   ;;  %s703_s29 = smul.u32 12, %s894_s19  ;;  %s619_s26 = sshll.u32 %s894_s19, 2 }
   0xd   : > { %v716_v3 = vld [vmem:[%s888_s1 + $0x38] sm:$0xff]   ;;  %699 = vmatprep.mubr.msk.bf16.mxu1 %vm750_vm0, %v749_v1  ;;  %684 = vmatpush3.bf16.msra.mxu1 %v715_v2  ;;  %v719_v6 = vld [vmem:[%s888_s1 + $0x30] sm:$0xff]   ;;  %v722_v9 = vld [vmem:[%s888_s1 + $0x28] sm:$0xff]   ;;  %s239_s10 = scalar_lea.vmem %s892_s5, %s619_s26 }
   0xe   : > { %653 = vmatpush3.bf16.msra.mxu0 %v716_v3  ;;  %685 = vmatprep.subr.bf16.mxu1 %v749_v1  ;;  %v723_v10 = vld [vmem:[%s888_s1 + $0x60] sm:$0xff]   ;;  %v726_v13 = vld [vmem:[%s888_s1 + $0x58] sm:$0xff]   ;;  %v729_v16 = vld [vmem:[%s888_s1 + $0x50] sm:$0xff]   ;;  %s231_s13 = scalar_lea.vmem %s887_s0, %s703_s29  ;;  %s235_s29 = scalar_lea.vmem %s891_s4, %s619_s26 }
   0xf   : > { %654 = vmatprep.subr.bf16.mxu0 %v717_v4  ;;  %v724_v11 = vld [vmem:[%s888_s1 + $0xa0] sm:$0xff]   ;;  %v727_v14 = vld [vmem:[%s888_s1 + $0x98] sm:$0xff]   ;;  %v730_v17 = vld [vmem:[%s888_s1 + $0x90] sm:$0xff]  }
  0x10   : > { %v725_v12 = vld [vmem:[%s888_s1 + $0x20] sm:$0xff]   ;;  %v728_v15 = vld [vmem:[%s888_s1 + $0x18] sm:$0xff]   ;;  %v731_v18 = vld [vmem:[%s888_s1 + $0x10] sm:$0xff]  }
  0x11   : > { %686 = vmatpush3.bf16.msra.mxu1 %v718_v5  ;;  %v732_v19 = vld [vmem:[%s888_s1 + $0x48] sm:$0xff]   ;;  %v241_v22 = vld [vmem:[%s231_s13] sm:$0xff] }
  0x12   : > { %655 = vmatpush3.bf16.msra.mxu0 %v719_v6  ;;  %687 = vmatprep.subr.bf16.mxu1 %v749_v1  ;;  %v733_v20 = vld [vmem:[%s888_s1 + $0x88] sm:$0xff]   ;;  %v735_v23 = vld [vmem:[%s888_s1 + $0x40] sm:$0xff]   ;;  %v622_v24 = vcombine.high %v241_v22, %v241_v22  ;;  %v621_v28 = vcombine.low %v241_v22, %v241_v22 }
  0x13   : > { %656 = vmatprep.subr.bf16.mxu0 %v720_v7  ;;  %v734_v21 = vld [vmem:[%s888_s1 + $0x8] sm:$0xff]   ;;  %v736_v25 = vld [vmem:[%s888_s1 + $0x80] sm:$0xff]  }
  0x14   : > { %478 = vmatprep.mubr.bf16.mxu0 %v622_v24  ;;  %v737_v26 = vld [vmem:[%s888_s1] sm:$0xff]   ;;  %v740_v27 = vld [vmem:[%s231_s13 + $0x8] ss:$0 sps:$4 sm:$0xff]  }
  0x15   : > { %688 = vmatpush3.bf16.msra.mxu1 %v721_v8  ;;  %v542_v35 = vld [vmem:[%s235_s29] sm:$0xf] }
  0x16   : > { %657 = vmatpush3.bf16.msra.mxu0 %v722_v9  ;;  %689 = vmatprep.subr.bf16.mxu1 %v749_v1  ;;  %v648_v36 = vld [vmem:[%s889_s2] ss:$0 sm:$0xff]  ;;  %v543_v42 = vunpack.c.l.bf16 %v542_v35 }
  0x17   : > { %658 = vmatprep.subr.bf16.mxu0 %v723_v10  ;;  %v649_v40 = vld [vmem:[%s890_s3] ss:$0 sm:$0xff] }
  0x19   : > { %690 = vmatpush3.bf16.msra.mxu1 %v724_v11 }
  0x1a   : > { %659 = vmatpush3.bf16.msra.mxu0 %v725_v12  ;;  %691 = vmatprep.subr.bf16.mxu1 %v749_v1 }
  0x1b   : > { %660 = vmatprep.subr.bf16.mxu0 %v726_v13 }
  0x1d   : > { %692 = vmatpush3.bf16.msra.mxu1 %v727_v14 }
  0x1e   : > { %661 = vmatpush3.bf16.msra.mxu0 %v728_v15  ;;  %693 = vmatprep.subr.bf16.mxu1 %v749_v1 }
  0x1f   : > { %662 = vmatprep.subr.bf16.mxu0 %v729_v16 }
  0x21   : > { %694 = vmatpush3.bf16.msra.mxu1 %v730_v17 }
  0x22   : > { %663 = vmatpush3.bf16.msra.mxu0 %v731_v18  ;;  %695 = vmatprep.subr.bf16.mxu1 %v749_v1 }
  0x23   : > { %664 = vmatprep.subr.bf16.mxu0 %v732_v19 }
  0x25   : > { %696 = vmatpush3.bf16.msra.mxu1 %v733_v20 }
  0x26   : > { %665 = vmatpush3.bf16.msra.mxu0 %v734_v21  ;;  %697 = vmatprep.subr.bf16.mxu1 %v749_v1 }
  0x27   : > { %666 = vmatprep.subr.bf16.mxu0 %v735_v23 }
  0x29   : > { %698 = vmatpush3.bf16.msra.mxu1 %v736_v25 }
  0x2a   : > { %667 = vmatpush3.bf16.msra.mxu0 %v737_v26 }
  0x2c   : > { %700 = vmatmul.mubr.bf16.vlgmr.msra.gmra.mxu1 %v740_v27 }
  0x2d   : > { %479 = vmatmul.mubr.bf16.vlgmr.msra.gmra.mxu0 %v621_v28 }
  0xec   : > { %v520_v29 = vpop.f32.mrf.mxu1 }
  0xed   : > { %v668_v30 = vpop.f32.mrf.mxu0 }
  0xee   : > { %v701_v31 = vpop.f32.mrf.mxu1 }
  0xef   : > { %v669_v32 = vpop.f32.mrf.mxu0 }
  0xf0   : > { %v670_v33 = vadd.f32 %v669_v32, %v668_v30  ;;  %v523_v34 = vpop.f32.mrf.mxu1 }
  0xf1   : > { %v671_v37 = vpop.f32.mrf.mxu0 }
  0xf2   : > { %v521_v38 = vadd.f32 %v670_v33, %v520_v29  ;;  %v702_v39 = vpop.f32.mrf.mxu1 }
  0xf3   : > { %v672_v41 = vpop.f32.mrf.mxu0 }
  0xf4   : > { %v533_v43 = vmul.f32 %v648_v36, %v521_v38 }
  0xf6   : > { %v541_v44 = vadd.f32 %v649_v40, %v533_v43 }
  0xf8   : > { %v544_v45 = vadd.f32 %v543_v42, %v541_v44 }
  0xfa   : > { %v545_v46 = vmax.f32 %v544_v45, 0.0 }
  0xfc   : > { %v546_v47 = vpack.c.bf16 %v545_v46, %v545_v46 }
  0xfe   : > { %547 = vst [vmem:[%s239_s10] sm:$0xf] %v546_v47 }
  0xff PF: > { %s15_s18 = sadd.s32 1, %s747_s18  }
 0x100   : > { %p12_p4 = scmp.ge.s32.totalorder %s15_s18, 4  }
 0x102   :  { %14 = sbr.rel (!%p12_p4) target bundleno = 1 (0x1), region = 73 }

// kernel: network_forward.53
= control target key start
LH: loop header
LB: loop body
LE: loop exit
PB: predicated region body
PF: predicated region fallthrough
CT: control target
= control target key end

     0   :  { %s756_s18 = smov 0   ;;  %s862_s0 = inlined_call_operand.vmem [shape: bf16[16,384], index: 0, kind: input, shape index: {}]   ;;  %s863_s1 = inlined_call_operand.vmem [shape: bf16[384,128], index: 1, kind: input, shape index: {}]   ;;  %s864_s2 = inlined_call_operand.vmem [shape: f32[1,128], index: 2, kind: input, shape index: {}]   ;;  %s865_s3 = inlined_call_operand.vmem [shape: f32[1,128], index: 3, kind: input, shape index: {}, may-alias: {3,4}]   ;;  %s866_s4 = inlined_call_operand.vmem [shape: f32[1,128], index: 4, kind: input, shape index: {}, may-alias: {3,4}]   ;;  %s867_s5 = inlined_call_operand.vmem [shape: bf16[16,128], index: 5, kind: output, shape index: {}]  }
   0x1 LB: > { %s588_s19 = sadd.s32 4294967295, %s722_s18   ;;  %p592_p0 = scmp.ge.s32.totalorder %s722_s18, 1  ;;  %s722_s18 = sphi %s756_s18, %s15_s18  }
   0x2   : > { %p187_p1 = scmp.lt.s32.totalorder %s722_s18, 3 }
   0x4   : > { %p188_p2 = pnand %p592_p0, %p187_p1 }
   0x5   : > { %p214_p3 = scmp.lt.s32.totalorder (!%p188_p2), %s588_s19, 1 }
   0x6   : > { %191 = sbr.rel (%p188_p2) target bundleno = 253 (0xfd), region = 40 }
   0xb   : > { %v689_v0 = vld [vmem:[%s863_s1 + $0x78] sm:$0xff]   ;;  %v724_v1 = vmov 0.0   ;;  %vm725_vm0 = vmmov 0   ;;  %v692_v4 = vld [vmem:[%s863_s1 + $0x70] sm:$0xff]   ;;  %v695_v7 = vld [vmem:[%s863_s1 + $0x68] sm:$0xff]   ;;  %s869_s19 = smov (!%p214_p3, %s588_s19), 1 }
   0xc   : > { %658 = vmatprep.subr.bf16.mxu1 %v724_v1  ;;  %v690_v2 = vld [vmem:[%s863_s1 + $0xb8] sm:$0xff]   ;;  %627 = vmatprep.subr.bf16.mxu0 %v689_v0  ;;  %v693_v5 = vld [vmem:[%s863_s1 + $0xb0] sm:$0xff]   ;;  %v696_v8 = vld [vmem:[%s863_s1 + $0xa8] sm:$0xff]   ;;  %s678_s29 = smul.u32 12, %s869_s19  ;;  %s594_s7 = sshll.u32 %s869_s19, 2 }
   0xd   : > { %v691_v3 = vld [vmem:[%s863_s1 + $0x38] sm:$0xff]   ;;  %674 = vmatprep.mubr.msk.bf16.mxu1 %vm725_vm0, %v724_v1  ;;  %659 = vmatpush3.bf16.msra.mxu1 %v690_v2  ;;  %v694_v6 = vld [vmem:[%s863_s1 + $0x30] sm:$0xff]   ;;  %v697_v9 = vld [vmem:[%s863_s1 + $0x28] sm:$0xff]   ;;  %s222_s10 = scalar_lea.vmem %s867_s5, %s594_s7 }
   0xe   : > { %628 = vmatpush3.bf16.msra.mxu0 %v691_v3  ;;  %660 = vmatprep.subr.bf16.mxu1 %v724_v1  ;;  %v698_v10 = vld [vmem:[%s863_s1 + $0x60] sm:$0xff]   ;;  %v701_v13 = vld [vmem:[%s863_s1 + $0x58] sm:$0xff]   ;;  %v704_v16 = vld [vmem:[%s863_s1 + $0x50] sm:$0xff]   ;;  %s218_s13 = scalar_lea.vmem %s862_s0, %s678_s29 }
   0xf   : > { %629 = vmatprep.subr.bf16.mxu0 %v692_v4  ;;  %v699_v11 = vld [vmem:[%s863_s1 + $0xa0] sm:$0xff]   ;;  %v702_v14 = vld [vmem:[%s863_s1 + $0x98] sm:$0xff]   ;;  %v705_v17 = vld [vmem:[%s863_s1 + $0x90] sm:$0xff]  }
  0x10   : > { %v700_v12 = vld [vmem:[%s863_s1 + $0x20] sm:$0xff]   ;;  %v703_v15 = vld [vmem:[%s863_s1 + $0x18] sm:$0xff]   ;;  %v706_v18 = vld [vmem:[%s863_s1 + $0x10] sm:$0xff]  }
  0x11   : > { %661 = vmatpush3.bf16.msra.mxu1 %v693_v5  ;;  %v707_v19 = vld [vmem:[%s863_s1 + $0x48] sm:$0xff]   ;;  %v224_v22 = vld [vmem:[%s218_s13] sm:$0xff] }
  0x12   : > { %630 = vmatpush3.bf16.msra.mxu0 %v694_v6  ;;  %662 = vmatprep.subr.bf16.mxu1 %v724_v1  ;;  %v708_v20 = vld [vmem:[%s863_s1 + $0x88] sm:$0xff]   ;;  %v710_v23 = vld [vmem:[%s863_s1 + $0x40] sm:$0xff]   ;;  %v596_v24 = vcombine.high %v224_v22, %v224_v22  ;;  %v595_v28 = vcombine.low %v224_v22, %v224_v22 }
  0x13   : > { %631 = vmatprep.subr.bf16.mxu0 %v695_v7  ;;  %v709_v21 = vld [vmem:[%s863_s1 + $0x8] sm:$0xff]   ;;  %v711_v25 = vld [vmem:[%s863_s1 + $0x80] sm:$0xff]  }
  0x14   : > { %461 = vmatprep.mubr.bf16.mxu0 %v596_v24  ;;  %v712_v26 = vld [vmem:[%s863_s1] sm:$0xff]   ;;  %v715_v27 = vld [vmem:[%s218_s13 + $0x8] ss:$0 sps:$4 sm:$0xff]  }
  0x15   : > { %663 = vmatpush3.bf16.msra.mxu1 %v696_v8  ;;  %v622_v35 = vld [vmem:[%s864_s2] ss:$0 sm:$0xff] }
  0x16   : > { %632 = vmatpush3.bf16.msra.mxu0 %v697_v9  ;;  %664 = vmatprep.subr.bf16.mxu1 %v724_v1  ;;  %v623_v39 = vld [vmem:[%s865_s3] ss:$0 sm:$0xff] }
  0x17   : > { %633 = vmatprep.subr.bf16.mxu0 %v698_v10  ;;  %v624_v42 = vld [vmem:[%s866_s4] ss:$0 sm:$0xff] }
  0x19   : > { %665 = vmatpush3.bf16.msra.mxu1 %v699_v11 }
  0x1a   : > { %634 = vmatpush3.bf16.msra.mxu0 %v700_v12  ;;  %666 = vmatprep.subr.bf16.mxu1 %v724_v1 }
  0x1b   : > { %635 = vmatprep.subr.bf16.mxu0 %v701_v13 }
  0x1d   : > { %667 = vmatpush3.bf16.msra.mxu1 %v702_v14 }
  0x1e   : > { %636 = vmatpush3.bf16.msra.mxu0 %v703_v15  ;;  %668 = vmatprep.subr.bf16.mxu1 %v724_v1 }
  0x1f   : > { %637 = vmatprep.subr.bf16.mxu0 %v704_v16 }
  0x21   : > { %669 = vmatpush3.bf16.msra.mxu1 %v705_v17 }
  0x22   : > { %638 = vmatpush3.bf16.msra.mxu0 %v706_v18  ;;  %670 = vmatprep.subr.bf16.mxu1 %v724_v1 }
  0x23   : > { %639 = vmatprep.subr.bf16.mxu0 %v707_v19 }
  0x25   : > { %671 = vmatpush3.bf16.msra.mxu1 %v708_v20 }
  0x26   : > { %640 = vmatpush3.bf16.msra.mxu0 %v709_v21  ;;  %672 = vmatprep.subr.bf16.mxu1 %v724_v1 }
  0x27   : > { %641 = vmatprep.subr.bf16.mxu0 %v710_v23 }
  0x29   : > { %673 = vmatpush3.bf16.msra.mxu1 %v711_v25 }
  0x2a   : > { %642 = vmatpush3.bf16.msra.mxu0 %v712_v26 }
  0x2c   : > { %675 = vmatmul.mubr.bf16.vlgmr.msra.gmra.mxu1 %v715_v27 }
  0x2d   : > { %462 = vmatmul.mubr.bf16.vlgmr.msra.gmra.mxu0 %v595_v28 }
  0xec   : > { %v503_v29 = vpop.f32.mrf.mxu1 }
  0xed   : > { %v643_v30 = vpop.f32.mrf.mxu0 }
  0xee   : > { %v676_v31 = vpop.f32.mrf.mxu1 }
  0xef   : > { %v644_v32 = vpop.f32.mrf.mxu0 }
  0xf0   : > { %v645_v33 = vadd.f32 %v644_v32, %v643_v30  ;;  %v506_v34 = vpop.f32.mrf.mxu1 }
  0xf1   : > { %v646_v36 = vpop.f32.mrf.mxu0 }
  0xf2   : > { %v504_v37 = vadd.f32 %v645_v33, %v503_v29  ;;  %v677_v38 = vpop.f32.mrf.mxu1 }
  0xf3   : > { %v647_v40 = vpop.f32.mrf.mxu0 }
  0xf4   : > { %v516_v41 = vmul.f32 %v622_v35, %v504_v37 }
  0xf6   : > { %v524_v43 = vadd.f32 %v623_v39, %v516_v41 }
  0xf8   : > { %v532_v44 = vmax.f32 %v524_v43, %v624_v42 }
  0xfa   : > { %v533_v45 = vpack.c.bf16 %v532_v44, %v532_v44 }
  0xfc   : > { %534 = vst [vmem:[%s222_s10] sm:$0xf] %v533_v45 }
  0xfd PF: > { %s15_s18 = sadd.s32 1, %s722_s18  }
  0xfe   : > { %p12_p4 = scmp.ge.s32.totalorder %s15_s18, 4  }
 0x100   :  { %14 = sbr.rel (!%p12_p4) target bundleno = 1 (0x1), region = 70 }

// kernel: network_forward.63
= control target key start
LH: loop header
LB: loop body
LE: loop exit
PB: predicated region body
PF: predicated region fallthrough
CT: control target
= control target key end

     0   :  { %s903_s18 = smov 0   ;;  %s1081_s0 = inlined_call_operand.vmem [shape: bf16[16,384], index: 0, kind: input, shape index: {}]   ;;  %s1082_s1 = inlined_call_operand.vmem [shape: bf16[384,256], index: 1, kind: input, shape index: {}]   ;;  %s1083_s2 = inlined_call_operand.vmem [shape: f32[1,256], index: 2, kind: input, shape index: {}]   ;;  %s1084_s3 = inlined_call_operand.vmem [shape: f32[1,256], index: 3, kind: input, shape index: {}]   ;;  %s1085_s4 = inlined_call_operand.vmem [shape: f32[1,256], index: 4, kind: input, shape index: {}]   ;;  %s1086_s5 = inlined_call_operand.vmem [shape: bf16[16,256], index: 5, kind: output, shape index: {}]  }
   0x1 LB: > { %s715_s19 = sadd.s32 4294967295, %s870_s18   ;;  %p719_p0 = scmp.ge.s32.totalorder %s870_s18, 1  ;;  %s870_s18 = sphi %s903_s18, %s15_s18  }
   0x2   : > { %p187_p1 = scmp.lt.s32.totalorder %s870_s18, 3 }
   0x4   : > { %p188_p2 = pnand %p719_p0, %p187_p1 }
   0x5   : > { %p215_p3 = scmp.lt.s32.totalorder (!%p188_p2), %s715_s19, 1 }
   0x6   : > { %191 = sbr.rel (%p188_p2) target bundleno = 282 (0x11a), region = 40 }
   0xb   : > { %v789_v0 = vld [vmem:[%s1082_s1 + $0x74] ss:$8 sps:$4 sm:$0xff]   ;;  %v791_v1 = vld [vmem:[%s1082_s1 + $0x70] ss:$8 sps:$4 sm:$0xff]   ;;  %v872_v2 = vmov 0   ;;  %s1088_s19 = smov (!%p215_p3, %s715_s19), 1  ;;  %v611_v57 = vlaneseq }
   0xc   : > { %600 = vmatprep.mubr.bf16.mxu1 %v872_v2  ;;  %527 = vmatprep.subr.bf16.mxu0 %v789_v0  ;;  %v792_v3 = vld [vmem:[%s1082_s1 + $0x64] ss:$8 sps:$4 sm:$0xff]   ;;  %v794_v4 = vld [vmem:[%s1082_s1 + $0x60] ss:$8 sps:$4 sm:$0xff]   ;;  %v795_v5 = vld [vmem:[%s1082_s1 + $0x54] ss:$8 sps:$4 sm:$0xff]  }
   0xd   : > { %528 = vmatpush1.bf16.msra.mxu0 %v791_v1  ;;  %v797_v6 = vld [vmem:[%s1082_s1 + $0x50] ss:$8 sps:$4 sm:$0xff]   ;;  %v798_v7 = vld [vmem:[%s1082_s1 + $0x44] ss:$8 sps:$4 sm:$0xff]   ;;  %v810_v8 = vld [vmem:[%s1082_s1 + $0x174] ss:$8 sps:$4 sm:$0xff]  }
   0xe   : > { %529 = vmatprep.subr.bf16.mxu0 %v792_v3  ;;  %v812_v9 = vld [vmem:[%s1082_s1 + $0x170] ss:$8 sps:$4 sm:$0xff]   ;;  %v800_v10 = vld [vmem:[%s1082_s1 + $0x40] ss:$8 sps:$4 sm:$0xff]   ;;  %v801_v11 = vld [vmem:[%s1082_s1 + $0x34] ss:$8 sps:$4 sm:$0xff]   ;;  %568 = vmatprep.subr.bf16.mxu1 %v810_v8 }
   0xf   : > { %v816_v12 = vld [vmem:[%s1082_s1 + $0x164] ss:$8 sps:$4 sm:$0xff]   ;;  %569 = vmatpush1.bf16.msra.mxu1 %v812_v9  ;;  %v818_v13 = vld [vmem:[%s1082_s1 + $0x160] ss:$8 sps:$4 sm:$0xff]   ;;  %v803_v14 = vld [vmem:[%s1082_s1 + $0x30] ss:$8 sps:$4 sm:$0xff]  }
  0x10   : > { %570 = vmatprep.subr.bf16.mxu1 %v816_v12  ;;  %v822_v15 = vld [vmem:[%s1082_s1 + $0x154] ss:$8 sps:$4 sm:$0xff]   ;;  %v804_v16 = vld [vmem:[%s1082_s1 + $0x24] ss:$8 sps:$4 sm:$0xff]   ;;  %v824_v17 = vld [vmem:[%s1082_s1 + $0x150] ss:$8 sps:$4 sm:$0xff]  }
  0x11   : > { %530 = vmatpush1.bf16.msra.mxu0 %v794_v4  ;;  %v828_v18 = vld [vmem:[%s1082_s1 + $0x144] ss:$8 sps:$4 sm:$0xff]   ;;  %v806_v19 = vld [vmem:[%s1082_s1 + $0x20] ss:$8 sps:$4 sm:$0xff]   ;;  %v807_v20 = vld [vmem:[%s1082_s1 + $0x14] ss:$8 sps:$4 sm:$0xff]  }
  0x12   : > { %531 = vmatprep.subr.bf16.mxu0 %v795_v5  ;;  %v830_v21 = vld [vmem:[%s1082_s1 + $0x140] ss:$8 sps:$4 sm:$0xff]   ;;  %v834_v22 = vld [vmem:[%s1082_s1 + $0x134] ss:$8 sps:$4 sm:$0xff]   ;;  %v809_v23 = vld [vmem:[%s1082_s1 + $0x10] ss:$8 sps:$4 sm:$0xff]  }
  0x13   : > { %571 = vmatpush1.bf16.msra.mxu1 %v818_v13  ;;  %v813_v24 = vld [vmem:[%s1082_s1 + $0x4] ss:$8 sps:$4 sm:$0xff]   ;;  %v836_v25 = vld [vmem:[%s1082_s1 + $0x130] ss:$8 sps:$4 sm:$0xff]   ;;  %s779_s24 = smul.u32 12, %s1088_s19  ;;  %v612_v58 = vshrl.u32 %v611_v57, 7 }
  0x14   : > { %572 = vmatprep.subr.bf16.mxu1 %v822_v15  ;;  %v840_v26 = vld [vmem:[%s1082_s1 + $0x124] ss:$8 sps:$4 sm:$0xff]   ;;  %v815_v27 = vld [vmem:[%s1082_s1] ss:$8 sps:$4 sm:$0xff]   ;;  %v819_v28 = vld [vmem:[%s1082_s1 + $0xf4] ss:$8 sps:$4 sm:$0xff]  }
  0x15   : > { %532 = vmatpush1.bf16.msra.mxu0 %v797_v6  ;;  %v842_v29 = vld [vmem:[%s1082_s1 + $0x120] ss:$8 sps:$4 sm:$0xff]   ;;  %s219_s10 = scalar_lea.vmem %s1081_s0, %s779_s24  ;;  %v846_v30 = vld [vmem:[%s1082_s1 + $0x114] ss:$8 sps:$4 sm:$0xff]   ;;  %v821_v31 = vld [vmem:[%s1082_s1 + $0xf0] ss:$8 sps:$4 sm:$0xff]  }
  0x16   : > { %533 = vmatprep.subr.bf16.mxu0 %v798_v7  ;;  %v825_v32 = vld [vmem:[%s1082_s1 + $0xe4] ss:$8 sps:$4 sm:$0xff]   ;;  %v848_v34 = vld [vmem:[%s1082_s1 + $0x110] ss:$8 sps:$4 sm:$0xff]   ;;  %v827_v37 = vld [vmem:[%s1082_s1 + $0xe0] ss:$8 sps:$4 sm:$0xff]  }
  0x17   : > { %573 = vmatpush1.bf16.msra.mxu1 %v824_v17  ;;  %v226_v33 = vld [vmem:[%s219_s10] sm:$0xff]  ;;  %v831_v38 = vld [vmem:[%s1082_s1 + $0xd4] ss:$8 sps:$4 sm:$0xff]   ;;  %v833_v40 = vld [vmem:[%s1082_s1 + $0xd0] ss:$8 sps:$4 sm:$0xff]   ;;  %v613_v59 = vsub.s32 0, %v612_v58 }
  0x18   : > { %574 = vmatprep.subr.bf16.mxu1 %v828_v18  ;;  %v724_v35 = vcombine.high %v226_v33, %v226_v33  ;;  %v852_v36 = vld [vmem:[%s1082_s1 + $0x104] ss:$8 sps:$4 sm:$0xff]   ;;  %v854_v39 = vld [vmem:[%s1082_s1 + $0x100] ss:$8 sps:$4 sm:$0xff]   ;;  %v843_v44 = vld [vmem:[%s1082_s1 + $0xb4] ss:$8 sps:$4 sm:$0xff]   ;;  %v723_v52 = vcombine.low %v226_v33, %v226_v33 }
  0x19   : > { %534 = vmatpush1.bf16.msra.mxu0 %v800_v10  ;;  %v837_v41 = vld [vmem:[%s1082_s1 + $0xc4] ss:$8 sps:$4 sm:$0xff]   ;;  %v858_v42 = vld [vmem:[%s219_s10 + $0x8] ss:$0 sps:$4 sm:$0xff]   ;;  %v845_v45 = vld [vmem:[%s1082_s1 + $0xb0] ss:$8 sps:$4 sm:$0xff]  }
  0x1a   : > { %535 = vmatprep.subr.bf16.mxu0 %v801_v11  ;;  %559 = vmatprep.mubr.bf16.mxu0 %v724_v35  ;;  %v839_v43 = vld [vmem:[%s1082_s1 + $0xc0] ss:$8 sps:$4 sm:$0xff]   ;;  %v849_v46 = vld [vmem:[%s1082_s1 + $0xa4] ss:$8 sps:$4 sm:$0xff]   ;;  %v855_v48 = vld [vmem:[%s1082_s1 + $0x94] ss:$8 sps:$4 sm:$0xff]  }
  0x1b   : > { %575 = vmatpush1.bf16.msra.mxu1 %v830_v21  ;;  %v851_v47 = vld [vmem:[%s1082_s1 + $0xa0] ss:$8 sps:$4 sm:$0xff]   ;;  %v857_v49 = vld [vmem:[%s1082_s1 + $0x90] ss:$8 sps:$4 sm:$0xff]   ;;  %v859_v50 = vld [vmem:[%s1082_s1 + $0x84] ss:$8 sps:$4 sm:$0xff]  }
  0x1c   : > { %576 = vmatprep.subr.bf16.mxu1 %v834_v22  ;;  %v861_v51 = vld [vmem:[%s1082_s1 + $0x80] ss:$8 sps:$4 sm:$0xff]   ;;  %v617_v61 = vsub.s32 1, %v612_v58  ;;  %s777_s9 = sshll.u32 %s1088_s19, 3 }
  0x1d   : > { %536 = vmatpush1.bf16.msra.mxu0 %v803_v14  ;;  %v609_v60 = vld [vmem:[%s1083_s2] sm:$0x3]  ;;  %s224_s13 = scalar_lea.vmem %s1086_s5, %s777_s9 }
  0x1e   : > { %537 = vmatprep.subr.bf16.mxu0 %v804_v16  ;;  %v623_v62 = vld [vmem:[%s1084_s3] sm:$0x3]  ;;  %v614_v63 = vrot.slane %v609_v60, %v613_v59  ;;  %v618_v3 = vrot.slane %v609_v60, %v617_v61 }
  0x1f   : > { %577 = vmatpush1.bf16.msra.mxu1 %v836_v25  ;;  %v628_v2 = vrot.slane %v623_v62, %v613_v59  ;;  %v637_v4 = vld [vmem:[%s1085_s4] sm:$0x3]  ;;  %v632_v8 = vrot.slane %v623_v62, %v617_v61 }
  0x20   : > { %578 = vmatprep.subr.bf16.mxu1 %v840_v26  ;;  %v642_v11 = vrot.slane %v637_v4, %v613_v59  ;;  %v646_v13 = vrot.slane %v637_v4, %v617_v61 }
  0x21   : > { %538 = vmatpush1.bf16.msra.mxu0 %v806_v19 }
  0x22   : > { %539 = vmatprep.subr.bf16.mxu0 %v807_v20 }
  0x23   : > { %579 = vmatpush1.bf16.msra.mxu1 %v842_v29 }
  0x24   : > { %580 = vmatprep.subr.bf16.mxu1 %v846_v30 }
  0x25   : > { %540 = vmatpush1.bf16.msra.mxu0 %v809_v23 }
  0x26   : > { %541 = vmatprep.subr.bf16.mxu0 %v813_v24 }
  0x27   : > { %581 = vmatpush1.bf16.msra.mxu1 %v848_v34 }
  0x28   : > { %582 = vmatprep.subr.bf16.mxu1 %v852_v36 }
  0x29   : > { %542 = vmatpush1.bf16.msra.mxu0 %v815_v27 }
  0x2a   : > { %543 = vmatprep.subr.bf16.mxu0 %v819_v28 }
  0x2b   : > { %583 = vmatpush1.bf16.msra.mxu1 %v854_v39 }
  0x2d   : > { %544 = vmatpush2.bf16.msra.mxu0 %v821_v31 }
  0x2e   : > { %545 = vmatprep.subr.bf16.mxu0 %v825_v32  ;;  %601 = vmatmul.mubr.bf16.vlgmr.msra.gmra.mxu1 %v858_v42 }
  0x31   : > { %546 = vmatpush2.bf16.msra.mxu0 %v827_v37 }
  0x32   : > { %547 = vmatprep.subr.bf16.mxu0 %v831_v38 }
  0x35   : > { %548 = vmatpush2.bf16.msra.mxu0 %v833_v40 }
  0x36   : > { %549 = vmatprep.subr.bf16.mxu0 %v837_v41 }
  0x39   : > { %550 = vmatpush2.bf16.msra.mxu0 %v839_v43 }
  0x3a   : > { %551 = vmatprep.subr.bf16.mxu0 %v843_v44 }
  0x3d   : > { %552 = vmatpush2.bf16.msra.mxu0 %v845_v45 }
  0x3e   : > { %553 = vmatprep.subr.bf16.mxu0 %v849_v46 }
  0x41   : > { %554 = vmatpush2.bf16.msra.mxu0 %v851_v47 }
  0x42   : > { %555 = vmatprep.subr.bf16.mxu0 %v855_v48 }
  0x45   : > { %556 = vmatpush2.bf16.msra.mxu0 %v857_v49 }
  0x46   : > { %557 = vmatprep.subr.bf16.mxu0 %v859_v50 }
  0x49   : > { %558 = vmatpush2.bf16.msra.mxu0 %v861_v51 }
  0x4c   : > { %560 = vmatmul.mubr.bf16.vlgmr.msra.gmra.mxu0 %v723_v52 }
  0xee   : > { %v602_v53 = vpop.f32.mrf.mxu1 }
  0xf0   : > { %v604_v54 = vpop.f32.mrf.mxu1 }
  0xf2   : > { %v606_v55 = vpop.f32.mrf.mxu1 }
  0xf4   : > { %v607_v56 = vpop.f32.mrf.mxu1 }
 0x10c   : > { %v561_v0 = vpop.f32.mrf.mxu0 }
 0x10d   : > { %v603_v1 = vadd.f32 %v602_v53, %v561_v0 }
 0x10e   : > { %v563_v5 = vpop.f32.mrf.mxu0 }
 0x10f   : > { %v621_v6 = vmul.f32 %v614_v63, %v603_v1  ;;  %v605_v7 = vadd.f32 %v604_v54, %v563_v5 }
 0x110   : > { %v565_v9 = vpop.f32.mrf.mxu0 }
 0x111   : > { %v635_v10 = vadd.f32 %v628_v2, %v621_v6  ;;  %v622_v12 = vmul.f32 %v618_v3, %v605_v7 }
 0x112   : > { %v566_v14 = vpop.f32.mrf.mxu0 }
 0x113   : > { %v636_v15 = vadd.f32 %v632_v8, %v622_v12  ;;  %v649_v16 = vmax.f32 %v635_v10, %v642_v11 }
 0x115   : > { %v650_v17 = vmax.f32 %v636_v15, %v646_v13 }
 0x117   : > { %v778_v18 = vpack.c.bf16 %v650_v17, %v649_v16 }
 0x119   : > { %659 = vst [vmem:[%s224_s13] sm:$0xff] %v778_v18 }
 0x11a PF: > { %s15_s18 = sadd.s32 1, %s870_s18  }
 0x11b   : > { %p12_p4 = scmp.ge.s32.totalorder %s15_s18, 4  }
 0x11d   :  { %14 = sbr.rel (!%p12_p4) target bundleno = 1 (0x1), region = 70 }

// kernel: network_forward.64
= control target key start
LH: loop header
LB: loop body
LE: loop exit
PB: predicated region body
PF: predicated region fallthrough
CT: control target
= control target key end

     0   :  { %s1015_s18 = smov 0   ;;  %s1174_s0 = inlined_call_operand.vmem [shape: bf16[16,640], index: 0, kind: input, shape index: {}]   ;;  %s1175_s1 = inlined_call_operand.vmem [shape: bf16[640,128], index: 1, kind: input, shape index: {}]   ;;  %s1176_s2 = inlined_call_operand.vmem [shape: f32[1,128], index: 2, kind: input, shape index: {}]   ;;  %s1177_s3 = inlined_call_operand.vmem [shape: f32[1,128], index: 3, kind: input, shape index: {}]   ;;  %s1178_s4 = inlined_call_operand.vmem [shape: bf16[16,128], index: 4, kind: input, shape index: {}]   ;;  %s1179_s5 = inlined_call_operand.vmem [shape: bf16[16,128], index: 5, kind: output, shape index: {}]  }
   0x1 LB: > { %s789_s19 = sadd.s32 4294967295, %s981_s18   ;;  %p793_p0 = scmp.ge.s32.totalorder %s981_s18, 1  ;;  %s981_s18 = sphi %s1015_s18, %s15_s18  }
   0x2   : > { %p196_p1 = scmp.lt.s32.totalorder %s981_s18, 3 }
   0x4   : > { %p197_p2 = pnand %p793_p0, %p196_p1 }
   0x5   : > { %p227_p3 = scmp.lt.s32.totalorder (!%p197_p2), %s789_s19, 1 }
   0x6   : > { %200 = sbr.rel (%p197_p2) target bundleno = 283 (0x11b), region = 40 }
   0xb   : > { %v930_v0 = vld [vmem:[%s1175_s1 + $0x78] sm:$0xff]   ;;  %v934_v4 = vld [vmem:[%s1175_s1 + $0x70] sm:$0xff]   ;;  %v938_v8 = vld [vmem:[%s1175_s1 + $0x68] sm:$0xff]   ;;  %s1181_s19 = smov (!%p227_p3, %s789_s19), 1  ;;  %v983_v36 = vmov 0.0   ;;  %vm984_vm0 = vmmov 0  }
   0xc   : > { %v931_v1 = vld [vmem:[%s1175_s1 + $0xf8] sm:$0xff]   ;;  %846 = vmatprep.subr.bf16.mxu0 %v930_v0  ;;  %v935_v5 = vld [vmem:[%s1175_s1 + $0xf0] sm:$0xff]   ;;  %v939_v9 = vld [vmem:[%s1175_s1 + $0xe8] sm:$0xff]   ;;  %s919_s26 = smul.u32 20, %s1181_s19  ;;  %s795_s10 = sshll.u32 %s1181_s19, 2 }
   0xd   : > { %v932_v2 = vld [vmem:[%s1175_s1 + $0x38] sm:$0xff]   ;;  %868 = vmatprep.subr.bf16.mxu1 %v931_v1  ;;  %v936_v6 = vld [vmem:[%s1175_s1 + $0x30] sm:$0xff]   ;;  %v940_v10 = vld [vmem:[%s1175_s1 + $0x28] sm:$0xff]   ;;  %s235_s14 = scalar_lea.vmem %s1178_s4, %s795_s10  ;;  %s239_s21 = scalar_lea.vmem %s1179_s5, %s795_s10 }
   0xe   : > { %v933_v3 = vld [vmem:[%s1175_s1 + $0xb8] sm:$0xff]   ;;  %847 = vmatpush3.bf16.msra.mxu0 %v932_v2  ;;  %v937_v7 = vld [vmem:[%s1175_s1 + $0xb0] sm:$0xff]   ;;  %v941_v11 = vld [vmem:[%s1175_s1 + $0xa8] sm:$0xff]   ;;  %s1123_s12 = scalar_lea.vmem %s1174_s0, %s919_s26 }
   0xf   : > { %869 = vmatpush3.bf16.msra.mxu1 %v933_v3  ;;  %848 = vmatprep.subr.bf16.mxu0 %v934_v4  ;;  %v942_v12 = vld [vmem:[%s1175_s1 + $0x60] sm:$0xff]   ;;  %v946_v16 = vld [vmem:[%s1175_s1 + $0x58] sm:$0xff]   ;;  %v950_v20 = vld [vmem:[%s1175_s1 + $0x50] sm:$0xff]  }
  0x10   : > { %870 = vmatprep.subr.bf16.mxu1 %v935_v5  ;;  %v943_v13 = vld [vmem:[%s1175_s1 + $0xe0] sm:$0xff]   ;;  %v947_v17 = vld [vmem:[%s1175_s1 + $0xd8] sm:$0xff]   ;;  %v951_v21 = vld [vmem:[%s1175_s1 + $0xd0] sm:$0xff]  }
  0x11   : > { %v944_v14 = vld [vmem:[%s1175_s1 + $0x20] sm:$0xff]   ;;  %v948_v18 = vld [vmem:[%s1175_s1 + $0x18] sm:$0xff]   ;;  %v952_v22 = vld [vmem:[%s1175_s1 + $0x10] sm:$0xff]  }
  0x12   : > { %849 = vmatpush3.bf16.msra.mxu0 %v936_v6  ;;  %v945_v15 = vld [vmem:[%s1175_s1 + $0xa0] sm:$0xff]   ;;  %v949_v19 = vld [vmem:[%s1175_s1 + $0x98] sm:$0xff]   ;;  %v953_v23 = vld [vmem:[%s1175_s1 + $0x90] sm:$0xff]  }
  0x13   : > { %871 = vmatpush3.bf16.msra.mxu1 %v937_v7  ;;  %850 = vmatprep.subr.bf16.mxu0 %v938_v8  ;;  %v954_v24 = vld [vmem:[%s1175_s1 + $0x48] sm:$0xff]   ;;  %v958_v28 = vld [vmem:[%s1175_s1 + $0x40] sm:$0xff]   ;;  %v967_v39 = vld [vmem:[%s1175_s1 + $0x138] sm:$0xff]  }
  0x14   : > { %872 = vmatprep.subr.bf16.mxu1 %v939_v9  ;;  %v955_v25 = vld [vmem:[%s1175_s1 + $0xc8] sm:$0xff]   ;;  %v959_v29 = vld [vmem:[%s1175_s1 + $0xc0] sm:$0xff]   ;;  %v968_v40 = vld [vmem:[%s1175_s1 + $0x130] sm:$0xff]  }
  0x15   : > { %v956_v26 = vld [vmem:[%s1175_s1 + $0x8] sm:$0xff]   ;;  %v960_v30 = vld [vmem:[%s1175_s1] sm:$0xff]   ;;  %v971_v43 = vld [vmem:[%s1175_s1 + $0x118] sm:$0xff]  }
  0x16   : > { %851 = vmatpush3.bf16.msra.mxu0 %v940_v10  ;;  %v957_v27 = vld [vmem:[%s1175_s1 + $0x88] sm:$0xff]   ;;  %v961_v31 = vld [vmem:[%s1175_s1 + $0x80] sm:$0xff]   ;;  %v972_v44 = vld [vmem:[%s1175_s1 + $0x110] sm:$0xff]  }
  0x17   : > { %873 = vmatpush3.bf16.msra.mxu1 %v941_v11  ;;  %852 = vmatprep.subr.bf16.mxu0 %v942_v12  ;;  %v241_v32 = vld [vmem:[%s1123_s12] sm:$0xff]  ;;  %v242_v35 = vld [vmem:[%s1123_s12 + $0x8] sm:$0xff]  ;;  %v964_v47 = vld [vmem:[%s1123_s12 + $0x10] ss:$0 sps:$4 sm:$0xff]  }
  0x18   : > { %874 = vmatprep.subr.bf16.mxu1 %v943_v13  ;;  %v797_v33 = vcombine.low %v241_v32, %v241_v32  ;;  %v798_v34 = vcombine.high %v241_v32, %v241_v32  ;;  %v799_v37 = vcombine.low %v242_v35, %v242_v35  ;;  %v800_v38 = vcombine.high %v242_v35, %v242_v35  ;;  %v969_v41 = vld [vmem:[%s1175_s1 + $0x128] sm:$0xff]   ;;  %v970_v42 = vld [vmem:[%s1175_s1 + $0x120] sm:$0xff]  }
  0x19   : > { %v973_v45 = vld [vmem:[%s1175_s1 + $0x108] sm:$0xff]   ;;  %v974_v46 = vld [vmem:[%s1175_s1 + $0x100] sm:$0xff]  }
  0x1a   : > { %853 = vmatpush3.bf16.msra.mxu0 %v944_v14  ;;  %614 = vmatprep.mubr.bf16.mxu0 %v798_v34  ;;  %v842_v60 = vld [vmem:[%s1176_s2] ss:$0 sm:$0xff] }
  0x1b   : > { %875 = vmatpush3.bf16.msra.mxu1 %v945_v15  ;;  %854 = vmatprep.subr.bf16.mxu0 %v946_v16  ;;  %v718_v61 = vld [vmem:[%s235_s14] sm:$0xf] }
  0x1c   : > { %876 = vmatprep.subr.bf16.mxu1 %v947_v17  ;;  %654 = vmatprep.mubr.bf16.mxu1 %v800_v38  ;;  %v843_v63 = vld [vmem:[%s1177_s3] ss:$0 sm:$0xff]  ;;  %v719_v2 = vunpack.c.l.bf16 %v718_v61 }
  0x1e   : > { %855 = vmatpush3.bf16.msra.mxu0 %v948_v18 }
  0x1f   : > { %877 = vmatpush3.bf16.msra.mxu1 %v949_v19  ;;  %856 = vmatprep.subr.bf16.mxu0 %v950_v20 }
  0x20   : > { %878 = vmatprep.subr.bf16.mxu1 %v951_v21 }
  0x22   : > { %857 = vmatpush3.bf16.msra.mxu0 %v952_v22 }
  0x23   : > { %879 = vmatpush3.bf16.msra.mxu1 %v953_v23  ;;  %858 = vmatprep.subr.bf16.mxu0 %v954_v24 }
  0x24   : > { %880 = vmatprep.subr.bf16.mxu1 %v955_v25 }
  0x26   : > { %859 = vmatpush3.bf16.msra.mxu0 %v956_v26 }
  0x27   : > { %881 = vmatpush3.bf16.msra.mxu1 %v957_v27  ;;  %860 = vmatprep.subr.bf16.mxu0 %v958_v28 }
  0x28   : > { %882 = vmatprep.subr.bf16.mxu1 %v959_v29 }
  0x2a   : > { %861 = vmatpush3.bf16.msra.mxu0 %v960_v30 }
  0x2b   : > { %883 = vmatpush3.bf16.msra.mxu1 %v961_v31  ;;  %899 = vmatprep.subr.bf16.mxu0 %v983_v36 }
  0x2d   : > { %615 = vmatmul.mubr.bf16.vlgmr.msra.gmra.mxu0 %v797_v33 }
  0x2e   : > { %655 = vmatmul.mubr.bf16.vlgmr.msra.gmra.mxu1 %v799_v37  ;;  %900 = vmatpush3.bf16.msra.mxu0 %v967_v39 }
  0x2f   : > { %901 = vmatprep.subr.bf16.mxu0 %v983_v36  ;;  %915 = vmatprep.mubr.msk.bf16.mxu0 %vm984_vm0, %v983_v36 }
  0x32   : > { %902 = vmatpush3.bf16.msra.mxu0 %v968_v40 }
  0x33   : > { %903 = vmatprep.subr.bf16.mxu0 %v983_v36 }
  0x36   : > { %904 = vmatpush3.bf16.msra.mxu0 %v969_v41 }
  0x37   : > { %905 = vmatprep.subr.bf16.mxu0 %v983_v36 }
  0x3a   : > { %906 = vmatpush3.bf16.msra.mxu0 %v970_v42 }
  0x3b   : > { %907 = vmatprep.subr.bf16.mxu0 %v983_v36 }
  0x3e   : > { %908 = vmatpush3.bf16.msra.mxu0 %v971_v43 }
  0x3f   : > { %909 = vmatprep.subr.bf16.mxu0 %v983_v36 }
  0x42   : > { %910 = vmatpush3.bf16.msra.mxu0 %v972_v44 }
  0x43   : > { %911 = vmatprep.subr.bf16.mxu0 %v983_v36 }
  0x46   : > { %912 = vmatpush3.bf16.msra.mxu0 %v973_v45 }
  0x47   : > { %913 = vmatprep.subr.bf16.mxu0 %v983_v36 }
  0x4a   : > { %914 = vmatpush3.bf16.msra.mxu0 %v974_v46 }
  0x4d   : > { %916 = vmatmul.mubr.bf16.vlgmr.msra.gmra.mxu0 %v964_v47 }
  0xed   : > { %v862_v48 = vpop.f32.mrf.mxu0 }
  0xee   : > { %v884_v49 = vpop.f32.mrf.mxu1 }
  0xef   : > { %v863_v50 = vpop.f32.mrf.mxu0 }
  0xf0   : > { %v885_v51 = vpop.f32.mrf.mxu1  ;;  %v864_v56 = vadd.f32 %v863_v50, %v862_v48 }
  0xf1   : > { %v865_v52 = vpop.f32.mrf.mxu0  ;;  %v886_v57 = vadd.f32 %v885_v51, %v884_v49 }
  0xf2   : > { %v887_v53 = vpop.f32.mrf.mxu1 }
  0xf3   : > { %v866_v54 = vpop.f32.mrf.mxu0  ;;  %v657_v58 = vadd.f32 %v886_v57, %v864_v56 }
  0xf4   : > { %v888_v55 = vpop.f32.mrf.mxu1 }
 0x10d   : > { %v696_v59 = vpop.f32.mrf.mxu0 }
 0x10e   : > { %v697_v62 = vadd.f32 %v696_v59, %v657_v58 }
 0x10f   : > { %v917_v0 = vpop.f32.mrf.mxu0 }
 0x110   : > { %v709_v1 = vmul.f32 %v842_v60, %v697_v62 }
 0x111   : > { %v699_v3 = vpop.f32.mrf.mxu0 }
 0x112   : > { %v717_v4 = vadd.f32 %v843_v63, %v709_v1 }
 0x113   : > { %v918_v5 = vpop.f32.mrf.mxu0 }
 0x114   : > { %v720_v6 = vadd.f32 %v719_v2, %v717_v4 }
 0x116   : > { %v721_v7 = vmax.f32 %v720_v6, 0.0 }
 0x118   : > { %v722_v8 = vpack.c.bf16 %v721_v7, %v721_v7 }
 0x11a   : > { %723 = vst [vmem:[%s239_s21] sm:$0xf] %v722_v8 }
 0x11b PF: > { %s15_s18 = sadd.s32 1, %s981_s18  }
 0x11c   : > { %p12_p4 = scmp.ge.s32.totalorder %s15_s18, 4  }
 0x11e   :  { %14 = sbr.rel (!%p12_p4) target bundleno = 1 (0x1), region = 73 }

// kernel: network_forward.69
= control target key start
LH: loop header
LB: loop body
LE: loop exit
PB: predicated region body
PF: predicated region fallthrough
CT: control target
= control target key end

     0   :  { %10 = vsyncpa [#allocation3], 0  ;;  %v26_v1 = vlaneseq  ;;  %v261_v2 = vmov 0.0   ;;  %vm262_vm0 = vmmov 0   ;;  %s353_s0 = inlined_call_operand.vmem [shape: bf16[2,1,128], index: 0, kind: input, shape index: {}]   ;;  %s354_s1 = inlined_call_operand.vmem [shape: f32[128,128], index: 1, kind: input, shape index: {}]   ;;  %s355_s2 = inlined_call_operand.vmem [shape: f32[1,128], index: 2, kind: input, shape index: {}]   ;;  %s356_s3 = inlined_call_operand.hbm [shape: f32[2,128], index: 3, kind: output, shape index: {0}]   ;;  %s357_s4 = inlined_call_operand.hbm [shape: f32[2,128], index: 4, kind: output, shape index: {1}]  }
   0x1   :  { %v53_v0 = vld [vmem:[%s354_s1 + $0x78] sm:$0xff]  ;;  %178 = vmatprep.subr.mxu0 %v261_v2  ;;  %v52_v3 = vld [vmem:[%s354_s1 + $0x70] sm:$0xff]  ;;  %210 = vmatprep.mubr.msk.f32.mxu0 %vm262_vm0, %v261_v2  ;;  %v51_v5 = vld [vmem:[%s354_s1 + $0x68] sm:$0xff] }
   0x2   :  { %179 = vmatpush3.msra.mxu0 %v53_v0  ;;  %v27_v4 = vshrl.u32 %v26_v1, 7  ;;  %v50_v7 = vld [vmem:[%s354_s1 + $0x60] sm:$0xff] }
   0x3   :  { %180 = vmatprep.subr.mxu0 %v261_v2  ;;  %v18_v8 = vld [vmem:[%s353_s0] sm:$0x1]  ;;  %v19_v9 = vld [vmem:[%s353_s0 + $0x1] sm:$0x1] }
   0x4   :  { %181 = vmatpush3.msra.mxu0 %v52_v3  ;;  %v28_v6 = vsub.s32 0, %v27_v4  ;;  %v20_v10 = vunpack.c.l.bf16 %v18_v8  ;;  %v21_v11 = vunpack.c.l.bf16 %v19_v9 }
   0x5   :  { %182 = vmatprep.subr.mxu0 %v261_v2 }
   0x6   :  { %183 = vmatpush3.msra.mxu0 %v51_v5 }
   0x7   :  { %11 = vsyncpa [#allocation5], 0  ;;  %184 = vmatprep.subr.mxu0 %v261_v2  ;;  %v49_v12 = vld [vmem:[%s354_s1 + $0x58] sm:$0xff]  ;;  %vm34_vm1 = vcmask 1041409   ;;  %v29_v13 = vrot.slane %v20_v10, %v28_v6  ;;  %v33_v14 = vrot.slane %v21_v11, %v28_v6  ;;  %v48_v15 = vld [vmem:[%s354_s1 + $0x50] sm:$0xff]  ;;  %s263_s24 = smov [#allocation2]  }
   0x8   :  { %185 = vmatpush3.msra.mxu0 %v50_v7  ;;  %v47_v17 = vld [vmem:[%s354_s1 + $0x48] sm:$0xff]  ;;  %v46_v18 = vld [vmem:[%s354_s1 + $0x40] sm:$0xff]  ;;  %v45_v19 = vld [vmem:[%s354_s1 + $0x38] sm:$0xff]  ;;  %s138_s25 = sshll.u32 %s263_s24, 4  ;;  %s139_s25 = int_to_ptr.vmem [resolvable:$true] %s138_s25 }
   0x9   :  { %186 = vmatprep.subr.mxu0 %v261_v2  ;;  %v35_v16 = vsel %vm34_vm1, %v33_v14, %v29_v13  ;;  %v44_v20 = vld [vmem:[%s354_s1 + $0x30] sm:$0xff]  ;;  %v43_v21 = vld [vmem:[%s354_s1 + $0x28] sm:$0xff]  ;;  %v42_v22 = vld [vmem:[%s354_s1 + $0x20] sm:$0xff]  ;;  %s217_s26 = scalar_lea.vmem %s139_s25, 32  ;;  %p222_p1 = scmp.lt.s32.totalorder %s139_s25, %s139_s25 }
   0xa   :  { %187 = vmatpush3.msra.mxu0 %v49_v12  ;;  %37 = vst [vmem:[#allocation2] sm:$0x3] %v35_v16  ;;  %v41_v23 = vld [vmem:[%s354_s1 + $0x18] sm:$0xff]  ;;  %v40_v24 = vld [vmem:[%s354_s1 + $0x10] sm:$0xff]  ;;  %v39_v25 = vld [vmem:[%s354_s1 + $0x8] sm:$0xff]  ;;  %p218_p0 = scmp.ne.s32.totalorder %s139_s25, %s217_s26  ;;  %p223_p2 = scmp.lt.s32.totalorder %s217_s26, %s217_s26 }
   0xb   :  { %188 = vmatprep.subr.mxu0 %v261_v2  ;;  %v38_v26 = vld [vmem:[%s354_s1] sm:$0xff] }
   0xc   :  { %189 = vmatpush3.msra.mxu0 %v48_v15  ;;  %p224_p3 = por %p223_p2, %p222_p1 }
   0xd   :  { %190 = vmatprep.subr.mxu0 %v261_v2 }
   0xe   :  { %191 = vmatpush3.msra.mxu0 %v47_v17  ;;  %p225_p4 = pnand %p224_p3, %p218_p0 }
   0xf   :  { %192 = vmatprep.subr.mxu0 %v261_v2 }
  0x10   :  { %193 = vmatpush3.msra.mxu0 %v46_v18 }
  0x11   :  { %194 = vmatprep.subr.mxu0 %v261_v2 }
  0x12   :  { %195 = vmatpush3.msra.mxu0 %v45_v19 }
  0x13   :  { %196 = vmatprep.subr.mxu0 %v261_v2 }
  0x14   :  { %197 = vmatpush3.msra.mxu0 %v44_v20 }
  0x15   :  { %198 = vmatprep.subr.mxu0 %v261_v2 }
  0x16   :  { %199 = vmatpush3.msra.mxu0 %v43_v21 }
  0x17   :  { %200 = vmatprep.subr.mxu0 %v261_v2 }
  0x18   :  { %201 = vmatpush3.msra.mxu0 %v42_v22 }
  0x19   :  { %202 = vmatprep.subr.mxu0 %v261_v2 }
  0x1a   :  { %203 = vmatpush3.msra.mxu0 %v41_v23 }
  0x1b   :  { %204 = vmatprep.subr.mxu0 %v261_v2 }
  0x1c   :  { %205 = vmatpush3.msra.mxu0 %v40_v24 }
  0x1d   :  { %206 = vmatprep.subr.mxu0 %v261_v2 }
  0x1e   :  { %207 = vmatpush3.msra.mxu0 %v39_v25 }
  0x1f   :  { %208 = vmatprep.subr.mxu0 %v261_v2 }
  0x20   :  { %209 = vmatpush3.msra.mxu0 %v38_v26 }
  0x21   :  { %211 = vmatmul.mubr.f32.vlgmr.msra.gmra.mxu0 %v35_v16 }
  0x22   :  { %228 = shalt.err (!%p225_p4)
}
  0x23   :  { %141 = dma.vmem_to_hbm [thread:$0]  %s139_s25, 32, %s356_s3, [#allocation3]   ;;  %v160_v27 = vld [vmem:[%s355_s2] ss:$0 sm:$0xff] }
  0x24   :  { %s264_s30 = smov [#allocation4]  }
  0x25   :  { %s148_s0 = sshll.u32 %s264_s30, 4  ;;  %s149_s0 = int_to_ptr.vmem [resolvable:$true] %s148_s0 }
  0x26   :  { %s237_s5 = scalar_lea.vmem %s149_s0, 32  ;;  %p242_p6 = scmp.lt.s32.totalorder %s149_s0, %s149_s0 }
  0x27   :  { %p238_p5 = scmp.ne.s32.totalorder %s149_s0, %s237_s5  ;;  %p243_p7 = scmp.lt.s32.totalorder %s237_s5, %s237_s5 }
  0x29   :  { %p244_p8 = por %p243_p7, %p242_p6 }
  0x2b   :  { %p245_p9 = pnand %p244_p8, %p238_p5 }
  0xe1   :  { %v127_v28 = vpop.f32.mrf.mxu0 }
  0xe2   :  { %v128_v29 = vadd.f32 %v160_v27, %v127_v28 }
  0xe3   :  { %v212_v30 = vpop.f32.mrf.mxu0 }
  0xe4   :  { %131 = vst [vmem:[#allocation4] sm:$0x3] %v128_v29 }
  0xe5   :  { %248 = shalt.err (!%p245_p9)
}
  0xe6   :  { %151 = dma.vmem_to_hbm [thread:$0]  %s149_s0, 32, %s357_s4, [#allocation5]  }
  0xe7   :  { %257 = dma.done.wait [#allocation3], 32  }
  0xe8   :  { %258 = vsyncadd [#allocation3], 4294967264 }
  0xe9   :  { %259 = dma.done.wait [#allocation5], 32  }
  0xea   :  { %260 = vsyncadd [#allocation5], 4294967264 }
  0xeb   :  { %158 = vsyncpa [#allocation3], 1 }
  0xec   :  { %159 = vsyncpa [#allocation5], 1 }

// kernel: network_forward.65
= control target key start
LH: loop header
LB: loop body
LE: loop exit
PB: predicated region body
PF: predicated region fallthrough
CT: control target
= control target key end

     0   :  { %s990_s18 = smov 0   ;;  %s1149_s0 = inlined_call_operand.vmem [shape: bf16[16,640], index: 0, kind: input, shape index: {}]   ;;  %s1150_s1 = inlined_call_operand.vmem [shape: bf16[640,128], index: 1, kind: input, shape index: {}]   ;;  %s1151_s2 = inlined_call_operand.vmem [shape: f32[1,128], index: 2, kind: input, shape index: {}]   ;;  %s1152_s3 = inlined_call_operand.vmem [shape: f32[1,128], index: 3, kind: input, shape index: {}, may-alias: {3,4}]   ;;  %s1153_s4 = inlined_call_operand.vmem [shape: f32[1,128], index: 4, kind: input, shape index: {}, may-alias: {3,4}]   ;;  %s1154_s5 = inlined_call_operand.vmem [shape: bf16[16,128], index: 5, kind: output, shape index: {}]  }
   0x1 LB: > { %s764_s19 = sadd.s32 4294967295, %s956_s18   ;;  %p768_p0 = scmp.ge.s32.totalorder %s956_s18, 1  ;;  %s956_s18 = sphi %s990_s18, %s15_s18  }
   0x2   : > { %p187_p1 = scmp.lt.s32.totalorder %s956_s18, 3 }
   0x4   : > { %p188_p2 = pnand %p768_p0, %p187_p1 }
   0x5   : > { %p214_p3 = scmp.lt.s32.totalorder (!%p188_p2), %s764_s19, 1 }
   0x6   : > { %191 = sbr.rel (%p188_p2) target bundleno = 281 (0x119), region = 40 }
   0xb   : > { %v905_v0 = vld [vmem:[%s1150_s1 + $0x78] sm:$0xff]   ;;  %v909_v4 = vld [vmem:[%s1150_s1 + $0x70] sm:$0xff]   ;;  %v913_v8 = vld [vmem:[%s1150_s1 + $0x68] sm:$0xff]   ;;  %s1156_s19 = smov (!%p214_p3, %s764_s19), 1  ;;  %v958_v36 = vmov 0.0   ;;  %vm959_vm0 = vmmov 0  }
   0xc   : > { %v906_v1 = vld [vmem:[%s1150_s1 + $0xf8] sm:$0xff]   ;;  %821 = vmatprep.subr.bf16.mxu0 %v905_v0  ;;  %v910_v5 = vld [vmem:[%s1150_s1 + $0xf0] sm:$0xff]   ;;  %v914_v9 = vld [vmem:[%s1150_s1 + $0xe8] sm:$0xff]   ;;  %s894_s26 = smul.u32 20, %s1156_s19  ;;  %s770_s16 = sshll.u32 %s1156_s19, 2 }
   0xd   : > { %v907_v2 = vld [vmem:[%s1150_s1 + $0x38] sm:$0xff]   ;;  %843 = vmatprep.subr.bf16.mxu1 %v906_v1  ;;  %v911_v6 = vld [vmem:[%s1150_s1 + $0x30] sm:$0xff]   ;;  %v915_v10 = vld [vmem:[%s1150_s1 + $0x28] sm:$0xff]   ;;  %s222_s21 = scalar_lea.vmem %s1154_s5, %s770_s16 }
   0xe   : > { %v908_v3 = vld [vmem:[%s1150_s1 + $0xb8] sm:$0xff]   ;;  %822 = vmatpush3.bf16.msra.mxu0 %v907_v2  ;;  %v912_v7 = vld [vmem:[%s1150_s1 + $0xb0] sm:$0xff]   ;;  %v916_v11 = vld [vmem:[%s1150_s1 + $0xa8] sm:$0xff]   ;;  %s1098_s12 = scalar_lea.vmem %s1149_s0, %s894_s26 }
   0xf   : > { %844 = vmatpush3.bf16.msra.mxu1 %v908_v3  ;;  %823 = vmatprep.subr.bf16.mxu0 %v909_v4  ;;  %v917_v12 = vld [vmem:[%s1150_s1 + $0x60] sm:$0xff]   ;;  %v921_v16 = vld [vmem:[%s1150_s1 + $0x58] sm:$0xff]   ;;  %v925_v20 = vld [vmem:[%s1150_s1 + $0x50] sm:$0xff]  }
  0x10   : > { %845 = vmatprep.subr.bf16.mxu1 %v910_v5  ;;  %v918_v13 = vld [vmem:[%s1150_s1 + $0xe0] sm:$0xff]   ;;  %v922_v17 = vld [vmem:[%s1150_s1 + $0xd8] sm:$0xff]   ;;  %v926_v21 = vld [vmem:[%s1150_s1 + $0xd0] sm:$0xff]  }
  0x11   : > { %v919_v14 = vld [vmem:[%s1150_s1 + $0x20] sm:$0xff]   ;;  %v923_v18 = vld [vmem:[%s1150_s1 + $0x18] sm:$0xff]   ;;  %v927_v22 = vld [vmem:[%s1150_s1 + $0x10] sm:$0xff]  }
  0x12   : > { %824 = vmatpush3.bf16.msra.mxu0 %v911_v6  ;;  %v920_v15 = vld [vmem:[%s1150_s1 + $0xa0] sm:$0xff]   ;;  %v924_v19 = vld [vmem:[%s1150_s1 + $0x98] sm:$0xff]   ;;  %v928_v23 = vld [vmem:[%s1150_s1 + $0x90] sm:$0xff]  }
  0x13   : > { %846 = vmatpush3.bf16.msra.mxu1 %v912_v7  ;;  %825 = vmatprep.subr.bf16.mxu0 %v913_v8  ;;  %v929_v24 = vld [vmem:[%s1150_s1 + $0x48] sm:$0xff]   ;;  %v933_v28 = vld [vmem:[%s1150_s1 + $0x40] sm:$0xff]   ;;  %v942_v39 = vld [vmem:[%s1150_s1 + $0x138] sm:$0xff]  }
  0x14   : > { %847 = vmatprep.subr.bf16.mxu1 %v914_v9  ;;  %v930_v25 = vld [vmem:[%s1150_s1 + $0xc8] sm:$0xff]   ;;  %v934_v29 = vld [vmem:[%s1150_s1 + $0xc0] sm:$0xff]   ;;  %v943_v40 = vld [vmem:[%s1150_s1 + $0x130] sm:$0xff]  }
  0x15   : > { %v931_v26 = vld [vmem:[%s1150_s1 + $0x8] sm:$0xff]   ;;  %v935_v30 = vld [vmem:[%s1150_s1] sm:$0xff]   ;;  %v946_v43 = vld [vmem:[%s1150_s1 + $0x118] sm:$0xff]  }
  0x16   : > { %826 = vmatpush3.bf16.msra.mxu0 %v915_v10  ;;  %v932_v27 = vld [vmem:[%s1150_s1 + $0x88] sm:$0xff]   ;;  %v936_v31 = vld [vmem:[%s1150_s1 + $0x80] sm:$0xff]   ;;  %v947_v44 = vld [vmem:[%s1150_s1 + $0x110] sm:$0xff]  }
  0x17   : > { %848 = vmatpush3.bf16.msra.mxu1 %v916_v11  ;;  %827 = vmatprep.subr.bf16.mxu0 %v917_v12  ;;  %v224_v32 = vld [vmem:[%s1098_s12] sm:$0xff]  ;;  %v225_v35 = vld [vmem:[%s1098_s12 + $0x8] sm:$0xff]  ;;  %v939_v47 = vld [vmem:[%s1098_s12 + $0x10] ss:$0 sps:$4 sm:$0xff]  }
  0x18   : > { %849 = vmatprep.subr.bf16.mxu1 %v918_v13  ;;  %v771_v33 = vcombine.low %v224_v32, %v224_v32  ;;  %v772_v34 = vcombine.high %v224_v32, %v224_v32  ;;  %v773_v37 = vcombine.low %v225_v35, %v225_v35  ;;  %v774_v38 = vcombine.high %v225_v35, %v225_v35  ;;  %v944_v41 = vld [vmem:[%s1150_s1 + $0x128] sm:$0xff]   ;;  %v945_v42 = vld [vmem:[%s1150_s1 + $0x120] sm:$0xff]  }
  0x19   : > { %v948_v45 = vld [vmem:[%s1150_s1 + $0x108] sm:$0xff]   ;;  %v949_v46 = vld [vmem:[%s1150_s1 + $0x100] sm:$0xff]  }
  0x1a   : > { %828 = vmatpush3.bf16.msra.mxu0 %v919_v14  ;;  %597 = vmatprep.mubr.bf16.mxu0 %v772_v34  ;;  %v816_v60 = vld [vmem:[%s1151_s2] ss:$0 sm:$0xff] }
  0x1b   : > { %850 = vmatpush3.bf16.msra.mxu1 %v920_v15  ;;  %829 = vmatprep.subr.bf16.mxu0 %v921_v16  ;;  %v817_v62 = vld [vmem:[%s1152_s3] ss:$0 sm:$0xff] }
  0x1c   : > { %851 = vmatprep.subr.bf16.mxu1 %v922_v17  ;;  %637 = vmatprep.mubr.bf16.mxu1 %v774_v38  ;;  %v818_v1 = vld [vmem:[%s1153_s4] ss:$0 sm:$0xff] }
  0x1e   : > { %830 = vmatpush3.bf16.msra.mxu0 %v923_v18 }
  0x1f   : > { %852 = vmatpush3.bf16.msra.mxu1 %v924_v19  ;;  %831 = vmatprep.subr.bf16.mxu0 %v925_v20 }
  0x20   : > { %853 = vmatprep.subr.bf16.mxu1 %v926_v21 }
  0x22   : > { %832 = vmatpush3.bf16.msra.mxu0 %v927_v22 }
  0x23   : > { %854 = vmatpush3.bf16.msra.mxu1 %v928_v23  ;;  %833 = vmatprep.subr.bf16.mxu0 %v929_v24 }
  0x24   : > { %855 = vmatprep.subr.bf16.mxu1 %v930_v25 }
  0x26   : > { %834 = vmatpush3.bf16.msra.mxu0 %v931_v26 }
  0x27   : > { %856 = vmatpush3.bf16.msra.mxu1 %v932_v27  ;;  %835 = vmatprep.subr.bf16.mxu0 %v933_v28 }
  0x28   : > { %857 = vmatprep.subr.bf16.mxu1 %v934_v29 }
  0x2a   : > { %836 = vmatpush3.bf16.msra.mxu0 %v935_v30 }
  0x2b   : > { %858 = vmatpush3.bf16.msra.mxu1 %v936_v31  ;;  %874 = vmatprep.subr.bf16.mxu0 %v958_v36 }
  0x2d   : > { %598 = vmatmul.mubr.bf16.vlgmr.msra.gmra.mxu0 %v771_v33 }
  0x2e   : > { %638 = vmatmul.mubr.bf16.vlgmr.msra.gmra.mxu1 %v773_v37  ;;  %875 = vmatpush3.bf16.msra.mxu0 %v942_v39 }
  0x2f   : > { %876 = vmatprep.subr.bf16.mxu0 %v958_v36  ;;  %890 = vmatprep.mubr.msk.bf16.mxu0 %vm959_vm0, %v958_v36 }
  0x32   : > { %877 = vmatpush3.bf16.msra.mxu0 %v943_v40 }
  0x33   : > { %878 = vmatprep.subr.bf16.mxu0 %v958_v36 }
  0x36   : > { %879 = vmatpush3.bf16.msra.mxu0 %v944_v41 }
  0x37   : > { %880 = vmatprep.subr.bf16.mxu0 %v958_v36 }
  0x3a   : > { %881 = vmatpush3.bf16.msra.mxu0 %v945_v42 }
  0x3b   : > { %882 = vmatprep.subr.bf16.mxu0 %v958_v36 }
  0x3e   : > { %883 = vmatpush3.bf16.msra.mxu0 %v946_v43 }
  0x3f   : > { %884 = vmatprep.subr.bf16.mxu0 %v958_v36 }
  0x42   : > { %885 = vmatpush3.bf16.msra.mxu0 %v947_v44 }
  0x43   : > { %886 = vmatprep.subr.bf16.mxu0 %v958_v36 }
  0x46   : > { %887 = vmatpush3.bf16.msra.mxu0 %v948_v45 }
  0x47   : > { %888 = vmatprep.subr.bf16.mxu0 %v958_v36 }
  0x4a   : > { %889 = vmatpush3.bf16.msra.mxu0 %v949_v46 }
  0x4d   : > { %891 = vmatmul.mubr.bf16.vlgmr.msra.gmra.mxu0 %v939_v47 }
  0xed   : > { %v837_v48 = vpop.f32.mrf.mxu0 }
  0xee   : > { %v859_v49 = vpop.f32.mrf.mxu1 }
  0xef   : > { %v838_v50 = vpop.f32.mrf.mxu0 }
  0xf0   : > { %v860_v51 = vpop.f32.mrf.mxu1  ;;  %v839_v56 = vadd.f32 %v838_v50, %v837_v48 }
  0xf1   : > { %v840_v52 = vpop.f32.mrf.mxu0  ;;  %v861_v57 = vadd.f32 %v860_v51, %v859_v49 }
  0xf2   : > { %v862_v53 = vpop.f32.mrf.mxu1 }
  0xf3   : > { %v841_v54 = vpop.f32.mrf.mxu0  ;;  %v640_v58 = vadd.f32 %v861_v57, %v839_v56 }
  0xf4   : > { %v863_v55 = vpop.f32.mrf.mxu1 }
 0x10d   : > { %v679_v59 = vpop.f32.mrf.mxu0 }
 0x10e   : > { %v680_v61 = vadd.f32 %v679_v59, %v640_v58 }
 0x10f   : > { %v892_v63 = vpop.f32.mrf.mxu0 }
 0x110   : > { %v692_v0 = vmul.f32 %v816_v60, %v680_v61 }
 0x111   : > { %v682_v2 = vpop.f32.mrf.mxu0 }
 0x112   : > { %v700_v3 = vadd.f32 %v817_v62, %v692_v0 }
 0x113   : > { %v893_v4 = vpop.f32.mrf.mxu0 }
 0x114   : > { %v708_v5 = vmax.f32 %v700_v3, %v818_v1 }
 0x116   : > { %v709_v6 = vpack.c.bf16 %v708_v5, %v708_v5 }
 0x118   : > { %710 = vst [vmem:[%s222_s21] sm:$0xf] %v709_v6 }
 0x119 PF: > { %s15_s18 = sadd.s32 1, %s956_s18  }
 0x11a   : > { %p12_p4 = scmp.ge.s32.totalorder %s15_s18, 4  }
 0x11c   :  { %14 = sbr.rel (!%p12_p4) target bundleno = 1 (0x1), region = 70 }

</bundles_post_ra>
